<compile_context>
chip_gen: v5e
topology: v5e:2x2
jax: 0.10.0
libtpu: 0.0.40
codegen_flags: <defaults>
</compile_context>

<pallas_src>
import jax
import jax.numpy as jnp
from jax.experimental import pallas as pl
from jax.experimental.pallas import tpu as pltpu

_VMEM_LIMIT = 32 * 1024 * 1024  # safe scoped limit on v5e/v6e/v7x


def _pick_tile(n, candidates):
    for c in candidates:
        if n % c == 0:
            return c
    raise ValueError(f"no tile in {candidates} divides {n} (demo assumes N % 128 == 0)")


# ---------------------------------------------------------------------------
# Kernel 1: graph neighbor mean (g.v2v "mean") fused with the hypergraph v2e
# reduction. For each destination-row tile i it accumulates A[i,:] @ X over the
# source axis, applies D_g^-1, and in the finalize emits the per-tile partial
# contributions of H^T X ("top" half of X_g) and H^T X_nbr ("bottom" half).
# X_g itself never touches HBM.
#   grid = (dst tiles [parallel], src tiles [arbitrary, reduction])
# ---------------------------------------------------------------------------
def _agg_v2e_partial_kernel(a_ref, xk_ref, xi_ref, invdeg_ref, ht_ref,
                            ptop_ref, pbot_ref, acc_ref):
    k = pl.program_id(1)

    @pl.when(k == 0)
    def _():
        acc_ref[...] = jnp.zeros_like(acc_ref)

    # A is already bf16 in HBM (0/1 exact). Only the small (TK, cin) X tile is
    # cast in-kernel; accumulation stays f32 -> native MXU bf16 rate.
    acc_ref[...] += jnp.dot(
        a_ref[...],
        xk_ref[...].astype(jnp.bfloat16),
        preferred_element_type=jnp.float32,
    )

    @pl.when(k == pl.num_programs(1) - 1)
    def _():
        x_nbr = acc_ref[...] * invdeg_ref[...]          # fold D_g^-1 (mean) in-kernel
        ht = ht_ref[...]                                 # (M1, TM) incidence^T tile
        # per-tile partials of Y = H^T [X, X_nbr]; summed (tiny) in XLA afterwards.
        ptop_ref[0] = jnp.dot(ht, xi_ref[...], preferred_element_type=jnp.float32)
        pbot_ref[0] = jnp.dot(ht, x_nbr, preferred_element_type=jnp.float32)


def agg_v2e_partials(A_bf16, X, inv_deg, Ht):
    N, cin = X.shape
    M1 = Ht.shape[0]
    TM = _pick_tile(N, (256, 128))
    TK = _pick_tile(N, (2048, 1024, 512, 256, 128))
    G = N // TM
    return pl.pallas_call(
        _agg_v2e_partial_kernel,
        out_shape=(
            jax.ShapeDtypeStruct((G, M1, cin), jnp.float32),   # partial H^T X
            jax.ShapeDtypeStruct((G, M1, cin), jnp.float32),   # partial H^T X_nbr
        ),
        grid_spec=pltpu.PrefetchScalarGridSpec(
            num_scalar_prefetch=0,
            grid=(G, N // TK),
            in_specs=[
                pl.BlockSpec((TM, TK), lambda i, k: (i, k)),    # A[dst, src] tile (bf16)
                pl.BlockSpec((TK, cin), lambda i, k: (k, 0)),   # X rows (reduction side)
                pl.BlockSpec((TM, cin), lambda i, k: (i, 0)),   # X rows (identity half)
                pl.BlockSpec((TM, 1), lambda i, k: (i, 0)),     # 1 / deg_g
                pl.BlockSpec((M1, TM), lambda i, k: (0, i)),    # H^T column tile
            ],
            out_specs=[
                pl.BlockSpec((1, M1, cin), lambda i, k: (i, 0, 0)),
                pl.BlockSpec((1, M1, cin), lambda i, k: (i, 0, 0)),
            ],
            scratch_shapes=[pltpu.VMEM((TM, cin), jnp.float32)],
        ),
        compiler_params=pltpu.CompilerParams(
            dimension_semantics=("parallel", "arbitrary"),
            vmem_limit_bytes=_VMEM_LIMIT,
        ),
        cost_estimate=pl.CostEstimate(
            flops=2 * N * N * cin + 4 * G * M1 * TM * cin,
            transcendentals=0,
            bytes_accessed=(2 * N * N                 # A (bf16), read once
                            + 4 * G * N * cin         # X reduction stream, re-read per i
                            + 4 * N * cin              # X identity half
                            + 4 * N                    # inv_deg
                            + 4 * G * M1 * N // G      # H^T, read once per i
                            + 8 * G * M1 * cin),       # partial outputs
        ),
    )(A_bf16, X, X, inv_deg, Ht)


# ---------------------------------------------------------------------------
# Kernel 2: hypergraph e2v mean + theta linear + ReLU (intermediate layer)
#   X1 = ReLU( (D_v^-1 H Y) @ W + b )     (dropout is eval-mode identity)
# ---------------------------------------------------------------------------
def _e2v_theta_relu_kernel(h_ref, y_ref, invdv_ref, w_ref, b_ref, out_ref):
    x_hg = jnp.dot(h_ref[...], y_ref[...], preferred_element_type=jnp.float32)
    x_hg = x_hg * invdv_ref[...]                        # fold D_v^-1 (mean) in-kernel
    x1 = jnp.dot(x_hg, w_ref[...], preferred_element_type=jnp.float32) + b_ref[...]
    out_ref[...] = jnp.maximum(x1, 0.0)                 # ReLU
    # TODO(synk): nn.Dropout(p=0.1) is eval-mode identity here (inference kernel).


def e2v_theta_relu(H1, Y, inv_dv, W, b):
    N, M1 = H1.shape
    C = Y.shape[1]
    Cout = W.shape[1]
    TM = _pick_tile(N, (256, 128))
    return pl.pallas_call(
        _e2v_theta_relu_kernel,
        out_shape=jax.ShapeDtypeStruct((N, Cout), jnp.float32),
        grid_spec=pltpu.PrefetchScalarGridSpec(
            num_scalar_prefetch=0,
            grid=(N // TM,),
            in_specs=[
                pl.BlockSpec((TM, M1), lambda i: (i, 0)),       # H rows
                pl.BlockSpec((M1, C), lambda i: (0, 0)),        # Y (resident)
                pl.BlockSpec((TM, 1), lambda i: (i, 0)),        # 1 / deg_v
                pl.BlockSpec((C, Cout), lambda i: (0, 0)),      # theta weight [in, out]
                pl.BlockSpec((1, Cout), lambda i: (0, 0)),      # theta bias
            ],
            out_specs=pl.BlockSpec((TM, Cout), lambda i: (i, 0)),
        ),
        compiler_params=pltpu.CompilerParams(
            dimension_semantics=("parallel",),
            vmem_limit_bytes=_VMEM_LIMIT,
        ),
        cost_estimate=pl.CostEstimate(
            flops=2 * N * M1 * C + 2 * N * C * Cout,
            transcendentals=0,
            bytes_accessed=4 * (N * M1 + M1 * C + N + C * Cout + Cout + N * Cout),
        ),
    )(H1, Y, inv_dv, W, b)


# ---------------------------------------------------------------------------
# Kernel 3: final layer = e2v mean + theta + ReLU fused with the masked max of
# the readout hyperedge. Emits only a per-tile partial max (G, 1, Cout); the
# full (N, Cout) activation never goes to HBM.
# ---------------------------------------------------------------------------
def _e2v_theta_relu_edgemax_kernel(h_ref, y_ref, invdv_ref, w_ref, b_ref,
                                   mask_ref, pmax_ref):
    x_hg = jnp.dot(h_ref[...], y_ref[...], preferred_element_type=jnp.float32)
    x_hg = x_hg * invdv_ref[...]
    x1 = jnp.dot(x_hg, w_ref[...], preferred_element_type=jnp.float32) + b_ref[...]
    x1 = jnp.maximum(x1, 0.0)
    # TODO(synk): -1e30 sentinel: an *empty* readout hyperedge would saturate the
    # logit instead of matching PyTorch on an empty index set (edge case only).
    masked = jnp.where(mask_ref[...] > 0, x1, jnp.float32(-1e30))
    pmax_ref[0] = jnp.max(masked, axis=0, keepdims=True)


def e2v_theta_relu_edgemax(H1, Y, inv_dv, W, b, mask):
    N, M1 = H1.shape
    C = Y.shape[1]
    Cout = W.shape[1]
    TM = _pick_tile(N, (256, 128))
    G = N // TM
    return pl.pallas_call(
        _e2v_theta_relu_edgemax_kernel,
        out_shape=jax.ShapeDtypeStruct((G, 1, Cout), jnp.float32),
        grid_spec=pltpu.PrefetchScalarGridSpec(
            num_scalar_prefetch=0,
            grid=(G,),
            in_specs=[
                pl.BlockSpec((TM, M1), lambda i: (i, 0)),
                pl.BlockSpec((M1, C), lambda i: (0, 0)),
                pl.BlockSpec((TM, 1), lambda i: (i, 0)),
                pl.BlockSpec((C, Cout), lambda i: (0, 0)),
                pl.BlockSpec((1, Cout), lambda i: (0, 0)),
                pl.BlockSpec((TM, 1), lambda i: (i, 0)),        # readout edge mask
            ],
            out_specs=pl.BlockSpec((1, 1, Cout), lambda i: (i, 0, 0)),
        ),
        compiler_params=pltpu.CompilerParams(
            dimension_semantics=("parallel",),
            vmem_limit_bytes=_VMEM_LIMIT,
        ),
        cost_estimate=pl.CostEstimate(
            flops=2 * N * M1 * C + 2 * N * C * Cout,
            transcendentals=0,
            bytes_accessed=4 * (N * M1 + M1 * C + 2 * N + C * Cout + Cout + G * Cout),
        ),
    )(H1, Y, inv_dv, W, b, mask)


# ---------------------------------------------------------------------------
# Kernel 4: tiny readout head — combine per-tile partial maxes, Linear(Cout,1),
# sigmoid. Operates on (G, Cout) only, so it never blows VMEM at large N.
# ---------------------------------------------------------------------------
def _readout_kernel(pmax_ref, wfc_ref, bfc_ref, out_ref):
    edge_x = jnp.max(pmax_ref[...], axis=0, keepdims=True)               # [1, Cout]
    logit = jnp.dot(edge_x, wfc_ref[...], preferred_element_type=jnp.float32) + bfc_ref[...]
    out_ref[...] = 1.0 / (1.0 + jnp.exp(-logit))                         # sigmoid


def readout_fc(pmax2d, w_fc, b_fc):
    vmem = pl.BlockSpec(memory_space=pltpu.MemorySpace.VMEM)
    return pl.pallas_call(
        _readout_kernel,
        out_shape=jax.ShapeDtypeStruct((1, 1), jnp.float32),
        in_specs=[vmem, vmem, vmem],
        out_specs=vmem,
    )(pmax2d, w_fc, b_fc)


# ---------------------------------------------------------------------------
# Structural glue (plain JAX): degree reciprocals for the "mean" aggregations
# and the tiny Y assembly from the fused v2e partials.
# ---------------------------------------------------------------------------
def _graph_mean_inv_deg(A):
    deg = jnp.sum(A.astype(jnp.float32), axis=1, keepdims=True)
    return jnp.where(deg > 0, 1.0 / deg, 0.0)                   # [N, 1]


def _hypergraph_mean_factors(H1):
    # H1: [N, M1] incidence (vertex x hyperedge), 0/1
    de = jnp.sum(H1, axis=0, keepdims=True)                     # [1, M1] hyperedge sizes
    dv = jnp.sum(H1, axis=1, keepdims=True)                     # [N, 1]  vertex degrees
    inv_de = jnp.where(de > 0, 1.0 / de, 0.0).T                 # [M1, 1]
    inv_dv = jnp.where(dv > 0, 1.0 / dv, 0.0)                   # [N, 1]
    return inv_de, inv_dv


def _assemble_Y(ptop, pbot, inv_de):
    # sum the tiny per-tile partials and fold D_e^-1 (mean) -> Y = D_e^-1 H^T X_g
    return jnp.concatenate([jnp.sum(ptop, axis=0), jnp.sum(pbot, axis=0)], axis=1) * inv_de


@jax.jit
def graphsage_hgnnplus_forward(X, A_bf16, H, w1, b1, w2, b2, w_fc, b_fc):
    # hg1 = dhg.Hypergraph(len(hg.v), hg.e[0][:-1]) : drop the last hyperedge
    H1 = H[:, :-1]
    H1t = H1.T
    inv_deg_g = _graph_mean_inv_deg(A_bf16)
    inv_de, inv_dv = _hypergraph_mean_factors(H1)
    edge_mask = H[:, -1:]                        # membership mask of the readout hyperedge

    # ---- conv1 (encode's extra .relu() is idempotent after conv's ReLU) ----
    ptop, pbot = agg_v2e_partials(A_bf16, X, inv_deg_g, H1t)
    Y1 = _assemble_Y(ptop, pbot, inv_de)
    h1 = e2v_theta_relu(H1, Y1, inv_dv, w1, b1)

    # ---- conv2 + fused masked-max readout partials ----
    ptop, pbot = agg_v2e_partials(A_bf16, h1, inv_deg_g, H1t)
    Y2 = _assemble_Y(ptop, pbot, inv_de)
    pmax = e2v_theta_relu_edgemax(H1, Y2, inv_dv, w2, b2, edge_mask)   # (G, 1, Cout)

    return readout_fc(pmax[:, 0, :], w_fc, b_fc)                      # (1, 1)


# ---------------------------------------------------------------------------
# Pure-JAX reference (f32) for a sanity check.
# ---------------------------------------------------------------------------
def _reference_forward(X, A, H, w1, b1, w2, b2, w_fc, b_fc):
    A = A.astype(jnp.float32)
    H1 = H[:, :-1]
    inv_deg = _graph_mean_inv_deg(A)
    inv_de, inv_dv = _hypergraph_mean_factors(H1)

    def conv(Xin, W, b):
        x_nbr = inv_deg * (A @ Xin)
        xg = jnp.concatenate([Xin, x_nbr], axis=1)
        Y = inv_de * (H1.T @ xg)
        x_hg = inv_dv * (H1 @ Y)
        return jax.nn.relu(x_hg @ W + b)

    x = conv(conv(X, w1, b1), w2, b2)
    mask = H[:, -1:] > 0
    edge_x = jnp.max(jnp.where(mask, x, -jnp.inf), axis=0, keepdims=True)
    return jax.nn.sigmoid(edge_x @ w_fc + b_fc)


# ---------------------------------------------------------------------------
if __name__ == "__main__":
    key = jax.random.PRNGKey(0)
    N, Cin, Hid, Cout = 256, 16, 32, 32
    M = 9  # 8 message-passing hyperedges + 1 readout hyperedge (the last one)
    ks = jax.random.split(key, 6)

    # vertex features
    X = jax.random.normal(ks[0], (N, Cin), jnp.float32)

    # theta weights stored pre-transposed [in, out] (PyTorch nn.Linear keeps [out, in])
    w1 = jax.random.normal(ks[1], (2 * Cin, Hid), jnp.float32) * 0.1
    b1 = jax.random.normal(ks[2], (1, Hid), jnp.float32) * 0.1
    w2 = jax.random.normal(ks[3], (2 * Hid, Cout), jnp.float32) * 0.1
    b2 = jax.random.normal(ks[4], (1, Cout), jnp.float32) * 0.1
    w_fc = jax.random.normal(ks[5], (Cout, 1), jnp.float32) * 0.1
    b_fc = jnp.zeros((1, 1), jnp.float32)

    # simple graph g: undirected ring, dense adjacency A[dst, src] = 1
    src = jnp.arange(N)
    dst = (src + 1) % N
    A = jnp.zeros((N, N), jnp.float32).at[dst, src].set(1.0).at[src, dst].set(1.0)
    # store A as bf16 in HBM (0/1 exact) -> halves the dominant HBM stream of kernel 1
    A_bf16 = A.astype(jnp.bfloat16)

    # hypergraph hg: incidence [N, M]; each hyperedge = 5 vertices; last one is the
    # readout edge (hg.e[0][-1] in the PyTorch code).
    H = jnp.zeros((N, M), jnp.float32)
    for m in range(M):
        vs = jnp.array([(11 * m + t) % N for t in range(5)])
        H = H.at[vs, m].set(1.0)

    out = graphsage_hgnnplus_forward(X, A_bf16, H, w1, b1, w2, b2, w_fc, b_fc)
    out = jax.block_until_ready(out)

    ref = _reference_forward(X, A, H, w1, b1, w2, b2, w_fc, b_fc)

    assert out.shape == (1, 1)
    assert bool(jnp.all(jnp.isfinite(out)))
    assert bool(jnp.all((out > 0.0) & (out < 1.0)))              # sigmoid range
    assert abs(float(out[0, 0]) - float(ref[0, 0])) < 2e-2       # bf16-X drift tolerance
    print("KERNEL_OK")
</pallas_src>

<mosaic_0001>
module attributes {stable_mosaic.version = 11 : i64} {
  func.func @_agg_v2e_partial_kernel(%arg0: i32, %arg1: i32, %arg2: memref<256x256xbf16, #tpu.memory_space<vmem>>, %arg3: memref<256x16xf32, #tpu.memory_space<vmem>>, %arg4: memref<256x16xf32, #tpu.memory_space<vmem>>, %arg5: memref<256x1xf32, #tpu.memory_space<vmem>>, %arg6: memref<8x256xf32, #tpu.memory_space<vmem>>, %arg7: memref<1x8x16xf32, #tpu.memory_space<vmem>>, %arg8: memref<1x8x16xf32, #tpu.memory_space<vmem>>, %arg9: memref<256x16xf32, #tpu.memory_space<vmem>>) attributes {dimension_semantics = [#tpu.dimension_semantics<parallel>, #tpu.dimension_semantics<arbitrary>], iteration_bounds = array<i64: 1, 1>, scalar_prefetch = 0 : i64, scratch_operands = 1 : i64, tpu.core_type = #tpu.core_type<tc>, window_params = [{transform_indices = @transform_0, window_bounds = array<i64: 256, 256>}, {transform_indices = @transform_1, window_bounds = array<i64: 256, 16>}, {transform_indices = @transform_2, window_bounds = array<i64: 256, 16>}, {transform_indices = @transform_3, window_bounds = array<i64: 256, 1>}, {transform_indices = @transform_4, window_bounds = array<i64: 8, 256>}, {transform_indices = @transform_5, window_bounds = array<i64: 1, 8, 16>}, {transform_indices = @transform_6, window_bounds = array<i64: 1, 8, 16>}]} {
    %c0_i32 = arith.constant 0 : i32
    %0 = arith.cmpi eq, %arg1, %c0_i32 : i32
    %1 = arith.extui %0 : i1 to i32
    %c0_i32_0 = arith.constant 0 : i32
    %2 = arith.cmpi ne, %1, %c0_i32_0 : i32
    scf.if %2 {
      %cst_10 = arith.constant 0.000000e+00 : f32
      %13 = vector.broadcast %cst_10 : f32 to vector<256x16xf32>
      %c0_11 = arith.constant 0 : index
      %c0_12 = arith.constant 0 : index
      %14 = vector.load %arg9[%c0_11, %c0_12] : memref<256x16xf32, #tpu.memory_space<vmem>>, vector<256x16xf32>
      tpu.vector_store %arg9[%c0_11, %c0_12], %13 {strides = array<i32>} : memref<256x16xf32, #tpu.memory_space<vmem>>, vector<256x16xf32>,
    } else {
    }
    %c0 = arith.constant 0 : index
    %c0_1 = arith.constant 0 : index
    %3 = vector.load %arg9[%c0, %c0_1] : memref<256x16xf32, #tpu.memory_space<vmem>>, vector<256x16xf32>
    %c0_2 = arith.constant 0 : index
    %c0_3 = arith.constant 0 : index
    %4 = vector.load %arg2[%c0_2, %c0_3] : memref<256x256xbf16, #tpu.memory_space<vmem>>, vector<256x256xbf16>
    %c0_4 = arith.constant 0 : index
    %c0_5 = arith.constant 0 : index
    %5 = vector.load %arg3[%c0_4, %c0_5] : memref<256x16xf32, #tpu.memory_space<vmem>>, vector<256x16xf32>
    %6 = arith.truncf %5 : vector<256x16xf32> to vector<256x16xbf16>
    %cst = arith.constant dense<0.000000e+00> : vector<256x16xf32>
    %7 = tpu.matmul %4, %6, %cst {dimension_numbers = #tpu.dot_dimension_numbers<[1], [0], [0], [1], [0, 0, 1, 1], [], []>} : vector<256x256xbf16>, vector<256x16xbf16>, vector<256x16xf32> -> vector<256x16xf32>
    %8 = arith.addf %3, %7 : vector<256x16xf32>
    %c0_6 = arith.constant 0 : index
    %c0_7 = arith.constant 0 : index
    %9 = vector.load %arg9[%c0_6, %c0_7] : memref<256x16xf32, #tpu.memory_space<vmem>>, vector<256x16xf32>
    tpu.vector_store %arg9[%c0_6, %c0_7], %8 {strides = array<i32>} : memref<256x16xf32, #tpu.memory_space<vmem>>, vector<256x16xf32>,
    %c0_i32_8 = arith.constant 0 : i32
    %10 = arith.cmpi eq, %arg1, %c0_i32_8 : i32
    %11 = arith.extui %10 : i1 to i32
    %c0_i32_9 = arith.constant 0 : i32
    %12 = arith.cmpi ne, %11, %c0_i32_9 : i32
    scf.if %12 {
      %c0_10 = arith.constant 0 : index
      %c0_11 = arith.constant 0 : index
      %13 = vector.load %arg9[%c0_10, %c0_11] : memref<256x16xf32, #tpu.memory_space<vmem>>, vector<256x16xf32>
      %c0_12 = arith.constant 0 : index
      %c0_13 = arith.constant 0 : index
      %14 = vector.load %arg5[%c0_12, %c0_13] : memref<256x1xf32, #tpu.memory_space<vmem>>, vector<256x1xf32>
      %15 = vector.broadcast %14 : vector<256x1xf32> to vector<256x16xf32>
      %16 = arith.mulf %13, %15 : vector<256x16xf32>
      %c0_14 = arith.constant 0 : index
      %c0_15 = arith.constant 0 : index
      %17 = vector.load %arg6[%c0_14, %c0_15] : memref<8x256xf32, #tpu.memory_space<vmem>>, vector<8x256xf32>
      %c0_16 = arith.constant 0 : index
      %c0_17 = arith.constant 0 : index
      %18 = vector.load %arg4[%c0_16, %c0_17] : memref<256x16xf32, #tpu.memory_space<vmem>>, vector<256x16xf32>
      %cst_18 = arith.constant dense<0.000000e+00> : vector<8x16xf32>
      %19 = tpu.matmul %17, %18, %cst_18 {dimension_numbers = #tpu.dot_dimension_numbers<[1], [0], [0], [1], [0, 0, 1, 1], [], []>} : vector<8x256xf32>, vector<256x16xf32>, vector<8x16xf32> -> vector<8x16xf32>
      %c0_19 = arith.constant 0 : index
      %c0_20 = arith.constant 0 : index
      %c0_21 = arith.constant 0 : index
      %20 = vector.load %arg7[%c0_19, %c0_20, %c0_21] : memref<1x8x16xf32, #tpu.memory_space<vmem>>, vector<1x8x16xf32>
      %21 = vector.shape_cast %20 : vector<1x8x16xf32> to vector<8x16xf32>
      %22 = vector.shape_cast %19 : vector<8x16xf32> to vector<1x8x16xf32>
      tpu.vector_store %arg7[%c0_19, %c0_20, %c0_21], %22 {strides = array<i32>} : memref<1x8x16xf32, #tpu.memory_space<vmem>>, vector<1x8x16xf32>,
      %cst_22 = arith.constant dense<0.000000e+00> : vector<8x16xf32>
      %23 = tpu.matmul %17, %16, %cst_22 {dimension_numbers = #tpu.dot_dimension_numbers<[1], [0], [0], [1], [0, 0, 1, 1], [], []>} : vector<8x256xf32>, vector<256x16xf32>, vector<8x16xf32> -> vector<8x16xf32>
      %c0_23 = arith.constant 0 : index
      %c0_24 = arith.constant 0 : index
      %c0_25 = arith.constant 0 : index
      %24 = vector.load %arg8[%c0_23, %c0_24, %c0_25] : memref<1x8x16xf32, #tpu.memory_space<vmem>>, vector<1x8x16xf32>
      %25 = vector.shape_cast %24 : vector<1x8x16xf32> to vector<8x16xf32>
      %26 = vector.shape_cast %23 : vector<8x16xf32> to vector<1x8x16xf32>
      tpu.vector_store %arg8[%c0_23, %c0_24, %c0_25], %26 {strides = array<i32>} : memref<1x8x16xf32, #tpu.memory_space<vmem>>, vector<1x8x16xf32>,
    } else {
    }
    return
  }
  func.func @transform_0(%arg0: i32, %arg1: i32) -> (i32, i32) {
    %c0_i32 = arith.constant 0 : i32
    return %arg0, %arg1 : i32, i32
  }
  func.func @transform_1(%arg0: i32, %arg1: i32) -> (i32, i32) {
    %c0_i32 = arith.constant 0 : i32
    %c0_i32_0 = arith.constant 0 : i32
    return %arg1, %c0_i32 : i32, i32
  }
  func.func @transform_2(%arg0: i32, %arg1: i32) -> (i32, i32) {
    %c0_i32 = arith.constant 0 : i32
    %c0_i32_0 = arith.constant 0 : i32
    return %arg0, %c0_i32 : i32, i32
  }
  func.func @transform_3(%arg0: i32, %arg1: i32) -> (i32, i32) {
    %c0_i32 = arith.constant 0 : i32
    %c0_i32_0 = arith.constant 0 : i32
    return %arg0, %c0_i32 : i32, i32
  }
  func.func @transform_4(%arg0: i32, %arg1: i32) -> (i32, i32) {
    %c0_i32 = arith.constant 0 : i32
    %c0_i32_0 = arith.constant 0 : i32
    return %c0_i32, %arg0 : i32, i32
  }
  func.func @transform_5(%arg0: i32, %arg1: i32) -> (i32, i32, i32) {
    %c0_i32 = arith.constant 0 : i32
    %c0_i32_0 = arith.constant 0 : i32
    %c0_i32_1 = arith.constant 0 : i32
    return %arg0, %c0_i32, %c0_i32_0 : i32, i32, i32
  }
  func.func @transform_6(%arg0: i32, %arg1: i32) -> (i32, i32, i32) {
    %c0_i32 = arith.constant 0 : i32
    %c0_i32_0 = arith.constant 0 : i32
    %c0_i32_1 = arith.constant 0 : i32
    return %arg0, %c0_i32, %c0_i32_0 : i32, i32, i32
  }
}

module attributes {stable_mosaic.version = 11 : i64} {
  func.func @_e2v_theta_relu_kernel(%arg0: i32, %arg1: memref<256x8xf32, #tpu.memory_space<vmem>>, %arg2: memref<8x32xf32, #tpu.memory_space<vmem>>, %arg3: memref<256x1xf32, #tpu.memory_space<vmem>>, %arg4: memref<32x32xf32, #tpu.memory_space<vmem>>, %arg5: memref<1x32xf32, #tpu.memory_space<vmem>>, %arg6: memref<256x32xf32, #tpu.memory_space<vmem>>) attributes {dimension_semantics = [#tpu.dimension_semantics<parallel>], iteration_bounds = array<i64: 1>, scalar_prefetch = 0 : i64, scratch_operands = 0 : i64, tpu.core_type = #tpu.core_type<tc>, window_params = [{transform_indices = @transform_0, window_bounds = array<i64: 256, 8>}, {pipeline_mode = #tpu.pipeline_mode<synchronous>, transform_indices = @transform_1, window_bounds = array<i64: 8, 32>}, {transform_indices = @transform_2, window_bounds = array<i64: 256, 1>}, {pipeline_mode = #tpu.pipeline_mode<synchronous>, transform_indices = @transform_3, window_bounds = array<i64: 32, 32>}, {pipeline_mode = #tpu.pipeline_mode<synchronous>, transform_indices = @transform_4, window_bounds = array<i64: 1, 32>}, {transform_indices = @transform_5, window_bounds = array<i64: 256, 32>}]} {
    %c0 = arith.constant 0 : index
    %c0_0 = arith.constant 0 : index
    %0 = vector.load %arg1[%c0, %c0_0] : memref<256x8xf32, #tpu.memory_space<vmem>>, vector<256x8xf32>
    %c0_1 = arith.constant 0 : index
    %c0_2 = arith.constant 0 : index
    %1 = vector.load %arg2[%c0_1, %c0_2] : memref<8x32xf32, #tpu.memory_space<vmem>>, vector<8x32xf32>
    %cst = arith.constant dense<0.000000e+00> : vector<256x32xf32>
    %2 = tpu.matmul %0, %1, %cst {dimension_numbers = #tpu.dot_dimension_numbers<[1], [0], [0], [1], [0, 0, 1, 1], [], []>} : vector<256x8xf32>, vector<8x32xf32>, vector<256x32xf32> -> vector<256x32xf32>
    %c0_3 = arith.constant 0 : index
    %c0_4 = arith.constant 0 : index
    %3 = vector.load %arg3[%c0_3, %c0_4] : memref<256x1xf32, #tpu.memory_space<vmem>>, vector<256x1xf32>
    %4 = vector.broadcast %3 : vector<256x1xf32> to vector<256x32xf32>
    %5 = arith.mulf %2, %4 : vector<256x32xf32>
    %c0_5 = arith.constant 0 : index
    %c0_6 = arith.constant 0 : index
    %6 = vector.load %arg4[%c0_5, %c0_6] : memref<32x32xf32, #tpu.memory_space<vmem>>, vector<32x32xf32>
    %cst_7 = arith.constant dense<0.000000e+00> : vector<256x32xf32>
    %7 = tpu.matmul %5, %6, %cst_7 {dimension_numbers = #tpu.dot_dimension_numbers<[1], [0], [0], [1], [0, 0, 1, 1], [], []>} : vector<256x32xf32>, vector<32x32xf32>, vector<256x32xf32> -> vector<256x32xf32>
    %c0_8 = arith.constant 0 : index
    %c0_9 = arith.constant 0 : index
    %8 = vector.load %arg5[%c0_8, %c0_9] : memref<1x32xf32, #tpu.memory_space<vmem>>, vector<1x32xf32>
    %9 = vector.broadcast %8 : vector<1x32xf32> to vector<256x32xf32>
    %10 = arith.addf %7, %9 : vector<256x32xf32>
    %cst_10 = arith.constant 0.000000e+00 : f32
    %11 = vector.broadcast %cst_10 : f32 to vector<256x32xf32>
    %12 = arith.maximumf %10, %11 : vector<256x32xf32>
    %c0_11 = arith.constant 0 : index
    %c0_12 = arith.constant 0 : index
    %13 = vector.load %arg6[%c0_11, %c0_12] : memref<256x32xf32, #tpu.memory_space<vmem>>, vector<256x32xf32>
    tpu.vector_store %arg6[%c0_11, %c0_12], %12 {strides = array<i32>} : memref<256x32xf32, #tpu.memory_space<vmem>>, vector<256x32xf32>,
    return
  }
  func.func @transform_0(%arg0: i32) -> (i32, i32) {
    %c0_i32 = arith.constant 0 : i32
    %c0_i32_0 = arith.constant 0 : i32
    return %arg0, %c0_i32 : i32, i32
  }
  func.func @transform_1(%arg0: i32) -> (i32, i32) {
    %c0_i32 = arith.constant 0 : i32
    %c0_i32_0 = arith.constant 0 : i32
    %c0_i32_1 = arith.constant 0 : i32
    return %c0_i32, %c0_i32_0 : i32, i32
  }
  func.func @transform_2(%arg0: i32) -> (i32, i32) {
    %c0_i32 = arith.constant 0 : i32
    %c0_i32_0 = arith.constant 0 : i32
    return %arg0, %c0_i32 : i32, i32
  }
  func.func @transform_3(%arg0: i32) -> (i32, i32) {
    %c0_i32 = arith.constant 0 : i32
    %c0_i32_0 = arith.constant 0 : i32
    %c0_i32_1 = arith.constant 0 : i32
    return %c0_i32, %c0_i32_0 : i32, i32
  }
  func.func @transform_4(%arg0: i32) -> (i32, i32) {
    %c0_i32 = arith.constant 0 : i32
    %c0_i32_0 = arith.constant 0 : i32
    %c0_i32_1 = arith.constant 0 : i32
    return %c0_i32, %c0_i32_0 : i32, i32
  }
  func.func @transform_5(%arg0: i32) -> (i32, i32) {
    %c0_i32 = arith.constant 0 : i32
    %c0_i32_0 = arith.constant 0 : i32
    return %arg0, %c0_i32 : i32, i32
  }
}

module attributes {stable_mosaic.version = 11 : i64} {
  func.func @_agg_v2e_partial_kernel(%arg0: i32, %arg1: i32, %arg2: memref<256x256xbf16, #tpu.memory_space<vmem>>, %arg3: memref<256x32xf32, #tpu.memory_space<vmem>>, %arg4: memref<256x32xf32, #tpu.memory_space<vmem>>, %arg5: memref<256x1xf32, #tpu.memory_space<vmem>>, %arg6: memref<8x256xf32, #tpu.memory_space<vmem>>, %arg7: memref<1x8x32xf32, #tpu.memory_space<vmem>>, %arg8: memref<1x8x32xf32, #tpu.memory_space<vmem>>, %arg9: memref<256x32xf32, #tpu.memory_space<vmem>>) attributes {dimension_semantics = [#tpu.dimension_semantics<parallel>, #tpu.dimension_semantics<arbitrary>], iteration_bounds = array<i64: 1, 1>, scalar_prefetch = 0 : i64, scratch_operands = 1 : i64, tpu.core_type = #tpu.core_type<tc>, window_params = [{transform_indices = @transform_0, window_bounds = array<i64: 256, 256>}, {transform_indices = @transform_1, window_bounds = array<i64: 256, 32>}, {transform_indices = @transform_2, window_bounds = array<i64: 256, 32>}, {transform_indices = @transform_3, window_bounds = array<i64: 256, 1>}, {transform_indices = @transform_4, window_bounds = array<i64: 8, 256>}, {transform_indices = @transform_5, window_bounds = array<i64: 1, 8, 32>}, {transform_indices = @transform_6, window_bounds = array<i64: 1, 8, 32>}]} {
    %c0_i32 = arith.constant 0 : i32
    %0 = arith.cmpi eq, %arg1, %c0_i32 : i32
    %1 = arith.extui %0 : i1 to i32
    %c0_i32_0 = arith.constant 0 : i32
    %2 = arith.cmpi ne, %1, %c0_i32_0 : i32
    scf.if %2 {
      %cst_10 = arith.constant 0.000000e+00 : f32
      %13 = vector.broadcast %cst_10 : f32 to vector<256x32xf32>
      %c0_11 = arith.constant 0 : index
      %c0_12 = arith.constant 0 : index
      %14 = vector.load %arg9[%c0_11, %c0_12] : memref<256x32xf32, #tpu.memory_space<vmem>>, vector<256x32xf32>
      tpu.vector_store %arg9[%c0_11, %c0_12], %13 {strides = array<i32>} : memref<256x32xf32, #tpu.memory_space<vmem>>, vector<256x32xf32>,
    } else {
    }
    %c0 = arith.constant 0 : index
    %c0_1 = arith.constant 0 : index
    %3 = vector.load %arg9[%c0, %c0_1] : memref<256x32xf32, #tpu.memory_space<vmem>>, vector<256x32xf32>
    %c0_2 = arith.constant 0 : index
    %c0_3 = arith.constant 0 : index
    %4 = vector.load %arg2[%c0_2, %c0_3] : memref<256x256xbf16, #tpu.memory_space<vmem>>, vector<256x256xbf16>
    %c0_4 = arith.constant 0 : index
    %c0_5 = arith.constant 0 : index
    %5 = vector.load %arg3[%c0_4, %c0_5] : memref<256x32xf32, #tpu.memory_space<vmem>>, vector<256x32xf32>
    %6 = arith.truncf %5 : vector<256x32xf32> to vector<256x32xbf16>
    %cst = arith.constant dense<0.000000e+00> : vector<256x32xf32>
    %7 = tpu.matmul %4, %6, %cst {dimension_numbers = #tpu.dot_dimension_numbers<[1], [0], [0], [1], [0, 0, 1, 1], [], []>} : vector<256x256xbf16>, vector<256x32xbf16>, vector<256x32xf32> -> vector<256x32xf32>
    %8 = arith.addf %3, %7 : vector<256x32xf32>
    %c0_6 = arith.constant 0 : index
    %c0_7 = arith.constant 0 : index
    %9 = vector.load %arg9[%c0_6, %c0_7] : memref<256x32xf32, #tpu.memory_space<vmem>>, vector<256x32xf32>
    tpu.vector_store %arg9[%c0_6, %c0_7], %8 {strides = array<i32>} : memref<256x32xf32, #tpu.memory_space<vmem>>, vector<256x32xf32>,
    %c0_i32_8 = arith.constant 0 : i32
    %10 = arith.cmpi eq, %arg1, %c0_i32_8 : i32
    %11 = arith.extui %10 : i1 to i32
    %c0_i32_9 = arith.constant 0 : i32
    %12 = arith.cmpi ne, %11, %c0_i32_9 : i32
    scf.if %12 {
      %c0_10 = arith.constant 0 : index
      %c0_11 = arith.constant 0 : index
      %13 = vector.load %arg9[%c0_10, %c0_11] : memref<256x32xf32, #tpu.memory_space<vmem>>, vector<256x32xf32>
      %c0_12 = arith.constant 0 : index
      %c0_13 = arith.constant 0 : index
      %14 = vector.load %arg5[%c0_12, %c0_13] : memref<256x1xf32, #tpu.memory_space<vmem>>, vector<256x1xf32>
      %15 = vector.broadcast %14 : vector<256x1xf32> to vector<256x32xf32>
      %16 = arith.mulf %13, %15 : vector<256x32xf32>
      %c0_14 = arith.constant 0 : index
      %c0_15 = arith.constant 0 : index
      %17 = vector.load %arg6[%c0_14, %c0_15] : memref<8x256xf32, #tpu.memory_space<vmem>>, vector<8x256xf32>
      %c0_16 = arith.constant 0 : index
      %c0_17 = arith.constant 0 : index
      %18 = vector.load %arg4[%c0_16, %c0_17] : memref<256x32xf32, #tpu.memory_space<vmem>>, vector<256x32xf32>
      %cst_18 = arith.constant dense<0.000000e+00> : vector<8x32xf32>
      %19 = tpu.matmul %17, %18, %cst_18 {dimension_numbers = #tpu.dot_dimension_numbers<[1], [0], [0], [1], [0, 0, 1, 1], [], []>} : vector<8x256xf32>, vector<256x32xf32>, vector<8x32xf32> -> vector<8x32xf32>
      %c0_19 = arith.constant 0 : index
      %c0_20 = arith.constant 0 : index
      %c0_21 = arith.constant 0 : index
      %20 = vector.load %arg7[%c0_19, %c0_20, %c0_21] : memref<1x8x32xf32, #tpu.memory_space<vmem>>, vector<1x8x32xf32>
      %21 = vector.shape_cast %20 : vector<1x8x32xf32> to vector<8x32xf32>
      %22 = vector.shape_cast %19 : vector<8x32xf32> to vector<1x8x32xf32>
      tpu.vector_store %arg7[%c0_19, %c0_20, %c0_21], %22 {strides = array<i32>} : memref<1x8x32xf32, #tpu.memory_space<vmem>>, vector<1x8x32xf32>,
      %cst_22 = arith.constant dense<0.000000e+00> : vector<8x32xf32>
      %23 = tpu.matmul %17, %16, %cst_22 {dimension_numbers = #tpu.dot_dimension_numbers<[1], [0], [0], [1], [0, 0, 1, 1], [], []>} : vector<8x256xf32>, vector<256x32xf32>, vector<8x32xf32> -> vector<8x32xf32>
      %c0_23 = arith.constant 0 : index
      %c0_24 = arith.constant 0 : index
      %c0_25 = arith.constant 0 : index
      %24 = vector.load %arg8[%c0_23, %c0_24, %c0_25] : memref<1x8x32xf32, #tpu.memory_space<vmem>>, vector<1x8x32xf32>
      %25 = vector.shape_cast %24 : vector<1x8x32xf32> to vector<8x32xf32>
      %26 = vector.shape_cast %23 : vector<8x32xf32> to vector<1x8x32xf32>
      tpu.vector_store %arg8[%c0_23, %c0_24, %c0_25], %26 {strides = array<i32>} : memref<1x8x32xf32, #tpu.memory_space<vmem>>, vector<1x8x32xf32>,
    } else {
    }
    return
  }
  func.func @transform_0(%arg0: i32, %arg1: i32) -> (i32, i32) {
    %c0_i32 = arith.constant 0 : i32
    return %arg0, %arg1 : i32, i32
  }
  func.func @transform_1(%arg0: i32, %arg1: i32) -> (i32, i32) {
    %c0_i32 = arith.constant 0 : i32
    %c0_i32_0 = arith.constant 0 : i32
    return %arg1, %c0_i32 : i32, i32
  }
  func.func @transform_2(%arg0: i32, %arg1: i32) -> (i32, i32) {
    %c0_i32 = arith.constant 0 : i32
    %c0_i32_0 = arith.constant 0 : i32
    return %arg0, %c0_i32 : i32, i32
  }
  func.func @transform_3(%arg0: i32, %arg1: i32) -> (i32, i32) {
    %c0_i32 = arith.constant 0 : i32
    %c0_i32_0 = arith.constant 0 : i32
    return %arg0, %c0_i32 : i32, i32
  }
  func.func @transform_4(%arg0: i32, %arg1: i32) -> (i32, i32) {
    %c0_i32 = arith.constant 0 : i32
    %c0_i32_0 = arith.constant 0 : i32
    return %c0_i32, %arg0 : i32, i32
  }
  func.func @transform_5(%arg0: i32, %arg1: i32) -> (i32, i32, i32) {
    %c0_i32 = arith.constant 0 : i32
    %c0_i32_0 = arith.constant 0 : i32
    %c0_i32_1 = arith.constant 0 : i32
    return %arg0, %c0_i32, %c0_i32_0 : i32, i32, i32
  }
  func.func @transform_6(%arg0: i32, %arg1: i32) -> (i32, i32, i32) {
    %c0_i32 = arith.constant 0 : i32
    %c0_i32_0 = arith.constant 0 : i32
    %c0_i32_1 = arith.constant 0 : i32
    return %arg0, %c0_i32, %c0_i32_0 : i32, i32, i32
  }
}

module attributes {stable_mosaic.version = 11 : i64} {
  func.func @_e2v_theta_relu_edgemax_kernel(%arg0: i32, %arg1: memref<256x8xf32, #tpu.memory_space<vmem>>, %arg2: memref<8x64xf32, #tpu.memory_space<vmem>>, %arg3: memref<256x1xf32, #tpu.memory_space<vmem>>, %arg4: memref<64x32xf32, #tpu.memory_space<vmem>>, %arg5: memref<1x32xf32, #tpu.memory_space<vmem>>, %arg6: memref<256x1xf32, #tpu.memory_space<vmem>>, %arg7: memref<1x1x32xf32, #tpu.memory_space<vmem>>) attributes {dimension_semantics = [#tpu.dimension_semantics<parallel>], iteration_bounds = array<i64: 1>, scalar_prefetch = 0 : i64, scratch_operands = 0 : i64, tpu.core_type = #tpu.core_type<tc>, window_params = [{transform_indices = @transform_0, window_bounds = array<i64: 256, 8>}, {pipeline_mode = #tpu.pipeline_mode<synchronous>, transform_indices = @transform_1, window_bounds = array<i64: 8, 64>}, {transform_indices = @transform_2, window_bounds = array<i64: 256, 1>}, {pipeline_mode = #tpu.pipeline_mode<synchronous>, transform_indices = @transform_3, window_bounds = array<i64: 64, 32>}, {pipeline_mode = #tpu.pipeline_mode<synchronous>, transform_indices = @transform_4, window_bounds = array<i64: 1, 32>}, {transform_indices = @transform_5, window_bounds = array<i64: 256, 1>}, {transform_indices = @transform_6, window_bounds = array<i64: 1, 1, 32>}]} {
    %c0 = arith.constant 0 : index
    %c0_0 = arith.constant 0 : index
    %0 = vector.load %arg1[%c0, %c0_0] : memref<256x8xf32, #tpu.memory_space<vmem>>, vector<256x8xf32>
    %c0_1 = arith.constant 0 : index
    %c0_2 = arith.constant 0 : index
    %1 = vector.load %arg2[%c0_1, %c0_2] : memref<8x64xf32, #tpu.memory_space<vmem>>, vector<8x64xf32>
    %cst = arith.constant dense<0.000000e+00> : vector<256x64xf32>
    %2 = tpu.matmul %0, %1, %cst {dimension_numbers = #tpu.dot_dimension_numbers<[1], [0], [0], [1], [0, 0, 1, 1], [], []>} : vector<256x8xf32>, vector<8x64xf32>, vector<256x64xf32> -> vector<256x64xf32>
    %c0_3 = arith.constant 0 : index
    %c0_4 = arith.constant 0 : index
    %3 = vector.load %arg3[%c0_3, %c0_4] : memref<256x1xf32, #tpu.memory_space<vmem>>, vector<256x1xf32>
    %4 = vector.broadcast %3 : vector<256x1xf32> to vector<256x64xf32>
    %5 = arith.mulf %2, %4 : vector<256x64xf32>
    %c0_5 = arith.constant 0 : index
    %c0_6 = arith.constant 0 : index
    %6 = vector.load %arg4[%c0_5, %c0_6] : memref<64x32xf32, #tpu.memory_space<vmem>>, vector<64x32xf32>
    %cst_7 = arith.constant dense<0.000000e+00> : vector<256x32xf32>
    %7 = tpu.matmul %5, %6, %cst_7 {dimension_numbers = #tpu.dot_dimension_numbers<[1], [0], [0], [1], [0, 0, 1, 1], [], []>} : vector<256x64xf32>, vector<64x32xf32>, vector<256x32xf32> -> vector<256x32xf32>
    %c0_8 = arith.constant 0 : index
    %c0_9 = arith.constant 0 : index
    %8 = vector.load %arg5[%c0_8, %c0_9] : memref<1x32xf32, #tpu.memory_space<vmem>>, vector<1x32xf32>
    %9 = vector.broadcast %8 : vector<1x32xf32> to vector<256x32xf32>
    %10 = arith.addf %7, %9 : vector<256x32xf32>
    %cst_10 = arith.constant 0.000000e+00 : f32
    %11 = vector.broadcast %cst_10 : f32 to vector<256x32xf32>
    %12 = arith.maximumf %10, %11 : vector<256x32xf32>
    %c0_11 = arith.constant 0 : index
    %c0_12 = arith.constant 0 : index
    %13 = vector.load %arg6[%c0_11, %c0_12] : memref<256x1xf32, #tpu.memory_space<vmem>>, vector<256x1xf32>
    %cst_13 = arith.constant 0.000000e+00 : f32
    %14 = vector.broadcast %cst_13 : f32 to vector<256x1xf32>
    %15 = arith.cmpf ogt, %13, %14 : vector<256x1xf32>
    %cst_14 = arith.constant -1.000000e+30 : f32
    %16 = vector.shape_cast %15 : vector<256x1xi1> to vector<256x1xi1>
    %17 = vector.broadcast %16 : vector<256x1xi1> to vector<256x32xi1>
    %18 = vector.broadcast %cst_14 : f32 to vector<256x32xf32>
    %19 = arith.select %17, %12, %18 : vector<256x32xi1>, vector<256x32xf32>
    %cst_15 = arith.constant dense<0xFF800000> : vector<32xf32>
    %20 = vector.multi_reduction <maximumf>, %19, %cst_15 [0] : vector<256x32xf32> to vector<32xf32>
    %21 = vector.shape_cast %20 : vector<32xf32> to vector<1x32xf32>
    %c0_16 = arith.constant 0 : index
    %c0_17 = arith.constant 0 : index
    %c0_18 = arith.constant 0 : index
    %22 = vector.load %arg7[%c0_16, %c0_17, %c0_18] : memref<1x1x32xf32, #tpu.memory_space<vmem>>, vector<1x1x32xf32>
    %23 = vector.shape_cast %22 : vector<1x1x32xf32> to vector<1x32xf32>
    %24 = vector.shape_cast %21 : vector<1x32xf32> to vector<1x1x32xf32>
    tpu.vector_store %arg7[%c0_16, %c0_17, %c0_18], %24 {strides = array<i32>} : memref<1x1x32xf32, #tpu.memory_space<vmem>>, vector<1x1x32xf32>,
    return
  }
  func.func @transform_0(%arg0: i32) -> (i32, i32) {
    %c0_i32 = arith.constant 0 : i32
    %c0_i32_0 = arith.constant 0 : i32
    return %arg0, %c0_i32 : i32, i32
  }
  func.func @transform_1(%arg0: i32) -> (i32, i32) {
    %c0_i32 = arith.constant 0 : i32
    %c0_i32_0 = arith.constant 0 : i32
    %c0_i32_1 = arith.constant 0 : i32
    return %c0_i32, %c0_i32_0 : i32, i32
  }
  func.func @transform_2(%arg0: i32) -> (i32, i32) {
    %c0_i32 = arith.constant 0 : i32
    %c0_i32_0 = arith.constant 0 : i32
    return %arg0, %c0_i32 : i32, i32
  }
  func.func @transform_3(%arg0: i32) -> (i32, i32) {
    %c0_i32 = arith.constant 0 : i32
    %c0_i32_0 = arith.constant 0 : i32
    %c0_i32_1 = arith.constant 0 : i32
    return %c0_i32, %c0_i32_0 : i32, i32
  }
  func.func @transform_4(%arg0: i32) -> (i32, i32) {
    %c0_i32 = arith.constant 0 : i32
    %c0_i32_0 = arith.constant 0 : i32
    %c0_i32_1 = arith.constant 0 : i32
    return %c0_i32, %c0_i32_0 : i32, i32
  }
  func.func @transform_5(%arg0: i32) -> (i32, i32) {
    %c0_i32 = arith.constant 0 : i32
    %c0_i32_0 = arith.constant 0 : i32
    return %arg0, %c0_i32 : i32, i32
  }
  func.func @transform_6(%arg0: i32) -> (i32, i32, i32) {
    %c0_i32 = arith.constant 0 : i32
    %c0_i32_0 = arith.constant 0 : i32
    %c0_i32_1 = arith.constant 0 : i32
    return %arg0, %c0_i32, %c0_i32_0 : i32, i32, i32
  }
}

module attributes {stable_mosaic.version = 11 : i64} {
  func.func @_readout_kernel(%arg0: memref<1x32xf32, #tpu.memory_space<vmem>>, %arg1: memref<32x1xf32, #tpu.memory_space<vmem>>, %arg2: memref<1x1xf32, #tpu.memory_space<vmem>>, %arg3: memref<1x1xf32, #tpu.memory_space<vmem>>) attributes {dimension_semantics = [], scalar_prefetch = 0 : i64, scratch_operands = 0 : i64, tpu.core_type = #tpu.core_type<tc>} {
    %c0 = arith.constant 0 : index
    %c0_0 = arith.constant 0 : index
    %0 = vector.load %arg0[%c0, %c0_0] : memref<1x32xf32, #tpu.memory_space<vmem>>, vector<1x32xf32>
    %cst = arith.constant dense<0xFF800000> : vector<32xf32>
    %1 = vector.multi_reduction <maximumf>, %0, %cst [0] : vector<1x32xf32> to vector<32xf32>
    %2 = vector.shape_cast %1 : vector<32xf32> to vector<1x32xf32>
    %c0_1 = arith.constant 0 : index
    %c0_2 = arith.constant 0 : index
    %3 = vector.load %arg1[%c0_1, %c0_2] : memref<32x1xf32, #tpu.memory_space<vmem>>, vector<32x1xf32>
    %cst_3 = arith.constant dense<0.000000e+00> : vector<1x1xf32>
    %4 = tpu.matmul %2, %3, %cst_3 {dimension_numbers = #tpu.dot_dimension_numbers<[1], [0], [0], [1], [0, 0, 1, 1], [], []>} : vector<1x32xf32>, vector<32x1xf32>, vector<1x1xf32> -> vector<1x1xf32>
    %c0_4 = arith.constant 0 : index
    %c0_5 = arith.constant 0 : index
    %5 = vector.load %arg2[%c0_4, %c0_5] : memref<1x1xf32, #tpu.memory_space<vmem>>, vector<1x1xf32>
    %6 = arith.addf %4, %5 : vector<1x1xf32>
    %cst_6 = arith.constant 0.000000e+00 : f32
    %7 = vector.broadcast %cst_6 : f32 to vector<1x1xf32>
    %8 = arith.subf %7, %6 : vector<1x1xf32>
    %9 = math.exp %8 : vector<1x1xf32>
    %cst_7 = arith.constant 1.000000e+00 : f32
    %10 = vector.broadcast %cst_7 : f32 to vector<1x1xf32>
    %11 = arith.addf %10, %9 : vector<1x1xf32>
    %cst_8 = arith.constant 1.000000e+00 : f32
    %12 = vector.broadcast %cst_8 : f32 to vector<1x1xf32>
    %13 = arith.divf %12, %11 : vector<1x1xf32>
    %c0_9 = arith.constant 0 : index
    %c0_10 = arith.constant 0 : index
    %14 = vector.load %arg3[%c0_9, %c0_10] : memref<1x1xf32, #tpu.memory_space<vmem>>, vector<1x1xf32>
    tpu.vector_store %arg3[%c0_9, %c0_10], %13 {strides = array<i32>} : memref<1x1xf32, #tpu.memory_space<vmem>>, vector<1x1xf32>,
    return
  }
}

</mosaic_0001>

<bundles_post_ra>
// kernel: graphsage_hgnnplus_forward.6
= control target key start
LH: loop header
LB: loop body
LE: loop exit
PB: predicated region body
PF: predicated region fallthrough
CT: control target
= control target key end

     0   :  { %vm53_vm0 = vcmask 64512   ;;  %v847_v2 = vmov 0   ;;  %vm495_vm1 = vcmask 261120   ;;  %s1359_s1 = inlined_call_operand.vmem [shape: f32[8,32], index: 1, kind: input, shape index: {}]   ;;  %s1360_s0 = inlined_call_operand.vmem [shape: f32[256,8], index: 0, kind: input, shape index: {}]   ;;  %s1361_s2 = inlined_call_operand.vmem [shape: f32[256,1], index: 2, kind: input, shape index: {}]   ;;  %s1362_s3 = inlined_call_operand.vmem [shape: f32[32,32], index: 3, kind: input, shape index: {}]   ;;  %s1363_s4 = inlined_call_operand.vmem [shape: f32[1,32], index: 4, kind: input, shape index: {}]   ;;  %s1364_s5 = inlined_call_operand.vmem [shape: f32[256,32], index: 5, kind: output, shape index: {}]  }
   0x1   :  { %v52_v0 = vld [vmem:[%s1359_s1] sm:$0xff]  ;;  %843 = vset.pattern.permute.xlu0 %v847_v2  ;;  %844 = vset.pattern.permute.xlu1 %v847_v2  ;;  %v37_v4 = vld [vmem:[%s1360_s0 + $0x88] sm:$0xff]  ;;  %v38_v8 = vld [vmem:[%s1360_s0 + $0x90] sm:$0xff] }
   0x2   :  { %v20_v1 = vld [vmem:[%s1360_s0] sm:$0xff]  ;;  %165 = vmatpush.msra.mxu0 %v52_v0  ;;  %v280_v5 = vld [vmem:[%s1361_s2 + $0x88] sm:$0xff]  ;;  %837 = vmatpush.msra.mxu3 %v52_v0  ;;  %v281_v10 = vld [vmem:[%s1361_s2 + $0x90] sm:$0xff] }
   0x3   :  { %v279_v3 = vld [vmem:[%s1361_s2 + $0x80] sm:$0xff]  ;;  %773 = vmatmul.msk.f32.vlgmr.msra.gmra.mxu0 %vm53_vm0, %v20_v1  ;;  %790 = vmatmul.msk.f32.vlgmr.msra.gmra.mxu3 %vm53_vm0, %v37_v4  ;;  %v21_v7 = vld [vmem:[%s1360_s0 + $0x8] sm:$0xff]  ;;  %v282_v11 = vld [vmem:[%s1361_s2 + $0x98] sm:$0xff] }
   0x4   :  { %377 = vperm.xlu0 %843, %v279_v3   ;;  %382 = vperm.xlu1 %844, %v280_v5   ;;  %v263_v6 = vld [vmem:[%s1361_s2] sm:$0xff]  ;;  %v264_v9 = vld [vmem:[%s1361_s2 + $0x8] sm:$0xff]  ;;  %v22_v12 = vld [vmem:[%s1360_s0 + $0x10] sm:$0xff] }
   0x5   :  { %845 = vset.pattern.permute.xlu2 %v847_v2  ;;  %v39_v13 = vld [vmem:[%s1360_s0 + $0x98] sm:$0xff]  ;;  %v265_v15 = vld [vmem:[%s1361_s2 + $0x10] sm:$0xff]  ;;  %v267_v16 = vld [vmem:[%s1361_s2 + $0x20] sm:$0xff] }
   0x6   :  { %387 = vperm.xlu2 %845, %v281_v10   ;;  %v266_v14 = vld [vmem:[%s1361_s2 + $0x18] sm:$0xff]  ;;  %v40_v18 = vld [vmem:[%s1360_s0 + $0xa0] sm:$0xff]  ;;  %v284_v19 = vld [vmem:[%s1361_s2 + $0xa8] sm:$0xff] }
   0x7   :  { %v23_v17 = vld [vmem:[%s1360_s0 + $0x18] sm:$0xff]  ;;  %v285_v20 = vld [vmem:[%s1361_s2 + $0xb0] sm:$0xff]  ;;  %v24_v21 = vld [vmem:[%s1360_s0 + $0x20] sm:$0xff] }
   0x8   :  { %v41_v22 = vld [vmem:[%s1360_s0 + $0xa8] sm:$0xff]  ;;  %v269_v23 = vld [vmem:[%s1361_s2 + $0x30] sm:$0xff]  ;;  %v283_v24 = vld [vmem:[%s1361_s2 + $0xa0] sm:$0xff] }
   0x9   :  { %v270_v25 = vld [vmem:[%s1361_s2 + $0x38] sm:$0xff]  ;;  %v25_v26 = vld [vmem:[%s1360_s0 + $0x28] sm:$0xff]  ;;  %v42_v27 = vld [vmem:[%s1360_s0 + $0xb0] sm:$0xff] }
   0xa   :  { %v268_v28 = vld [vmem:[%s1361_s2 + $0x28] sm:$0xff]  ;;  %v287_v29 = vld [vmem:[%s1361_s2 + $0xc0] sm:$0xff]  ;;  %v26_v30 = vld [vmem:[%s1360_s0 + $0x30] sm:$0xff] }
   0xb   :  { %774 = vmatmul.msk.f32.gmra.mxu0 %vm53_vm0, %v21_v7  ;;  %791 = vmatmul.msk.f32.gmra.mxu3 %vm53_vm0, %v38_v8  ;;  %v43_v31 = vld [vmem:[%s1360_s0 + $0xb8] sm:$0xff]  ;;  %v272_v32 = vld [vmem:[%s1361_s2 + $0x48] sm:$0xff]  ;;  %v44_v35 = vld [vmem:[%s1360_s0 + $0xc0] sm:$0xff] }
   0xc   :  { %297 = vperm.xlu0 %843, %v263_v6   ;;  %302 = vperm.xlu1 %844, %v264_v9   ;;  %v288_v33 = vld [vmem:[%s1361_s2 + $0xc8] sm:$0xff]  ;;  %v27_v34 = vld [vmem:[%s1360_s0 + $0x38] sm:$0xff]  ;;  %v273_v37 = vld [vmem:[%s1361_s2 + $0x50] sm:$0xff] }
   0xd   :  { %v286_v36 = vld [vmem:[%s1361_s2 + $0xb8] sm:$0xff]  ;;  %v28_v38 = vld [vmem:[%s1360_s0 + $0x40] sm:$0xff]  ;;  %v45_v39 = vld [vmem:[%s1360_s0 + $0xc8] sm:$0xff] }
   0xe   :  { %307 = vperm.xlu2 %845, %v265_v15   ;;  %v271_v40 = vld [vmem:[%s1361_s2 + $0x40] sm:$0xff]  ;;  %v290_v41 = vld [vmem:[%s1361_s2 + $0xd8] sm:$0xff]  ;;  %v29_v42 = vld [vmem:[%s1360_s0 + $0x48] sm:$0xff] }
   0xf   :  { %v46_v43 = vld [vmem:[%s1360_s0 + $0xd0] sm:$0xff]  ;;  %v275_v44 = vld [vmem:[%s1361_s2 + $0x60] sm:$0xff]  ;;  %v47_v47 = vld [vmem:[%s1360_s0 + $0xd8] sm:$0xff] }
  0x10   :  { %v291_v45 = vld [vmem:[%s1361_s2 + $0xe0] sm:$0xff]  ;;  %v30_v46 = vld [vmem:[%s1360_s0 + $0x50] sm:$0xff]  ;;  %v276_v49 = vld [vmem:[%s1361_s2 + $0x68] sm:$0xff] }
  0x11   :  { %v289_v48 = vld [vmem:[%s1361_s2 + $0xd0] sm:$0xff]  ;;  %v31_v50 = vld [vmem:[%s1360_s0 + $0x58] sm:$0xff]  ;;  %v48_v51 = vld [vmem:[%s1360_s0 + $0xe0] sm:$0xff] }
  0x12   :  { %v490_v52 = vld [vmem:[%s1362_s3 + $0x18] sm:$0xff]  ;;  %v489_v53 = vld [vmem:[%s1362_s3 + $0x10] sm:$0xff]  ;;  %v488_v56 = vld [vmem:[%s1362_s3 + $0x8] sm:$0xff] }
  0x13   :  { %775 = vmatmul.msk.f32.gmra.mxu0 %vm53_vm0, %v22_v12  ;;  %792 = vmatmul.msk.f32.gmra.mxu3 %vm53_vm0, %v39_v13  ;;  %v274_v54 = vld [vmem:[%s1361_s2 + $0x58] sm:$0xff]  ;;  %v293_v55 = vld [vmem:[%s1361_s2 + $0xf0] sm:$0xff]  ;;  %v32_v57 = vld [vmem:[%s1360_s0 + $0x60] sm:$0xff] }
  0x14   :  { %392 = vperm.xlu0 %843, %v282_v11   ;;  %312 = vperm.xlu1 %844, %v266_v14   ;;  %v49_v58 = vld [vmem:[%s1360_s0 + $0xe8] sm:$0xff]  ;;  %v487_v59 = vld [vmem:[%s1362_s3] sm:$0xff]  ;;  %v278_v60 = vld [vmem:[%s1361_s2 + $0x78] sm:$0xff] }
  0x15   :  { %604 = vmatpush.msra.mxu1 %v490_v52  ;;  %838 = vmatpush.msra.mxu2 %v490_v52  ;;  %v33_v61 = vld [vmem:[%s1360_s0 + $0x68] sm:$0xff]  ;;  %v50_v62 = vld [vmem:[%s1360_s0 + $0xf0] sm:$0xff]  ;;  %v294_v63 = vld [vmem:[%s1361_s2 + $0xf8] sm:$0xff] }
  0x16   :  { %397 = vperm.xlu2 %845, %v283_v24   ;;  %v292_v0 = vld [vmem:[%s1361_s2 + $0xe8] sm:$0xff]  ;;  %v34_v1 = vld [vmem:[%s1360_s0 + $0x70] sm:$0xff]  ;;  %v51_v2 = vld [vmem:[%s1360_s0 + $0xf8] sm:$0xff] }
  0x17   :  { %605 = vmatpush.msra.mxu1 %v489_v53  ;;  %839 = vmatpush.msra.mxu2 %v489_v53  ;;  %v277_v3 = vld [vmem:[%s1361_s2 + $0x70] sm:$0xff]  ;;  %v35_v5 = vld [vmem:[%s1360_s0 + $0x78] sm:$0xff]  ;;  %v36_v9 = vld [vmem:[%s1360_s0 + $0x80] sm:$0xff] }
  0x19   :  { %606 = vmatpush.msra.mxu1 %v488_v56  ;;  %840 = vmatpush.msra.mxu2 %v488_v56 }
  0x1b   :  { %776 = vmatmul.msk.f32.gmra.mxu0 %vm53_vm0, %v23_v17  ;;  %793 = vmatmul.msk.f32.gmra.mxu3 %vm53_vm0, %v40_v18 }
  0x1c   :  { %317 = vperm.xlu0 %843, %v267_v16   ;;  %402 = vperm.xlu1 %844, %v284_v19  }
  0x1d   :  { %607 = vmatpush.msra.mxu1 %v487_v59  ;;  %841 = vmatpush.msra.mxu2 %v487_v59 }
  0x1e   :  { %322 = vperm.xlu2 %845, %v268_v28  }
  0x23   :  { %777 = vmatmul.msk.f32.gmra.mxu0 %vm53_vm0, %v24_v21  ;;  %794 = vmatmul.msk.f32.gmra.mxu3 %vm53_vm0, %v41_v22 }
  0x24   :  { %407 = vperm.xlu0 %843, %v285_v20   ;;  %327 = vperm.xlu1 %844, %v269_v23  }
  0x26   :  { %412 = vperm.xlu2 %845, %v286_v36  }
  0x2b   :  { %778 = vmatmul.msk.f32.gmra.mxu0 %vm53_vm0, %v25_v26  ;;  %795 = vmatmul.msk.f32.gmra.mxu3 %vm53_vm0, %v42_v27 }
  0x2c   :  { %332 = vperm.xlu0 %843, %v270_v25   ;;  %417 = vperm.xlu1 %844, %v287_v29  }
  0x2e   :  { %337 = vperm.xlu2 %845, %v271_v40  }
  0x33   :  { %779 = vmatmul.msk.f32.gmra.mxu0 %vm53_vm0, %v26_v30  ;;  %796 = vmatmul.msk.f32.gmra.mxu3 %vm53_vm0, %v43_v31 }
  0x34   :  { %342 = vperm.xlu1 %844, %v272_v32   ;;  %422 = vperm.xlu0 %843, %v288_v33  }
  0x36   :  { %427 = vperm.xlu2 %845, %v289_v48  }
  0x3b   :  { %780 = vmatmul.msk.f32.gmra.mxu0 %vm53_vm0, %v27_v34  ;;  %797 = vmatmul.msk.f32.gmra.mxu3 %vm53_vm0, %v44_v35 }
  0x3c   :  { %347 = vperm.xlu0 %843, %v273_v37   ;;  %432 = vperm.xlu1 %844, %v290_v41  }
  0x3e   :  { %352 = vperm.xlu2 %845, %v274_v54  }
  0x43   :  { %781 = vmatmul.msk.f32.gmra.mxu0 %vm53_vm0, %v28_v38  ;;  %798 = vmatmul.msk.f32.gmra.mxu3 %vm53_vm0, %v45_v39 }
  0x44   :  { %437 = vperm.xlu0 %843, %v291_v45   ;;  %357 = vperm.xlu1 %844, %v275_v44  }
  0x46   :  { %442 = vperm.xlu2 %845, %v292_v0  }
  0x4b   :  { %782 = vmatmul.msk.f32.gmra.mxu0 %vm53_vm0, %v29_v42  ;;  %799 = vmatmul.msk.f32.gmra.mxu3 %vm53_vm0, %v46_v43 }
  0x4c   :  { %362 = vperm.xlu0 %843, %v276_v49   ;;  %447 = vperm.xlu1 %844, %v293_v55  }
  0x4e   :  { %367 = vperm.xlu2 %845, %v277_v3  }
  0x53   :  { %783 = vmatmul.msk.f32.gmra.mxu0 %vm53_vm0, %v30_v46  ;;  %800 = vmatmul.msk.f32.gmra.mxu3 %vm53_vm0, %v47_v47 }
  0x54   :  { %372 = vperm.xlu1 %844, %v278_v60   ;;  %452 = vperm.xlu0 %843, %v294_v63  }
  0x5b   :  { %784 = vmatmul.msk.f32.gmra.mxu0 %vm53_vm0, %v31_v50  ;;  %801 = vmatmul.msk.f32.gmra.mxu3 %vm53_vm0, %v48_v51 }
  0x60   :  { %v1122_v11 = vpop.permute.xlu2 %387 }
  0x63   :  { %785 = vmatmul.msk.f32.gmra.mxu0 %vm53_vm0, %v32_v57  ;;  %802 = vmatmul.msk.f32.gmra.mxu3 %vm53_vm0, %v49_v58 }
  0x68   :  { %v308_v15 = vpop.permute.xlu2 %307 }
  0x6b   :  { %786 = vmatmul.msk.f32.gmra.mxu0 %vm53_vm0, %v33_v61  ;;  %803 = vmatmul.msk.f32.gmra.mxu3 %vm53_vm0, %v50_v62 }
  0x70   :  { %v1129_v22 = vpop.permute.xlu2 %397 }
  0x73   :  { %787 = vmatmul.msk.f32.gmra.mxu0 %vm53_vm0, %v34_v1  ;;  %804 = vmatmul.msk.f32.gmra.mxu3 %vm53_vm0, %v51_v2 }
  0x76   :  { %v1108_v4 = vpop.permute.xlu0 %377  ;;  %v1115_v6 = vpop.permute.xlu1 %382 }
  0x78   :  { %v323_v27 = vpop.permute.xlu2 %322 }
  0x7b   :  { %788 = vmatmul.msk.f32.gmra.mxu0 %vm53_vm0, %v35_v5 }
  0x7e   :  { %v298_v7 = vpop.permute.xlu0 %297  ;;  %v303_v12 = vpop.permute.xlu1 %302 }
  0x80   :  { %v167_v8 = vpop.f32.mrf.mxu0  ;;  %v1138_v34 = vpop.permute.xlu2 %412 }
  0x81   :  { %v455_v10 = vmul.f32 %v298_v7, %v167_v8 }
  0x83   :  { %789 = vmatmul.msk.f32.gmra.mxu0 %vm53_vm0, %v36_v9  ;;  %805 = vmatmul.msk.f32.vlgmr.msra.gmra.mxu1 %vm495_vm1, %v455_v10  ;;  %v1166_v9 = vld [vmem:[%s1363_s4] ss:$0 sm:$0xff] }
  0x86   :  { %v1126_v18 = vpop.permute.xlu0 %392  ;;  %v313_v19 = vpop.permute.xlu1 %312 }
  0x87   :  { %v218_v62 = vpop.f32.mrf.mxu3 }
  0x88   :  { %v170_v13 = vpop.f32.mrf.mxu0  ;;  %v338_v39 = vpop.permute.xlu2 %337 }
  0x89   :  { %v456_v14 = vmul.f32 %v303_v12, %v170_v13 }
  0x8b   :  { %806 = vmatmul.msk.f32.gmra.mxu1 %vm495_vm1, %v456_v14 }
  0x8e   :  { %v318_v23 = vpop.permute.xlu0 %317  ;;  %v1132_v26 = vpop.permute.xlu1 %402 }
  0x8f   :  { %v221_v3 = vpop.f32.mrf.mxu3 }
  0x90   :  { %v173_v16 = vpop.f32.mrf.mxu0  ;;  %v1147_v46 = vpop.permute.xlu2 %427 }
  0x91   :  { %v457_v17 = vmul.f32 %v308_v15, %v173_v16 }
  0x93   :  { %807 = vmatmul.msk.f32.gmra.mxu1 %vm495_vm1, %v457_v17 }
  0x96   :  { %v1135_v30 = vpop.permute.xlu0 %407  ;;  %v328_v31 = vpop.permute.xlu1 %327 }
  0x97   :  { %v224_v10 = vpop.f32.mrf.mxu3 }
  0x98   :  { %v176_v20 = vpop.f32.mrf.mxu0  ;;  %v353_v51 = vpop.permute.xlu2 %352 }
  0x99   :  { %v458_v21 = vmul.f32 %v313_v19, %v176_v20  ;;  %v472_v20 = vmul.f32 %v1115_v6, %v218_v62 }
  0x9b   :  { %808 = vmatmul.msk.f32.gmra.mxu1 %vm495_vm1, %v458_v21 }
  0x9e   :  { %v333_v35 = vpop.permute.xlu0 %332  ;;  %v1141_v38 = vpop.permute.xlu1 %417 }
  0x9f   :  { %v227_v17 = vpop.f32.mrf.mxu3 }
  0xa0   :  { %v179_v24 = vpop.f32.mrf.mxu0  ;;  %v1156_v58 = vpop.permute.xlu2 %442 }
  0xa1   :  { %v459_v25 = vmul.f32 %v318_v23, %v179_v24  ;;  %v473_v24 = vmul.f32 %v1122_v11, %v221_v3 }
  0xa3   :  { %809 = vmatmul.msk.f32.gmra.mxu1 %vm495_vm1, %v459_v25 }
  0xa6   :  { %v1144_v42 = vpop.permute.xlu0 %422  ;;  %v343_v43 = vpop.permute.xlu1 %342 }
  0xa8   :  { %v182_v28 = vpop.f32.mrf.mxu0  ;;  %v368_v0 = vpop.permute.xlu2 %367 }
  0xa9   :  { %v460_v29 = vmul.f32 %v323_v27, %v182_v28  ;;  %v230_v27 = vpop.f32.mrf.mxu3 }
  0xab   :  { %810 = vmatmul.msk.f32.gmra.mxu1 %vm495_vm1, %v460_v29  ;;  %v474_v29 = vmul.f32 %v1126_v18, %v224_v10 }
  0xae   :  { %v348_v47 = vpop.permute.xlu0 %347  ;;  %v1150_v50 = vpop.permute.xlu1 %432 }
  0xb0   :  { %v185_v32 = vpop.f32.mrf.mxu0 }
  0xb1   :  { %v461_v33 = vmul.f32 %v328_v31, %v185_v32  ;;  %v233_v11 = vpop.f32.mrf.mxu3 }
  0xb3   :  { %811 = vmatmul.msk.f32.gmra.mxu1 %vm495_vm1, %v461_v33 }
  0xb6   :  { %v1153_v54 = vpop.permute.xlu0 %437  ;;  %v358_v55 = vpop.permute.xlu1 %357 }
  0xb8   :  { %v188_v36 = vpop.f32.mrf.mxu0 }
  0xb9   :  { %v462_v37 = vmul.f32 %v333_v35, %v188_v36  ;;  %v475_v35 = vmul.f32 %v1129_v22, %v227_v17  ;;  %v236_v18 = vpop.f32.mrf.mxu3 }
  0xbb   :  { %812 = vmatmul.msk.f32.gmra.mxu1 %vm495_vm1, %v462_v37 }
  0xbe   :  { %v363_v59 = vpop.permute.xlu0 %362  ;;  %v1159_v63 = vpop.permute.xlu1 %447 }
  0xc0   :  { %v191_v40 = vpop.f32.mrf.mxu0 }
  0xc1   :  { %v463_v41 = vmul.f32 %v338_v39, %v191_v40  ;;  %v476_v40 = vmul.f32 %v1132_v26, %v230_v27  ;;  %v239_v22 = vpop.f32.mrf.mxu3 }
  0xc3   :  { %813 = vmatmul.msk.f32.gmra.mxu1 %vm495_vm1, %v463_v41 }
  0xc6   :  { %v373_v5 = vpop.permute.xlu1 %372 }
  0xc8   :  { %v194_v44 = vpop.f32.mrf.mxu0 }
  0xc9   :  { %v464_v45 = vmul.f32 %v343_v43, %v194_v44 }
  0xcb   :  { %814 = vmatmul.msk.f32.gmra.mxu1 %vm495_vm1, %v464_v45  ;;  %v477_v45 = vmul.f32 %v1135_v30, %v233_v11 }
  0xd0   :  { %v197_v48 = vpop.f32.mrf.mxu0 }
  0xd1   :  { %v465_v49 = vmul.f32 %v348_v47, %v197_v48 }
  0xd3   :  { %815 = vmatmul.msk.f32.gmra.mxu1 %vm495_vm1, %v465_v49  ;;  %v478_v49 = vmul.f32 %v1138_v34, %v236_v18 }
  0xd8   :  { %v200_v52 = vpop.f32.mrf.mxu0 }
  0xd9   :  { %v466_v53 = vmul.f32 %v353_v51, %v200_v52  ;;  %v242_v52 = vpop.f32.mrf.mxu3 }
  0xdb   :  { %816 = vmatmul.msk.f32.gmra.mxu1 %vm495_vm1, %v466_v53 }
  0xe0   :  { %v203_v56 = vpop.f32.mrf.mxu0 }
  0xe1   :  { %v467_v57 = vmul.f32 %v358_v55, %v203_v56  ;;  %v479_v55 = vmul.f32 %v1141_v38, %v239_v22  ;;  %v245_v34 = vpop.f32.mrf.mxu3 }
  0xe3   :  { %817 = vmatmul.msk.f32.gmra.mxu1 %vm495_vm1, %v467_v57 }
  0xe8   :  { %v206_v60 = vpop.f32.mrf.mxu0 }
  0xe9   :  { %v468_v61 = vmul.f32 %v363_v59, %v206_v60  ;;  %v480_v60 = vmul.f32 %v1144_v42, %v242_v52  ;;  %v248_v38 = vpop.f32.mrf.mxu3 }
  0xeb   :  { %818 = vmatmul.msk.f32.gmra.mxu1 %vm495_vm1, %v468_v61 }
  0xf0   :  { %v209_v1 = vpop.f32.mrf.mxu0 }
  0xf1   :  { %v469_v2 = vmul.f32 %v368_v0, %v209_v1  ;;  %v481_v1 = vmul.f32 %v1147_v46, %v245_v34  ;;  %v251_v42 = vpop.f32.mrf.mxu3 }
  0xf3   :  { %819 = vmatmul.msk.f32.gmra.mxu1 %vm495_vm1, %v469_v2 }
  0xf8   :  { %v212_v7 = vpop.f32.mrf.mxu0 }
  0xf9   :  { %v470_v8 = vmul.f32 %v373_v5, %v212_v7  ;;  %v482_v7 = vmul.f32 %v1150_v50, %v248_v38 }
  0xfb   :  { %820 = vmatmul.msk.f32.gmra.mxu1 %vm495_vm1, %v470_v8 }
 0x100   :  { %v215_v12 = vpop.f32.mrf.mxu0  ;;  %v609_v13 = vpop.f32.mrf.mxu1 }
 0x101   :  { %v471_v14 = vmul.f32 %v1108_v4, %v215_v12  ;;  %v610_v15 = vadd.f32 %v1166_v9, %v609_v13  ;;  %v483_v12 = vmul.f32 %v1153_v54, %v251_v42 }
 0x103   :  { %v705_v16 = vmax.f32 %v610_v15, 0.0  ;;  %821 = vmatmul.msk.f32.vlgmr.msra.gmra.mxu2 %vm495_vm1, %v471_v14  ;;  %v254_v14 = vpop.f32.mrf.mxu3 }
 0x105   :  { %737 = vst.msk [vmem:[%s1364_s5] sm:$0xff] %vm495_vm1, %v705_v16  ;;  %v484_v16 = vmul.f32 %v1156_v58, %v254_v14  ;;  %v453_v58 = vpop.permute.xlu0 %452 }
 0x108   :  { %v612_v19 = vpop.f32.mrf.mxu1 }
 0x109   :  { %v613_v21 = vadd.f32 %v1166_v9, %v612_v19 }
 0x10b   :  { %v706_v23 = vmax.f32 %v613_v21, 0.0  ;;  %822 = vmatmul.msk.f32.gmra.mxu2 %vm495_vm1, %v472_v20  ;;  %v257_v54 = vpop.f32.mrf.mxu3 }
 0x10c   :  { %v485_v21 = vmul.f32 %v1159_v63, %v257_v54 }
 0x10d   :  { %738 = vst.msk [vmem:[%s1364_s5 + $0x8] sm:$0xff] %vm495_vm1, %v706_v23 }
 0x110   :  { %v615_v4 = vpop.f32.mrf.mxu1 }
 0x111   :  { %v616_v25 = vadd.f32 %v1166_v9, %v615_v4 }
 0x113   :  { %v707_v28 = vmax.f32 %v616_v25, 0.0  ;;  %823 = vmatmul.msk.f32.gmra.mxu2 %vm495_vm1, %v473_v24  ;;  %v260_v24 = vpop.f32.mrf.mxu3 }
 0x114   :  { %v486_v27 = vmul.f32 %v453_v58, %v260_v24 }
 0x115   :  { %739 = vst.msk [vmem:[%s1364_s5 + $0x10] sm:$0xff] %vm495_vm1, %v707_v28 }
 0x118   :  { %v618_v6 = vpop.f32.mrf.mxu1 }
 0x119   :  { %v619_v31 = vadd.f32 %v1166_v9, %v618_v6 }
 0x11b   :  { %v708_v32 = vmax.f32 %v619_v31, 0.0  ;;  %824 = vmatmul.msk.f32.gmra.mxu2 %vm495_vm1, %v474_v29 }
 0x11d   :  { %740 = vst.msk [vmem:[%s1364_s5 + $0x18] sm:$0xff] %vm495_vm1, %v708_v32 }
 0x120   :  { %v621_v33 = vpop.f32.mrf.mxu1 }
 0x121   :  { %v622_v36 = vadd.f32 %v1166_v9, %v621_v33 }
 0x123   :  { %v709_v37 = vmax.f32 %v622_v36, 0.0  ;;  %825 = vmatmul.msk.f32.gmra.mxu2 %vm495_vm1, %v475_v35 }
 0x125   :  { %741 = vst.msk [vmem:[%s1364_s5 + $0x20] sm:$0xff] %vm495_vm1, %v709_v37 }
 0x128   :  { %v624_v39 = vpop.f32.mrf.mxu1 }
 0x129   :  { %v625_v41 = vadd.f32 %v1166_v9, %v624_v39 }
 0x12b   :  { %v710_v43 = vmax.f32 %v625_v41, 0.0  ;;  %826 = vmatmul.msk.f32.gmra.mxu2 %vm495_vm1, %v476_v40 }
 0x12d   :  { %742 = vst.msk [vmem:[%s1364_s5 + $0x28] sm:$0xff] %vm495_vm1, %v710_v43 }
 0x130   :  { %v627_v44 = vpop.f32.mrf.mxu1 }
 0x131   :  { %v628_v47 = vadd.f32 %v1166_v9, %v627_v44 }
 0x133   :  { %v711_v48 = vmax.f32 %v628_v47, 0.0  ;;  %827 = vmatmul.msk.f32.gmra.mxu2 %vm495_vm1, %v477_v45 }
 0x135   :  { %743 = vst.msk [vmem:[%s1364_s5 + $0x30] sm:$0xff] %vm495_vm1, %v711_v48 }
 0x138   :  { %v630_v26 = vpop.f32.mrf.mxu1 }
 0x139   :  { %v631_v51 = vadd.f32 %v1166_v9, %v630_v26 }
 0x13b   :  { %v712_v53 = vmax.f32 %v631_v51, 0.0  ;;  %828 = vmatmul.msk.f32.gmra.mxu2 %vm495_vm1, %v478_v49 }
 0x13d   :  { %744 = vst.msk [vmem:[%s1364_s5 + $0x38] sm:$0xff] %vm495_vm1, %v712_v53 }
 0x140   :  { %v633_v30 = vpop.f32.mrf.mxu1 }
 0x141   :  { %v634_v56 = vadd.f32 %v1166_v9, %v633_v30 }
 0x143   :  { %v713_v57 = vmax.f32 %v634_v56, 0.0  ;;  %829 = vmatmul.msk.f32.gmra.mxu2 %vm495_vm1, %v479_v55 }
 0x145   :  { %745 = vst.msk [vmem:[%s1364_s5 + $0x40] sm:$0xff] %vm495_vm1, %v713_v57 }
 0x148   :  { %v636_v59 = vpop.f32.mrf.mxu1 }
 0x149   :  { %v637_v61 = vadd.f32 %v1166_v9, %v636_v59 }
 0x14b   :  { %v714_v62 = vmax.f32 %v637_v61, 0.0  ;;  %830 = vmatmul.msk.f32.gmra.mxu2 %vm495_vm1, %v480_v60 }
 0x14d   :  { %746 = vst.msk [vmem:[%s1364_s5 + $0x48] sm:$0xff] %vm495_vm1, %v714_v62 }
 0x150   :  { %v639_v0 = vpop.f32.mrf.mxu1 }
 0x151   :  { %v640_v2 = vadd.f32 %v1166_v9, %v639_v0 }
 0x153   :  { %v715_v3 = vmax.f32 %v640_v2, 0.0  ;;  %831 = vmatmul.msk.f32.gmra.mxu2 %vm495_vm1, %v481_v1 }
 0x155   :  { %747 = vst.msk [vmem:[%s1364_s5 + $0x50] sm:$0xff] %vm495_vm1, %v715_v3 }
 0x158   :  { %v642_v5 = vpop.f32.mrf.mxu1 }
 0x159   :  { %v643_v8 = vadd.f32 %v1166_v9, %v642_v5 }
 0x15b   :  { %v716_v10 = vmax.f32 %v643_v8, 0.0  ;;  %832 = vmatmul.msk.f32.gmra.mxu2 %vm495_vm1, %v482_v7 }
 0x15d   :  { %748 = vst.msk [vmem:[%s1364_s5 + $0x58] sm:$0xff] %vm495_vm1, %v716_v10 }
 0x160   :  { %v645_v46 = vpop.f32.mrf.mxu1 }
 0x161   :  { %v646_v13 = vadd.f32 %v1166_v9, %v645_v46 }
 0x163   :  { %v717_v15 = vmax.f32 %v646_v13, 0.0  ;;  %833 = vmatmul.msk.f32.gmra.mxu2 %vm495_vm1, %v483_v12 }
 0x165   :  { %749 = vst.msk [vmem:[%s1364_s5 + $0x60] sm:$0xff] %vm495_vm1, %v717_v15 }
 0x168   :  { %v648_v50 = vpop.f32.mrf.mxu1 }
 0x169   :  { %v649_v17 = vadd.f32 %v1166_v9, %v648_v50 }
 0x16b   :  { %v718_v19 = vmax.f32 %v649_v17, 0.0  ;;  %834 = vmatmul.msk.f32.gmra.mxu2 %vm495_vm1, %v484_v16 }
 0x16d   :  { %750 = vst.msk [vmem:[%s1364_s5 + $0x68] sm:$0xff] %vm495_vm1, %v718_v19 }
 0x170   :  { %v651_v20 = vpop.f32.mrf.mxu1 }
 0x171   :  { %v652_v23 = vadd.f32 %v1166_v9, %v651_v20 }
 0x173   :  { %v719_v4 = vmax.f32 %v652_v23, 0.0  ;;  %835 = vmatmul.msk.f32.gmra.mxu2 %vm495_vm1, %v485_v21 }
 0x175   :  { %751 = vst.msk [vmem:[%s1364_s5 + $0x70] sm:$0xff] %vm495_vm1, %v719_v4 }
 0x178   :  { %v654_v25 = vpop.f32.mrf.mxu1 }
 0x179   :  { %v655_v28 = vadd.f32 %v1166_v9, %v654_v25 }
 0x17b   :  { %v720_v6 = vmax.f32 %v655_v28, 0.0  ;;  %836 = vmatmul.msk.f32.gmra.mxu2 %vm495_vm1, %v486_v27 }
 0x17d   :  { %752 = vst.msk [vmem:[%s1364_s5 + $0x78] sm:$0xff] %vm495_vm1, %v720_v6 }
 0x186   :  { %v657_v63 = vpop.f32.mrf.mxu2 }
 0x187   :  { %v658_v29 = vadd.f32 %v1166_v9, %v657_v63 }
 0x189   :  { %v721_v31 = vmax.f32 %v658_v29, 0.0 }
 0x18b   :  { %753 = vst.msk [vmem:[%s1364_s5 + $0x80] sm:$0xff] %vm495_vm1, %v721_v31 }
 0x18e   :  { %v660_v32 = vpop.f32.mrf.mxu2 }
 0x18f   :  { %v661_v11 = vadd.f32 %v1166_v9, %v660_v32 }
 0x191   :  { %v722_v33 = vmax.f32 %v661_v11, 0.0 }
 0x193   :  { %754 = vst.msk [vmem:[%s1364_s5 + $0x88] sm:$0xff] %vm495_vm1, %v722_v33 }
 0x196   :  { %v663_v35 = vpop.f32.mrf.mxu2 }
 0x197   :  { %v664_v36 = vadd.f32 %v1166_v9, %v663_v35 }
 0x199   :  { %v723_v37 = vmax.f32 %v664_v36, 0.0 }
 0x19b   :  { %755 = vst.msk [vmem:[%s1364_s5 + $0x90] sm:$0xff] %vm495_vm1, %v723_v37 }
 0x19e   :  { %v666_v18 = vpop.f32.mrf.mxu2 }
 0x19f   :  { %v667_v39 = vadd.f32 %v1166_v9, %v666_v18 }
 0x1a1   :  { %v724_v40 = vmax.f32 %v667_v39, 0.0 }
 0x1a3   :  { %756 = vst.msk [vmem:[%s1364_s5 + $0x98] sm:$0xff] %vm495_vm1, %v724_v40 }
 0x1a6   :  { %v669_v41 = vpop.f32.mrf.mxu2 }
 0x1a7   :  { %v670_v43 = vadd.f32 %v1166_v9, %v669_v41 }
 0x1a9   :  { %v725_v22 = vmax.f32 %v670_v43, 0.0 }
 0x1ab   :  { %757 = vst.msk [vmem:[%s1364_s5 + $0xa0] sm:$0xff] %vm495_vm1, %v725_v22 }
 0x1ae   :  { %v672_v44 = vpop.f32.mrf.mxu2 }
 0x1af   :  { %v673_v45 = vadd.f32 %v1166_v9, %v672_v44 }
 0x1b1   :  { %v726_v47 = vmax.f32 %v673_v45, 0.0 }
 0x1b3   :  { %758 = vst.msk [vmem:[%s1364_s5 + $0xa8] sm:$0xff] %vm495_vm1, %v726_v47 }
 0x1b6   :  { %v675_v48 = vpop.f32.mrf.mxu2 }
 0x1b7   :  { %v676_v26 = vadd.f32 %v1166_v9, %v675_v48 }
 0x1b9   :  { %v727_v49 = vmax.f32 %v676_v26, 0.0 }
 0x1bb   :  { %759 = vst.msk [vmem:[%s1364_s5 + $0xb0] sm:$0xff] %vm495_vm1, %v727_v49 }
 0x1be   :  { %v678_v51 = vpop.f32.mrf.mxu2 }
 0x1bf   :  { %v679_v52 = vadd.f32 %v1166_v9, %v678_v51 }
 0x1c1   :  { %v728_v53 = vmax.f32 %v679_v52, 0.0 }
 0x1c3   :  { %760 = vst.msk [vmem:[%s1364_s5 + $0xb8] sm:$0xff] %vm495_vm1, %v728_v53 }
 0x1c6   :  { %v681_v30 = vpop.f32.mrf.mxu2 }
 0x1c7   :  { %v682_v55 = vadd.f32 %v1166_v9, %v681_v30 }
 0x1c9   :  { %v729_v56 = vmax.f32 %v682_v55, 0.0 }
 0x1cb   :  { %761 = vst.msk [vmem:[%s1364_s5 + $0xc0] sm:$0xff] %vm495_vm1, %v729_v56 }
 0x1ce   :  { %v684_v57 = vpop.f32.mrf.mxu2 }
 0x1cf   :  { %v685_v34 = vadd.f32 %v1166_v9, %v684_v57 }
 0x1d1   :  { %v730_v59 = vmax.f32 %v685_v34, 0.0 }
 0x1d3   :  { %762 = vst.msk [vmem:[%s1364_s5 + $0xc8] sm:$0xff] %vm495_vm1, %v730_v59 }
 0x1d6   :  { %v687_v60 = vpop.f32.mrf.mxu2 }
 0x1d7   :  { %v688_v61 = vadd.f32 %v1166_v9, %v687_v60 }
 0x1d9   :  { %v731_v62 = vmax.f32 %v688_v61, 0.0 }
 0x1db   :  { %763 = vst.msk [vmem:[%s1364_s5 + $0xd0] sm:$0xff] %vm495_vm1, %v731_v62 }
 0x1de   :  { %v690_v38 = vpop.f32.mrf.mxu2 }
 0x1df   :  { %v691_v0 = vadd.f32 %v1166_v9, %v690_v38 }
 0x1e1   :  { %v732_v1 = vmax.f32 %v691_v0, 0.0 }
 0x1e3   :  { %764 = vst.msk [vmem:[%s1364_s5 + $0xd8] sm:$0xff] %vm495_vm1, %v732_v1 }
 0x1e6   :  { %v693_v2 = vpop.f32.mrf.mxu2 }
 0x1e7   :  { %v694_v3 = vadd.f32 %v1166_v9, %v693_v2 }
 0x1e9   :  { %v733_v42 = vmax.f32 %v694_v3, 0.0 }
 0x1eb   :  { %765 = vst.msk [vmem:[%s1364_s5 + $0xe0] sm:$0xff] %vm495_vm1, %v733_v42 }
 0x1ee   :  { %v696_v5 = vpop.f32.mrf.mxu2 }
 0x1ef   :  { %v697_v7 = vadd.f32 %v1166_v9, %v696_v5 }
 0x1f1   :  { %v734_v8 = vmax.f32 %v697_v7, 0.0 }
 0x1f3   :  { %766 = vst.msk [vmem:[%s1364_s5 + $0xe8] sm:$0xff] %vm495_vm1, %v734_v8 }
 0x1f6   :  { %v699_v10 = vpop.f32.mrf.mxu2 }
 0x1f7   :  { %v700_v46 = vadd.f32 %v1166_v9, %v699_v10 }
 0x1f9   :  { %v735_v12 = vmax.f32 %v700_v46, 0.0 }
 0x1fb   :  { %767 = vst.msk [vmem:[%s1364_s5 + $0xf0] sm:$0xff] %vm495_vm1, %v735_v12 }
 0x1fe   :  { %v702_v13 = vpop.f32.mrf.mxu2 }
 0x1ff   :  { %v703_v14 = vadd.f32 %v1166_v9, %v702_v13 }
 0x201   :  { %v736_v15 = vmax.f32 %v703_v14, 0.0 }
 0x203   :  { %768 = vst.msk [vmem:[%s1364_s5 + $0xf8] sm:$0xff] %vm495_vm1, %v736_v15 }

// kernel: graphsage_hgnnplus_forward.8
= control target key start
LH: loop header
LB: loop body
LE: loop exit
PB: predicated region body
PF: predicated region fallthrough
CT: control target
= control target key end

     0   :  { %v1162_v0 = vmov 0   ;;  %vm56_vm0 = vcmask 64512   ;;  %s1834_s2 = inlined_call_operand.vmem [shape: f32[256,1], index: 2, kind: input, shape index: {}]   ;;  %s1835_s1 = inlined_call_operand.vmem [shape: f32[8,64], index: 1, kind: input, shape index: {}]   ;;  %s1836_s0 = inlined_call_operand.vmem [shape: f32[256,8], index: 0, kind: input, shape index: {}]   ;;  %s1837_s5 = inlined_call_operand.vmem [shape: f32[256,1], index: 5, kind: input, shape index: {}]   ;;  %s1838_s3 = inlined_call_operand.vmem [shape: f32[64,32], index: 3, kind: input, shape index: {}]   ;;  %s1839_s4 = inlined_call_operand.vmem [shape: f32[1,32], index: 4, kind: input, shape index: {}]   ;;  %s1840_s6 = inlined_call_operand.vmem [shape: f32[1,1,32], index: 6, kind: output, shape index: {}]  }
   0x1   :  { %1160 = vset.pattern.permute.xlu2 %v1162_v0  ;;  %1159 = vset.pattern.permute.xlu1 %v1162_v0  ;;  %v270_v1 = vld [vmem:[%s1834_s2 + $0x20] sm:$0xff]  ;;  %v268_v2 = vld [vmem:[%s1834_s2 + $0x10] sm:$0xff]  ;;  %v40_v6 = vld [vmem:[%s1836_s0 + $0x88] sm:$0xff] }
   0x2   :  { %v266_v3 = vld [vmem:[%s1834_s2] sm:$0xff]  ;;  %1158 = vset.pattern.permute.xlu0 %v1162_v0  ;;  %320 = vperm.xlu2 %1160, %v270_v1   ;;  %v271_v7 = vld [vmem:[%s1834_s2 + $0x28] sm:$0xff]  ;;  %v269_v8 = vld [vmem:[%s1834_s2 + $0x18] sm:$0xff] }
   0x3   :  { %v55_v4 = vld [vmem:[%s1835_s1] sm:$0xff]  ;;  %310 = vperm.xlu1 %1159, %v268_v2   ;;  %300 = vperm.xlu0 %1158, %v266_v3   ;;  %v267_v9 = vld [vmem:[%s1834_s2 + $0x8] sm:$0xff]  ;;  %v41_v11 = vld [vmem:[%s1836_s0 + $0x90] sm:$0xff] }
   0x4   :  { %v23_v5 = vld [vmem:[%s1836_s0] sm:$0xff]  ;;  %168 = vmatpush.msra.mxu0 %v55_v4  ;;  %1140 = vmatpush.msra.mxu3 %v55_v4  ;;  %v24_v10 = vld [vmem:[%s1836_s0 + $0x8] sm:$0xff]  ;;  %v273_v13 = vld [vmem:[%s1834_s2 + $0x38] sm:$0xff] }
   0x5   :  { %1076 = vmatmul.msk.f32.vlgmr.msra.gmra.mxu0 %vm56_vm0, %v23_v5  ;;  %1093 = vmatmul.msk.f32.vlgmr.msra.gmra.mxu3 %vm56_vm0, %v40_v6  ;;  %v274_v12 = vld [vmem:[%s1834_s2 + $0x40] sm:$0xff]  ;;  %v272_v14 = vld [vmem:[%s1834_s2 + $0x30] sm:$0xff]  ;;  %v42_v16 = vld [vmem:[%s1836_s0 + $0x98] sm:$0xff] }
   0x6   :  { %v25_v15 = vld [vmem:[%s1836_s0 + $0x10] sm:$0xff]  ;;  %v277_v17 = vld [vmem:[%s1834_s2 + $0x58] sm:$0xff]  ;;  %v275_v19 = vld [vmem:[%s1834_s2 + $0x48] sm:$0xff] }
   0x7   :  { %v276_v18 = vld [vmem:[%s1834_s2 + $0x50] sm:$0xff]  ;;  %v26_v20 = vld [vmem:[%s1836_s0 + $0x18] sm:$0xff]  ;;  %v43_v21 = vld [vmem:[%s1836_s0 + $0xa0] sm:$0xff] }
   0x8   :  { %v283_v22 = vld [vmem:[%s1834_s2 + $0x88] sm:$0xff]  ;;  %v282_v23 = vld [vmem:[%s1834_s2 + $0x80] sm:$0xff]  ;;  %v281_v24 = vld [vmem:[%s1834_s2 + $0x78] sm:$0xff] }
   0x9   :  { %v27_v25 = vld [vmem:[%s1836_s0 + $0x20] sm:$0xff]  ;;  %v44_v26 = vld [vmem:[%s1836_s0 + $0xa8] sm:$0xff]  ;;  %v285_v27 = vld [vmem:[%s1834_s2 + $0x98] sm:$0xff] }
   0xa   :  { %325 = vperm.xlu2 %1160, %v271_v7   ;;  %v284_v28 = vld [vmem:[%s1834_s2 + $0x90] sm:$0xff]  ;;  %v278_v29 = vld [vmem:[%s1834_s2 + $0x60] sm:$0xff]  ;;  %v28_v30 = vld [vmem:[%s1836_s0 + $0x28] sm:$0xff] }
   0xb   :  { %315 = vperm.xlu1 %1159, %v269_v8   ;;  %305 = vperm.xlu0 %1158, %v267_v9   ;;  %v45_v31 = vld [vmem:[%s1836_s0 + $0xb0] sm:$0xff]  ;;  %v287_v32 = vld [vmem:[%s1834_s2 + $0xa8] sm:$0xff]  ;;  %v286_v34 = vld [vmem:[%s1834_s2 + $0xa0] sm:$0xff] }
   0xc   :  { %v279_v33 = vld [vmem:[%s1834_s2 + $0x68] sm:$0xff]  ;;  %v29_v35 = vld [vmem:[%s1836_s0 + $0x30] sm:$0xff]  ;;  %v46_v36 = vld [vmem:[%s1836_s0 + $0xb8] sm:$0xff] }
   0xd   :  { %1077 = vmatmul.msk.f32.gmra.mxu0 %vm56_vm0, %v24_v10  ;;  %1094 = vmatmul.msk.f32.gmra.mxu3 %vm56_vm0, %v41_v11  ;;  %v280_v37 = vld [vmem:[%s1834_s2 + $0x70] sm:$0xff]  ;;  %v289_v38 = vld [vmem:[%s1834_s2 + $0xb8] sm:$0xff]  ;;  %v47_v41 = vld [vmem:[%s1836_s0 + $0xc0] sm:$0xff] }
   0xe   :  { %v288_v39 = vld [vmem:[%s1834_s2 + $0xb0] sm:$0xff]  ;;  %v30_v40 = vld [vmem:[%s1836_s0 + $0x38] sm:$0xff]  ;;  %v291_v43 = vld [vmem:[%s1834_s2 + $0xc8] sm:$0xff] }
   0xf   :  { %v292_v42 = vld [vmem:[%s1834_s2 + $0xd0] sm:$0xff]  ;;  %v290_v44 = vld [vmem:[%s1834_s2 + $0xc0] sm:$0xff]  ;;  %v48_v46 = vld [vmem:[%s1836_s0 + $0xc8] sm:$0xff] }
  0x10   :  { %v31_v45 = vld [vmem:[%s1836_s0 + $0x40] sm:$0xff]  ;;  %v295_v47 = vld [vmem:[%s1834_s2 + $0xe8] sm:$0xff]  ;;  %v293_v49 = vld [vmem:[%s1834_s2 + $0xd8] sm:$0xff] }
  0x11   :  { %v294_v48 = vld [vmem:[%s1834_s2 + $0xe0] sm:$0xff]  ;;  %v32_v51 = vld [vmem:[%s1836_s0 + $0x48] sm:$0xff]  ;;  %v49_v52 = vld [vmem:[%s1836_s0 + $0xd0] sm:$0xff] }
  0x12   :  { %340 = vperm.xlu2 %1160, %v274_v12   ;;  %v744_v50 = vld [vmem:[%s1837_s5] sm:$0xff]  ;;  %v297_v54 = vld [vmem:[%s1834_s2 + $0xf8] sm:$0xff]  ;;  %v296_v55 = vld [vmem:[%s1834_s2 + $0xf0] sm:$0xff] }
  0x13   :  { %335 = vperm.xlu1 %1159, %v273_v13   ;;  %330 = vperm.xlu0 %1158, %v272_v14   ;;  %vm776_vm1 = vcmp.gt.f32.partialorder %v744_v50, 0.0  ;;  %v33_v56 = vld [vmem:[%s1836_s0 + $0x50] sm:$0xff]  ;;  %v747_v57 = vld [vmem:[%s1837_s5 + $0x18] sm:$0xff]  ;;  %v745_v60 = vld [vmem:[%s1837_s5 + $0x8] sm:$0xff] }
  0x14   :  { %v808_v53 = vsel %vm776_vm1, 1, %v1162_v0  ;;  %v50_v58 = vld [vmem:[%s1836_s0 + $0xd8] sm:$0xff]  ;;  %v746_v59 = vld [vmem:[%s1837_s5 + $0x10] sm:$0xff]  ;;  %vm779_vm2 = vcmp.gt.f32.partialorder %v747_v57, 0.0  ;;  %vm777_vm4 = vcmp.gt.f32.partialorder %v745_v60, 0.0  ;;  %v495_v1 = vld [vmem:[%s1838_s3 + $0x28] sm:$0xff] }
  0x15   :  { %1078 = vmatmul.msk.f32.gmra.mxu0 %vm56_vm0, %v25_v15  ;;  %1095 = vmatmul.msk.f32.gmra.mxu3 %vm56_vm0, %v42_v16  ;;  %vm778_vm3 = vcmp.gt.f32.partialorder %v746_v59, 0.0  ;;  %v497_v61 = vld [vmem:[%s1838_s3 + $0x38] sm:$0xff]  ;;  %v496_v62 = vld [vmem:[%s1838_s3 + $0x30] sm:$0xff]  ;;  %v811_v63 = vsel %vm779_vm2, 1, %v1162_v0  ;;  %v809_v3 = vsel %vm777_vm4, 1, %v1162_v0  ;;  %v494_v6 = vld [vmem:[%s1838_s3 + $0x20] sm:$0xff] }
  0x16   :  { %607 = vmatpush.msra.mxu1 %v497_v61  ;;  %1142 = vmatpush.msrb.mxu3 %v497_v61  ;;  %v810_v2 = vsel %vm778_vm3, 1, %v1162_v0  ;;  %v34_v4 = vld [vmem:[%s1836_s0 + $0x58] sm:$0xff]  ;;  %v750_v5 = vld [vmem:[%s1837_s5 + $0x30] sm:$0xff]  ;;  %v51_v7 = vld [vmem:[%s1836_s0 + $0xe0] sm:$0xff] }
  0x17   :  { %1141 = vmatpush.msra.mxu2 %v497_v61  ;;  %v749_v8 = vld [vmem:[%s1837_s5 + $0x28] sm:$0xff]  ;;  %v748_v9 = vld [vmem:[%s1837_s5 + $0x20] sm:$0xff]  ;;  %vm782_vm5 = vcmp.gt.f32.partialorder %v750_v5, 0.0  ;;  %v493_v10 = vld [vmem:[%s1838_s3 + $0x18] sm:$0xff] }
  0x18   :  { %608 = vmatpush.msra.mxu1 %v496_v62  ;;  %1144 = vmatpush.msrb.mxu3 %v496_v62  ;;  %vm781_vm6 = vcmp.gt.f32.partialorder %v749_v8, 0.0  ;;  %vm780_vm7 = vcmp.gt.f32.partialorder %v748_v9, 0.0  ;;  %v492_v11 = vld [vmem:[%s1838_s3 + $0x10] sm:$0xff]  ;;  %v814_v12 = vsel %vm782_vm5, 1, %v1162_v0  ;;  %v35_v15 = vld [vmem:[%s1836_s0 + $0x60] sm:$0xff]  ;;  %v753_v16 = vld [vmem:[%s1837_s5 + $0x48] sm:$0xff] }
  0x19   :  { %1143 = vmatpush.msra.mxu2 %v496_v62  ;;  %v813_v13 = vsel %vm781_vm6, 1, %v1162_v0  ;;  %v812_v14 = vsel %vm780_vm7, 1, %v1162_v0  ;;  %vm785_vm8 = vcmp.gt.f32.partialorder %v753_v16, 0.0  ;;  %vm502_vm5 = vcmask 523264   ;;  %v764_v57 = vld [vmem:[%s1837_s5 + $0xa0] sm:$0xff]  ;;  %v770_v16 = vld [vmem:[%s1837_s5 + $0xd0] sm:$0xff] }
  0x1a   :  { %355 = vperm.xlu2 %1160, %v277_v17   ;;  %609 = vmatpush.msra.mxu1 %v495_v1  ;;  %v491_v17 = vld [vmem:[%s1838_s3 + $0x8] sm:$0xff]  ;;  %vm796_vm7 = vcmp.gt.f32.partialorder %v764_v57, 0.0 }
  0x1b   :  { %350 = vperm.xlu1 %1159, %v276_v18   ;;  %345 = vperm.xlu0 %1158, %v275_v19   ;;  %v52_v18 = vld [vmem:[%s1836_s0 + $0xe8] sm:$0xff]  ;;  %v752_v19 = vld [vmem:[%s1837_s5 + $0x40] sm:$0xff] }
  0x1c   :  { %610 = vmatpush.msra.mxu1 %v494_v6  ;;  %1146 = vmatpush.msrb.mxu3 %v495_v1  ;;  %vm784_vm9 = vcmp.gt.f32.partialorder %v752_v19, 0.0 }
  0x1d   :  { %1079 = vmatmul.msk.f32.gmra.mxu0 %vm56_vm0, %v26_v20  ;;  %1096 = vmatmul.msk.f32.gmra.mxu3 %vm56_vm0, %v43_v21  ;;  %v751_v20 = vld [vmem:[%s1837_s5 + $0x38] sm:$0xff]  ;;  %v490_v21 = vld [vmem:[%s1838_s3] sm:$0xff] }
  0x1e   :  { %611 = vmatpush.msra.mxu1 %v493_v10  ;;  %1145 = vmatpush.msra.mxu2 %v495_v1  ;;  %vm783_vm10 = vcmp.gt.f32.partialorder %v751_v20, 0.0 }
  0x1f   :  { %1148 = vmatpush.msrb.mxu3 %v494_v6 }
  0x20   :  { %612 = vmatpush.msra.mxu1 %v492_v11  ;;  %1147 = vmatpush.msra.mxu2 %v494_v6  ;;  %v767_v6 = vld [vmem:[%s1837_s5 + $0xb8] sm:$0xff] }
  0x21   :  { %1150 = vmatpush.msrb.mxu3 %v493_v10 }
  0x22   :  { %385 = vperm.xlu2 %1160, %v283_v22   ;;  %613 = vmatpush.msra.mxu1 %v491_v17  ;;  %v817_v22 = vsel %vm785_vm8, 1, %v1162_v0 }
  0x23   :  { %380 = vperm.xlu1 %1159, %v282_v23   ;;  %375 = vperm.xlu0 %1158, %v281_v24   ;;  %v816_v23 = vsel %vm784_vm9, 1, %v1162_v0  ;;  %v815_v24 = vsel %vm783_vm10, 1, %v1162_v0  ;;  %vm799_vm9 = vcmp.gt.f32.partialorder %v767_v6, 0.0 }
  0x24   :  { %614 = vmatpush.msra.mxu1 %v490_v21  ;;  %1149 = vmatpush.msra.mxu2 %v493_v10 }
  0x25   :  { %1080 = vmatmul.msk.f32.gmra.mxu0 %vm56_vm0, %v27_v25  ;;  %1097 = vmatmul.msk.f32.gmra.mxu3 %vm56_vm0, %v44_v26  ;;  %v36_v25 = vld [vmem:[%s1836_s0 + $0x68] sm:$0xff]  ;;  %v756_v26 = vld [vmem:[%s1837_s5 + $0x60] sm:$0xff] }
  0x26   :  { %1152 = vmatpush.msrb.mxu3 %v492_v11  ;;  %1151 = vmatpush.msra.mxu2 %v492_v11  ;;  %vm788_vm11 = vcmp.gt.f32.partialorder %v756_v26, 0.0 }
  0x28   :  { %1154 = vmatpush.msrb.mxu3 %v491_v17  ;;  %1153 = vmatpush.msra.mxu2 %v491_v17  ;;  %v769_v17 = vld [vmem:[%s1837_s5 + $0xc8] sm:$0xff] }
  0x2a   :  { %395 = vperm.xlu2 %1160, %v285_v27   ;;  %v53_v27 = vld [vmem:[%s1836_s0 + $0xf0] sm:$0xff]  ;;  %1156 = vmatpush.msrb.mxu3 %v490_v21 }
  0x2b   :  { %390 = vperm.xlu1 %1159, %v284_v28   ;;  %360 = vperm.xlu0 %1158, %v278_v29   ;;  %v755_v28 = vld [vmem:[%s1837_s5 + $0x58] sm:$0xff]  ;;  %v754_v29 = vld [vmem:[%s1837_s5 + $0x50] sm:$0xff] }
  0x2c   :  { %1155 = vmatpush.msra.mxu2 %v490_v21  ;;  %vm787_vm12 = vcmp.gt.f32.partialorder %v755_v28, 0.0  ;;  %vm786_vm13 = vcmp.gt.f32.partialorder %v754_v29, 0.0  ;;  %v772_v28 = vld [vmem:[%s1837_s5 + $0xe0] sm:$0xff] }
  0x2d   :  { %1081 = vmatmul.msk.f32.gmra.mxu0 %vm56_vm0, %v28_v30  ;;  %1098 = vmatmul.msk.f32.gmra.mxu3 %vm56_vm0, %v45_v31  ;;  %v820_v31 = vsel %vm788_vm11, 1, %v1162_v0 }
  0x32   :  { %405 = vperm.xlu2 %1160, %v287_v32   ;;  %v819_v32 = vsel %vm787_vm12, 1, %v1162_v0  ;;  %vm802_vm12 = vcmp.gt.f32.partialorder %v770_v16, 0.0 }
  0x33   :  { %365 = vperm.xlu1 %1159, %v279_v33   ;;  %400 = vperm.xlu0 %1158, %v286_v34   ;;  %v818_v33 = vsel %vm786_vm13, 1, %v1162_v0  ;;  %v37_v34 = vld [vmem:[%s1836_s0 + $0x70] sm:$0xff]  ;;  %vm801_vm13 = vcmp.gt.f32.partialorder %v769_v17, 0.0 }
  0x35   :  { %1082 = vmatmul.msk.f32.gmra.mxu0 %vm56_vm0, %v29_v35  ;;  %1099 = vmatmul.msk.f32.gmra.mxu3 %vm56_vm0, %v46_v36  ;;  %v759_v35 = vld [vmem:[%s1837_s5 + $0x78] sm:$0xff] }
  0x36   :  { %v54_v36 = vld [vmem:[%s1836_s0 + $0xf8] sm:$0xff]  ;;  %vm791_vm14 = vcmp.gt.f32.partialorder %v759_v35, 0.0 }
  0x3a   :  { %370 = vperm.xlu2 %1160, %v280_v37   ;;  %v758_v37 = vld [vmem:[%s1837_s5 + $0x70] sm:$0xff] }
  0x3b   :  { %415 = vperm.xlu1 %1159, %v289_v38   ;;  %410 = vperm.xlu0 %1158, %v288_v39   ;;  %v757_v38 = vld [vmem:[%s1837_s5 + $0x68] sm:$0xff]  ;;  %vm790_vm15 = vcmp.gt.f32.partialorder %v758_v37, 0.0 }
  0x3c   :  { %vm789_vm1 = vcmp.gt.f32.partialorder %v757_v38, 0.0 }
  0x3d   :  { %1083 = vmatmul.msk.f32.gmra.mxu0 %vm56_vm0, %v30_v40  ;;  %1100 = vmatmul.msk.f32.gmra.mxu3 %vm56_vm0, %v47_v41  ;;  %v823_v41 = vsel %vm791_vm14, 1, %v1162_v0 }
  0x42   :  { %430 = vperm.xlu2 %1160, %v292_v42   ;;  %v822_v42 = vsel %vm790_vm15, 1, %v1162_v0 }
  0x43   :  { %425 = vperm.xlu1 %1159, %v291_v43   ;;  %420 = vperm.xlu0 %1158, %v290_v44   ;;  %v821_v43 = vsel %vm789_vm1, 1, %v1162_v0  ;;  %v762_v44 = vld [vmem:[%s1837_s5 + $0x90] sm:$0xff]  ;;  %vm804_vm1 = vcmp.gt.f32.partialorder %v772_v28, 0.0 }
  0x44   :  { %vm794_vm2 = vcmp.gt.f32.partialorder %v762_v44, 0.0  ;;  %v836_v37 = vsel %vm804_vm1, 1, %v1162_v0 }
  0x45   :  { %1084 = vmatmul.msk.f32.gmra.mxu0 %vm56_vm0, %v31_v45  ;;  %1101 = vmatmul.msk.f32.gmra.mxu3 %vm56_vm0, %v48_v46  ;;  %v38_v45 = vld [vmem:[%s1836_s0 + $0x78] sm:$0xff]  ;;  %v761_v46 = vld [vmem:[%s1837_s5 + $0x88] sm:$0xff]  ;;  %v826_v50 = vsel %vm794_vm2, 1, %v1162_v0 }
  0x46   :  { %vm793_vm3 = vcmp.gt.f32.partialorder %v761_v46, 0.0 }
  0x4a   :  { %445 = vperm.xlu2 %1160, %v295_v47   ;;  %v760_v47 = vld [vmem:[%s1837_s5 + $0x80] sm:$0xff] }
  0x4b   :  { %440 = vperm.xlu1 %1159, %v294_v48   ;;  %435 = vperm.xlu0 %1158, %v293_v49   ;;  %vm792_vm4 = vcmp.gt.f32.partialorder %v760_v47, 0.0 }
  0x4d   :  { %1085 = vmatmul.msk.f32.gmra.mxu0 %vm56_vm0, %v32_v51  ;;  %1102 = vmatmul.msk.f32.gmra.mxu3 %vm56_vm0, %v49_v52  ;;  %v825_v52 = vsel %vm793_vm3, 1, %v1162_v0 }
  0x52   :  { %841 = vperm.xlu2 %1160, %v808_v53   ;;  %v824_v53 = vsel %vm792_vm4, 1, %v1162_v0 }
  0x53   :  { %455 = vperm.xlu1 %1159, %v297_v54   ;;  %450 = vperm.xlu0 %1158, %v296_v55   ;;  %v39_v54 = vld [vmem:[%s1836_s0 + $0x80] sm:$0xff]  ;;  %v765_v55 = vld [vmem:[%s1837_s5 + $0xa8] sm:$0xff] }
  0x54   :  { %vm797_vm6 = vcmp.gt.f32.partialorder %v765_v55, 0.0 }
  0x55   :  { %1086 = vmatmul.msk.f32.gmra.mxu0 %vm56_vm0, %v33_v56  ;;  %1103 = vmatmul.msk.f32.gmra.mxu3 %vm56_vm0, %v50_v58  ;;  %v763_v58 = vld [vmem:[%s1837_s5 + $0x98] sm:$0xff]  ;;  %v829_v61 = vsel %vm797_vm6, 1, %v1162_v0  ;;  %vm1000_vm6 = vcmask 261120  }
  0x56   :  { %vm795_vm8 = vcmp.gt.f32.partialorder %v763_v58, 0.0 }
  0x57   :  { %v827_v1 = vsel %vm795_vm8, 1, %v1162_v0 }
  0x5a   :  { %850 = vperm.xlu2 %1160, %v811_v63   ;;  %v828_v63 = vsel %vm796_vm7, 1, %v1162_v0 }
  0x5b   :  { %847 = vperm.xlu1 %1159, %v810_v2   ;;  %844 = vperm.xlu0 %1158, %v809_v3   ;;  %v768_v3 = vld [vmem:[%s1837_s5 + $0xc0] sm:$0xff] }
  0x5c   :  { %v1483_v30 = vpop.permute.xlu2 %320 }
  0x5d   :  { %1087 = vmatmul.msk.f32.gmra.mxu0 %vm56_vm0, %v34_v4  ;;  %1104 = vmatmul.msk.f32.gmra.mxu3 %vm56_vm0, %v51_v7  ;;  %v766_v7 = vld [vmem:[%s1837_s5 + $0xb0] sm:$0xff] }
  0x5e   :  { %vm798_vm10 = vcmp.gt.f32.partialorder %v766_v7, 0.0 }
  0x62   :  { %859 = vperm.xlu2 %1160, %v814_v12   ;;  %v831_v12 = vsel %vm799_vm9, 1, %v1162_v0 }
  0x63   :  { %856 = vperm.xlu1 %1159, %v813_v13   ;;  %853 = vperm.xlu0 %1158, %v812_v14   ;;  %v830_v13 = vsel %vm798_vm10, 1, %v1162_v0  ;;  %v771_v14 = vld [vmem:[%s1837_s5 + $0xd8] sm:$0xff] }
  0x64   :  { %v1505_v39 = vpop.permute.xlu2 %325  ;;  %vm803_vm11 = vcmp.gt.f32.partialorder %v771_v14, 0.0 }
  0x65   :  { %1088 = vmatmul.msk.f32.gmra.mxu0 %vm56_vm0, %v35_v15  ;;  %1105 = vmatmul.msk.f32.gmra.mxu3 %vm56_vm0, %v52_v18  ;;  %v835_v21 = vsel %vm803_vm11, 1, %v1162_v0 }
  0x6a   :  { %868 = vperm.xlu2 %1160, %v817_v22  }
  0x6b   :  { %865 = vperm.xlu1 %1159, %v816_v23   ;;  %862 = vperm.xlu0 %1158, %v815_v24   ;;  %v834_v23 = vsel %vm802_vm12, 1, %v1162_v0  ;;  %v833_v24 = vsel %vm801_vm13, 1, %v1162_v0 }
  0x6c   :  { %v1529_v49 = vpop.permute.xlu2 %340 }
  0x6d   :  { %1089 = vmatmul.msk.f32.gmra.mxu0 %vm56_vm0, %v36_v25  ;;  %1106 = vmatmul.msk.f32.gmra.mxu3 %vm56_vm0, %v53_v27  ;;  %v774_v25 = vld [vmem:[%s1837_s5 + $0xf0] sm:$0xff]  ;;  %v773_v27 = vld [vmem:[%s1837_s5 + $0xe8] sm:$0xff] }
  0x6e   :  { %vm806_vm14 = vcmp.gt.f32.partialorder %v774_v25, 0.0  ;;  %vm805_vm15 = vcmp.gt.f32.partialorder %v773_v27, 0.0 }
  0x72   :  { %877 = vperm.xlu2 %1160, %v820_v31  }
  0x73   :  { %874 = vperm.xlu1 %1159, %v819_v32   ;;  %871 = vperm.xlu0 %1158, %v818_v33  }
  0x74   :  { %v1555_v2 = vpop.permute.xlu2 %355 }
  0x75   :  { %1090 = vmatmul.msk.f32.gmra.mxu0 %vm56_vm0, %v37_v34  ;;  %1107 = vmatmul.msk.f32.gmra.mxu3 %vm56_vm0, %v54_v36  ;;  %v1509_v40 = vpop.permute.xlu1 %310  ;;  %v301_v51 = vpop.permute.xlu0 %300  ;;  %v838_v34 = vsel %vm806_vm14, 1, %v1162_v0  ;;  %v837_v36 = vsel %vm805_vm15, 1, %v1162_v0 }
  0x7a   :  { %886 = vperm.xlu2 %1160, %v823_v41  }
  0x7b   :  { %883 = vperm.xlu1 %1159, %v822_v42   ;;  %880 = vperm.xlu0 %1158, %v821_v43  }
  0x7c   :  { %v1582_v19 = vpop.permute.xlu2 %385 }
  0x7d   :  { %1091 = vmatmul.msk.f32.gmra.mxu0 %vm56_vm0, %v38_v45  ;;  %v1527_v48 = vpop.permute.xlu1 %315  ;;  %v306_v4 = vpop.permute.xlu0 %305 }
  0x82   :  { %v170_v56 = vpop.f32.mrf.mxu0  ;;  %895 = vperm.xlu2 %1160, %v826_v50  }
  0x83   :  { %v458_v59 = vmul.f32 %v301_v51, %v170_v56  ;;  %892 = vperm.xlu1 %1159, %v825_v52   ;;  %889 = vperm.xlu0 %1158, %v824_v53  }
  0x84   :  { %v1603_v32 = vpop.permute.xlu2 %395 }
  0x85   :  { %1092 = vmatmul.msk.f32.gmra.mxu0 %vm56_vm0, %v39_v54  ;;  %1108 = vmatmul.msk.f32.vlgmr.msra.gmra.mxu1 %vm502_vm5, %v458_v59  ;;  %v1548_v60 = vpop.permute.xlu1 %335  ;;  %vm800_vm0 = vcmp.gt.f32.partialorder %v768_v3, 0.0 }
  0x86   :  { %v832_v10 = vsel %vm800_vm0, 1, %v1162_v0 }
  0x88   :  { %v1551_v62 = vpop.f32.mrf.mxu3 }
  0x8a   :  { %v173_v5 = vpop.f32.mrf.mxu0  ;;  %904 = vperm.xlu2 %1160, %v829_v61  }
  0x8b   :  { %v459_v8 = vmul.f32 %v306_v4, %v173_v5  ;;  %901 = vperm.xlu1 %1159, %v828_v63   ;;  %898 = vperm.xlu0 %1158, %v827_v1  }
  0x8c   :  { %v406_v42 = vpop.permute.xlu2 %405 }
  0x8d   :  { %1109 = vmatmul.msk.f32.gmra.mxu1 %vm502_vm5, %v459_v8  ;;  %v1567_v9 = vpop.permute.xlu1 %350 }
  0x90   :  { %v224_v11 = vpop.f32.mrf.mxu3 }
  0x92   :  { %v176_v15 = vpop.f32.mrf.mxu0  ;;  %913 = vperm.xlu2 %1160, %v832_v10  }
  0x93   :  { %v460_v18 = vmul.f32 %v1509_v40, %v176_v15  ;;  %910 = vperm.xlu1 %1159, %v831_v12   ;;  %907 = vperm.xlu0 %1158, %v830_v13   ;;  %v775_v40 = vld [vmem:[%s1837_s5 + $0xf8] sm:$0xff] }
  0x94   :  { %vm807_vm2 = vcmp.gt.f32.partialorder %v775_v40, 0.0 }
  0x95   :  { %1110 = vmatmul.msk.f32.gmra.mxu1 %vm502_vm5, %v460_v18  ;;  %v1585_v20 = vpop.permute.xlu1 %380  ;;  %v839_v44 = vsel %vm807_vm2, 1, %v1162_v0 }
  0x98   :  { %v1588_v22 = vpop.f32.mrf.mxu3 }
  0x9a   :  { %v179_v26 = vpop.f32.mrf.mxu0  ;;  %922 = vperm.xlu2 %1160, %v835_v21  }
  0x9b   :  { %v461_v29 = vmul.f32 %v1527_v48, %v179_v26  ;;  %919 = vperm.xlu1 %1159, %v834_v23   ;;  %916 = vperm.xlu0 %1158, %v833_v24  }
  0x9d   :  { %1111 = vmatmul.msk.f32.gmra.mxu1 %vm502_vm5, %v461_v29  ;;  %v391_v31 = vpop.permute.xlu1 %390 }
  0x9e   :  { %v1605_v33 = vmul.f32 %v391_v31, %v224_v11 }
  0xa0   :  { %v1608_v35 = vpop.f32.mrf.mxu3 }
  0xa2   :  { %v182_v38 = vpop.f32.mrf.mxu0  ;;  %931 = vperm.xlu2 %1160, %v838_v34  }
  0xa3   :  { %v462_v41 = vmul.f32 %v1483_v30, %v182_v38  ;;  %928 = vperm.xlu1 %1159, %v837_v36   ;;  %925 = vperm.xlu0 %1158, %v836_v37   ;;  %v331_v30 = vpop.permute.xlu0 %330 }
  0xa5   :  { %1112 = vmatmul.msk.f32.gmra.mxu1 %vm502_vm5, %v462_v41  ;;  %v366_v48 = vpop.permute.xlu1 %365  ;;  %v1668_v41 = vld [vmem:[%s1839_s4] ss:$0 sm:$0xff] }
  0xa8   :  { %v233_v43 = vpop.f32.mrf.mxu3 }
  0xa9   :  { %v1618_v45 = vmul.f32 %v406_v42, %v233_v43 }
  0xaa   :  { %v185_v46 = vpop.f32.mrf.mxu0 }
  0xab   :  { %v463_v47 = vmul.f32 %v1505_v39, %v185_v46  ;;  %934 = vperm.xlu0 %1158, %v839_v44   ;;  %v346_v57 = vpop.permute.xlu0 %345 }
  0xad   :  { %1113 = vmatmul.msk.f32.gmra.mxu1 %vm502_vm5, %v463_v47  ;;  %v416_v53 = vpop.permute.xlu1 %415 }
  0xb0   :  { %v1622_v50 = vpop.f32.mrf.mxu3 }
  0xb2   :  { %v188_v51 = vpop.f32.mrf.mxu0 }
  0xb3   :  { %v464_v52 = vmul.f32 %v331_v30, %v188_v51  ;;  %v376_v61 = vpop.permute.xlu0 %375 }
  0xb5   :  { %1114 = vmatmul.msk.f32.gmra.mxu1 %vm502_vm5, %v464_v52  ;;  %v426_v63 = vpop.permute.xlu1 %425 }
  0xb8   :  { %v239_v54 = vpop.f32.mrf.mxu3 }
  0xb9   :  { %v1625_v55 = vmul.f32 %v416_v53, %v239_v54  ;;  %v475_v53 = vmul.f32 %v1582_v19, %v1551_v62 }
  0xba   :  { %v191_v0 = vpop.f32.mrf.mxu0 }
  0xbb   :  { %v465_v56 = vmul.f32 %v1548_v60, %v191_v0  ;;  %v361_v6 = vpop.permute.xlu0 %360 }
  0xbd   :  { %1115 = vmatmul.msk.f32.gmra.mxu1 %vm502_vm5, %v465_v56  ;;  %v441_v13 = vpop.permute.xlu1 %440 }
  0xc0   :  { %v1629_v39 = vpop.f32.mrf.mxu3 }
  0xc2   :  { %v194_v58 = vpop.f32.mrf.mxu0 }
  0xc3   :  { %v466_v59 = vmul.f32 %v1529_v49, %v194_v58  ;;  %v401_v11 = vpop.permute.xlu0 %400 }
  0xc4   :  { %v478_v19 = vmul.f32 %v401_v11, %v1608_v35 }
  0xc5   :  { %1116 = vmatmul.msk.f32.gmra.mxu1 %vm502_vm5, %v466_v59  ;;  %v456_v29 = vpop.permute.xlu1 %455  ;;  %v477_v59 = vmul.f32 %v1603_v32, %v1588_v22 }
  0xc8   :  { %v245_v1 = vpop.f32.mrf.mxu3 }
  0xc9   :  { %v1633_v3 = vmul.f32 %v426_v63, %v245_v1 }
  0xca   :  { %v197_v4 = vpop.f32.mrf.mxu0 }
  0xcb   :  { %v467_v5 = vmul.f32 %v346_v57, %v197_v4  ;;  %v1646_v18 = vpop.permute.xlu0 %410 }
  0xcd   :  { %1117 = vmatmul.msk.f32.gmra.mxu1 %vm502_vm5, %v467_v5 }
  0xd0   :  { %v1636_v60 = vpop.f32.mrf.mxu3 }
  0xd2   :  { %v200_v7 = vpop.f32.mrf.mxu0 }
  0xd3   :  { %v468_v8 = vmul.f32 %v1567_v9, %v200_v7  ;;  %v371_v9 = vpop.permute.xlu2 %370 }
  0xd5   :  { %1118 = vmatmul.msk.f32.gmra.mxu1 %vm502_vm5, %v468_v8 }
  0xd8   :  { %v1640_v49 = vpop.f32.mrf.mxu3 }
  0xda   :  { %v203_v10 = vpop.f32.mrf.mxu0 }
  0xdb   :  { %v469_v12 = vmul.f32 %v1555_v2, %v203_v10  ;;  %v1652_v2 = vpop.permute.xlu0 %420  ;;  %v1656_v26 = vpop.permute.xlu2 %430 }
  0xdd   :  { %1119 = vmatmul.msk.f32.gmra.mxu1 %vm502_vm5, %v469_v12 }
  0xe0   :  { %v254_v14 = vpop.f32.mrf.mxu3 }
  0xe1   :  { %v1644_v15 = vmul.f32 %v441_v13, %v254_v14  ;;  %v480_v14 = vmul.f32 %v1646_v18, %v1622_v50  ;;  %v484_v50 = vmul.f32 %v1656_v26, %v1636_v60 }
  0xe2   :  { %v206_v16 = vpop.f32.mrf.mxu0 }
  0xe3   :  { %v470_v17 = vmul.f32 %v361_v6, %v206_v16  ;;  %v1659_v34 = vpop.permute.xlu0 %435  ;;  %v1661_v38 = vpop.permute.xlu2 %445 }
  0xe5   :  { %1120 = vmatmul.msk.f32.gmra.mxu1 %vm502_vm5, %v470_v17 }
  0xe8   :  { %v1649_v21 = vpop.f32.mrf.mxu3 }
  0xe9   :  { %v487_v60 = vmul.f32 %v1661_v38, %v1649_v21 }
  0xea   :  { %v209_v23 = vpop.f32.mrf.mxu0 }
  0xeb   :  { %v471_v24 = vmul.f32 %v366_v48, %v209_v23  ;;  %v1670_v44 = vpop.permute.xlu0 %450  ;;  %v842_v48 = vpop.permute.xlu2 %841 }
  0xec   :  { %vm936_vm3 = vcmp.eq.s32.totalorder %v842_v48, 1 }
  0xed   :  { %1121 = vmatmul.msk.f32.gmra.mxu1 %vm502_vm5, %v471_v24 }
  0xf0   :  { %v1654_v25 = vpop.f32.mrf.mxu3 }
  0xf2   :  { %v212_v27 = vpop.f32.mrf.mxu0 }
  0xf3   :  { %v472_v28 = vmul.f32 %v371_v9, %v212_v27  ;;  %v845_v0 = vpop.permute.xlu0 %844  ;;  %v851_v23 = vpop.permute.xlu2 %850 }
  0xf4   :  { %vm937_vm4 = vcmp.eq.s32.totalorder %v845_v0, 1  ;;  %vm939_vm9 = vcmp.eq.s32.totalorder %v851_v23, 1 }
  0xf5   :  { %1122 = vmatmul.msk.f32.gmra.mxu1 %vm502_vm5, %v472_v28 }
  0xf8   :  { %v263_v31 = vpop.f32.mrf.mxu3 }
  0xf9   :  { %v489_v36 = vmul.f32 %v456_v29, %v263_v31 }
  0xfa   :  { %v215_v37 = vpop.f32.mrf.mxu0 }
  0xfb   :  { %v473_v40 = vmul.f32 %v376_v61, %v215_v37  ;;  %1139 = vmatmul.msk.f32.vlgmr.msrb.gmra.mxu3 %vm502_vm5, %v489_v36  ;;  %v1687_v61 = vpop.permute.xlu1 %847  ;;  %v854_v1 = vpop.permute.xlu0 %853 }
  0xfc   :  { %vm940_vm7 = vcmp.eq.s32.totalorder %v854_v1, 1  ;;  %v1730_v24 = vpop.permute.xlu2 %859  ;;  %vm938_vm2 = vcmp.eq.s32.totalorder %v1687_v61, 1 }
  0xfd   :  { %1123 = vmatmul.msk.f32.vlgmr.msra.gmra.mxu2 %vm502_vm5, %v473_v40  ;;  %vm942_vm1 = vcmp.eq.s32.totalorder %v1730_v24, 1 }
 0x102   :  { %v218_v42 = vpop.f32.mrf.mxu0  ;;  %v616_v43 = vpop.f32.mrf.mxu1 }
 0x103   :  { %v474_v46 = vmul.f32 %v1585_v20, %v218_v42  ;;  %v617_v47 = vadd.f32 %v1668_v41, %v616_v43  ;;  %v857_v7 = vpop.permute.xlu1 %856 }
 0x104   :  { %vm941_vm8 = vcmp.eq.s32.totalorder %v857_v7, 1  ;;  %v869_v26 = vpop.permute.xlu2 %868 }
 0x105   :  { %v712_v30 = vmax.f32 %v617_v47, 0.0  ;;  %1124 = vmatmul.msk.f32.gmra.mxu2 %vm502_vm5, %v474_v46  ;;  %vm945_vm13 = vcmp.eq.s32.totalorder %v869_v26, 1 }
 0x107   :  { %v968_v51 = vsel %vm936_vm3, %v712_v30, -1e+30 }
 0x108   :  { %v1692_v5 = vsel %vm1000_vm6, %v968_v51, -inf }
 0x10a   :  { %v619_v52 = vpop.f32.mrf.mxu1 }
 0x10b   :  { %v620_v54 = vadd.f32 %v1668_v41, %v619_v52  ;;  %v866_v27 = vpop.permute.xlu1 %865 }
 0x10c   :  { %v878_v21 = vpop.permute.xlu2 %877  ;;  %vm944_vm11 = vcmp.eq.s32.totalorder %v866_v27, 1 }
 0x10d   :  { %v713_v56 = vmax.f32 %v620_v54, 0.0  ;;  %1125 = vmatmul.msk.f32.gmra.mxu2 %vm502_vm5, %v475_v53  ;;  %vm948_vm12 = vcmp.eq.s32.totalorder %v878_v21, 1 }
 0x10f   :  { %v969_v20 = vsel %vm937_vm4, %v713_v56, -1e+30 }
 0x110   :  { %v1703_v11 = vsel %vm1000_vm6, %v969_v20, -inf }
 0x112   :  { %v1679_v57 = vpop.f32.mrf.mxu1 }
 0x113   :  { %v875_v37 = vpop.permute.xlu1 %874 }
 0x114   :  { %vm947_vm10 = vcmp.eq.s32.totalorder %v875_v37, 1  ;;  %v887_v56 = vpop.permute.xlu2 %886 }
 0x115   :  { %1126 = vmatmul.msk.f32.gmra.mxu2 %vm502_vm5, %v1605_v33 }
 0x11a   :  { %v625_v58 = vpop.f32.mrf.mxu1 }
 0x11d   :  { %1127 = vmatmul.msk.f32.gmra.mxu2 %vm502_vm5, %v477_v59 }
 0x122   :  { %v628_v62 = vpop.f32.mrf.mxu1 }
 0x123   :  { %v629_v63 = vadd.f32 %v1668_v41, %v628_v62 }
 0x125   :  { %v716_v4 = vmax.f32 %v629_v63, 0.0  ;;  %1128 = vmatmul.msk.f32.gmra.mxu2 %vm502_vm5, %v478_v19 }
 0x127   :  { %v972_v33 = vsel %vm940_vm7, %v716_v4, -1e+30 }
 0x128   :  { %v1695_v22 = vsel %vm1000_vm6, %v972_v33, -inf  ;;  %v884_v33 = vpop.permute.xlu1 %883 }
 0x129   :  { %v1006_v32 = vmax.f32 %v1692_v5, %v1695_v22  ;;  %vm950_vm7 = vcmp.eq.s32.totalorder %v884_v33, 1 }
 0x12a   :  { %v631_v35 = vpop.f32.mrf.mxu1 }
 0x12b   :  { %v632_v6 = vadd.f32 %v1668_v41, %v631_v35 }
 0x12d   :  { %v717_v8 = vmax.f32 %v632_v6, 0.0  ;;  %1129 = vmatmul.msk.f32.gmra.mxu2 %vm502_vm5, %v1618_v45  ;;  %v482_v45 = vmul.f32 %v1652_v2, %v1629_v39 }
 0x12f   :  { %v973_v10 = vsel %vm941_vm8, %v717_v8, -1e+30 }
 0x130   :  { %v1706_v12 = vsel %vm1000_vm6, %v973_v10, -inf }
 0x131   :  { %v1008_v13 = vmax.f32 %v1703_v11, %v1706_v12 }
 0x132   :  { %v1713_v16 = vpop.f32.mrf.mxu1 }
 0x135   :  { %1130 = vmatmul.msk.f32.gmra.mxu2 %vm502_vm5, %v480_v14 }
 0x13a   :  { %v637_v17 = vpop.f32.mrf.mxu1 }
 0x13b   :  { %v638_v29 = vadd.f32 %v1668_v41, %v637_v17 }
 0x13d   :  { %1131 = vmatmul.msk.f32.gmra.mxu2 %vm502_vm5, %v1625_v55  ;;  %v485_v55 = vmul.f32 %v1659_v34, %v1640_v49  ;;  %v488_v49 = vmul.f32 %v1670_v44, %v1654_v25  ;;  %v719_v36 = vmax.f32 %v638_v29, 0.0 }
 0x142   :  { %v640_v9 = vpop.f32.mrf.mxu1 }
 0x143   :  { %v641_v25 = vadd.f32 %v1668_v41, %v640_v9 }
 0x145   :  { %1132 = vmatmul.msk.f32.gmra.mxu2 %vm502_vm5, %v482_v45  ;;  %v720_v51 = vmax.f32 %v641_v25, 0.0 }
 0x147   :  { %v976_v62 = vsel %vm944_vm11, %v720_v51, -1e+30 }
 0x148   :  { %v1013_v8 = vsel %vm1000_vm6, %v976_v62, -inf }
 0x14a   :  { %v643_v18 = vpop.f32.mrf.mxu1 }
 0x14b   :  { %v644_v19 = vadd.f32 %v1668_v41, %v643_v18  ;;  %v1014_v18 = vmax.f32 %v1006_v32, %v1013_v8 }
 0x14d   :  { %1133 = vmatmul.msk.f32.gmra.mxu2 %vm502_vm5, %v1633_v3  ;;  %v863_v3 = vpop.permute.xlu0 %862  ;;  %v721_v45 = vmax.f32 %v644_v19, 0.0 }
 0x14e   :  { %vm943_vm0 = vcmp.eq.s32.totalorder %v863_v3, 1  ;;  %v623_v3 = vadd.f32 %v1668_v41, %v1679_v57  ;;  %v893_v57 = vpop.permute.xlu1 %892 }
 0x14f   :  { %v975_v42 = vsel %vm943_vm0, %v719_v36, -1e+30  ;;  %vm953_vm4 = vcmp.eq.s32.totalorder %v893_v57, 1 }
 0x150   :  { %v1011_v48 = vsel %vm1000_vm6, %v975_v42, -inf }
 0x152   :  { %v1728_v39 = vpop.f32.mrf.mxu1 }
 0x153   :  { %v647_v27 = vadd.f32 %v1668_v41, %v1728_v39 }
 0x155   :  { %1134 = vmatmul.msk.f32.gmra.mxu2 %vm502_vm5, %v484_v50  ;;  %v1739_v28 = vpop.permute.xlu0 %871  ;;  %v635_v50 = vadd.f32 %v1668_v41, %v1713_v16  ;;  %v722_v21 = vmax.f32 %v647_v27, 0.0 }
 0x156   :  { %vm946_vm3 = vcmp.eq.s32.totalorder %v1739_v28, 1 }
 0x15a   :  { %v649_v2 = vpop.f32.mrf.mxu1 }
 0x15b   :  { %v650_v31 = vadd.f32 %v1668_v41, %v649_v2  ;;  %v977_v2 = vsel %vm945_vm13, %v721_v45, -1e+30 }
 0x15c   :  { %v1015_v26 = vsel %vm1000_vm6, %v977_v2, -inf }
 0x15d   :  { %1135 = vmatmul.msk.f32.gmra.mxu2 %vm502_vm5, %v485_v55  ;;  %v723_v40 = vmax.f32 %v650_v31, 0.0  ;;  %v881_v43 = vpop.permute.xlu0 %880 }
 0x15e   :  { %vm949_vm15 = vcmp.eq.s32.totalorder %v881_v43, 1  ;;  %v978_v43 = vsel %vm946_vm3, %v722_v21, -1e+30 }
 0x15f   :  { %v979_v46 = vsel %vm947_vm10, %v723_v40, -1e+30  ;;  %v1017_v12 = vsel %vm1000_vm6, %v978_v43, -inf }
 0x160   :  { %v1019_v54 = vsel %vm1000_vm6, %v979_v46, -inf }
 0x162   :  { %v652_v34 = vpop.f32.mrf.mxu1 }
 0x163   :  { %v653_v47 = vadd.f32 %v1668_v41, %v652_v34  ;;  %v714_v34 = vmax.f32 %v623_v3, 0.0 }
 0x165   :  { %1136 = vmatmul.msk.f32.gmra.mxu2 %vm502_vm5, %v1644_v15  ;;  %v626_v15 = vadd.f32 %v1668_v41, %v625_v58  ;;  %v724_v58 = vmax.f32 %v653_v47, 0.0  ;;  %v890_v14 = vpop.permute.xlu0 %889  ;;  %v970_v25 = vsel %vm938_vm2, %v714_v34, -1e+30 }
 0x166   :  { %vm952_vm14 = vcmp.eq.s32.totalorder %v890_v14, 1  ;;  %v1003_v11 = vsel %vm1000_vm6, %v970_v25, -inf }
 0x167   :  { %v715_v38 = vmax.f32 %v626_v15, 0.0  ;;  %v980_v35 = vsel %vm948_vm12, %v724_v58, -1e+30  ;;  %v718_v15 = vmax.f32 %v635_v50, 0.0 }
 0x168   :  { %v1021_v9 = vsel %vm1000_vm6, %v980_v35, -inf }
 0x169   :  { %v971_v44 = vsel %vm939_vm9, %v715_v38, -1e+30  ;;  %v974_v37 = vsel %vm942_vm1, %v718_v15, -1e+30  ;;  %v1016_v38 = vmax.f32 %v1008_v13, %v1015_v26 }
 0x16a   :  { %v1004_v53 = vsel %vm1000_vm6, %v971_v44, -inf  ;;  %v655_v0 = vpop.f32.mrf.mxu1  ;;  %v1009_v24 = vsel %vm1000_vm6, %v974_v37, -inf }
 0x16b   :  { %v1012_v20 = vmax.f32 %v1004_v53, %v1011_v48  ;;  %v656_v6 = vadd.f32 %v1668_v41, %v655_v0  ;;  %v1010_v13 = vmax.f32 %v1003_v11, %v1009_v24 }
 0x16d   :  { %1137 = vmatmul.msk.f32.gmra.mxu2 %vm502_vm5, %v487_v60  ;;  %v1752_v63 = vmax.f32 %v1012_v20, %v1019_v54  ;;  %v725_v23 = vmax.f32 %v656_v6, 0.0  ;;  %v1018_v53 = vmax.f32 %v1010_v13, %v1017_v12  ;;  %v899_v62 = vpop.permute.xlu0 %898 }
 0x16e   :  { %vm955_vm0 = vcmp.eq.s32.totalorder %v899_v62, 1 }
 0x16f   :  { %v981_v5 = vsel %vm949_vm15, %v725_v23, -1e+30 }
 0x170   :  { %v1023_v39 = vsel %vm1000_vm6, %v981_v5, -inf }
 0x171   :  { %v1024_v44 = vmax.f32 %v1016_v38, %v1023_v39 }
 0x172   :  { %v658_v60 = vpop.f32.mrf.mxu1 }
 0x173   :  { %v659_v22 = vadd.f32 %v1668_v41, %v658_v60 }
 0x175   :  { %1138 = vmatmul.msk.f32.gmra.mxu2 %vm502_vm5, %v488_v49  ;;  %vm951_vm5 = vcmp.eq.s32.totalorder %v887_v56, 1  ;;  %v1022_v49 = vmax.f32 %v1014_v18, %v1021_v9  ;;  %v726_v40 = vmax.f32 %v659_v22, 0.0 }
 0x177   :  { %v982_v48 = vsel %vm950_vm7, %v726_v40, -1e+30  ;;  %vm1070_vm7 = vcmask 253952  }
 0x178   :  { %v1025_v51 = vsel %vm1000_vm6, %v982_v48, -inf }
 0x179   :  { %v1026_v0 = vmax.f32 %v1018_v53, %v1025_v51 }
 0x17e   :  { %v709_v48 = vpop.f32.mrf.mxu3 }
 0x17f   :  { %v710_v53 = vadd.f32 %v1668_v41, %v709_v48 }
 0x180   :  { %v661_v30 = vpop.f32.mrf.mxu2 }
 0x181   :  { %v662_v52 = vadd.f32 %v1668_v41, %v661_v30 }
 0x183   :  { %v727_v59 = vmax.f32 %v662_v52, 0.0  ;;  %v896_v52 = vpop.permute.xlu2 %895 }
 0x184   :  { %vm954_vm8 = vcmp.eq.s32.totalorder %v896_v52, 1 }
 0x185   :  { %v983_v1 = vsel %vm951_vm5, %v727_v59, -1e+30 }
 0x186   :  { %v1755_v4 = vsel %vm1000_vm6, %v983_v1, -inf }
 0x187   :  { %v1028_v7 = vmax.f32 %v1752_v63, %v1755_v4 }
 0x188   :  { %v664_v10 = vpop.f32.mrf.mxu2 }
 0x189   :  { %v665_v17 = vadd.f32 %v1668_v41, %v664_v10  ;;  %v902_v10 = vpop.permute.xlu1 %901 }
 0x18a   :  { %vm956_vm9 = vcmp.eq.s32.totalorder %v902_v10, 1 }
 0x18b   :  { %v728_v55 = vmax.f32 %v665_v17, 0.0 }
 0x18d   :  { %v984_v29 = vsel %vm952_vm14, %v728_v55, -1e+30  ;;  %v905_v55 = vpop.permute.xlu2 %904 }
 0x18e   :  { %v1029_v16 = vsel %vm1000_vm6, %v984_v29, -inf  ;;  %vm957_vm10 = vcmp.eq.s32.totalorder %v905_v55, 1 }
 0x18f   :  { %v1774_v32 = vmax.f32 %v1022_v49, %v1029_v16  ;;  %v908_v16 = vpop.permute.xlu0 %907 }
 0x190   :  { %v667_v31 = vpop.f32.mrf.mxu2  ;;  %vm958_vm14 = vcmp.eq.s32.totalorder %v908_v16, 1 }
 0x191   :  { %v668_v36 = vadd.f32 %v1668_v41, %v667_v31  ;;  %v911_v15 = vpop.permute.xlu1 %910 }
 0x192   :  { %vm959_vm13 = vcmp.eq.s32.totalorder %v911_v15, 1 }
 0x193   :  { %v729_v42 = vmax.f32 %v668_v36, 0.0 }
 0x195   :  { %v985_v46 = vsel %vm953_vm4, %v729_v42, -1e+30 }
 0x196   :  { %v1031_v47 = vsel %vm1000_vm6, %v985_v46, -inf }
 0x197   :  { %v1787_v30 = vmax.f32 %v1024_v44, %v1031_v47  ;;  %v917_v22 = vpop.permute.xlu0 %916 }
 0x198   :  { %v670_v61 = vpop.f32.mrf.mxu2  ;;  %vm961_vm11 = vcmp.eq.s32.totalorder %v917_v22, 1 }
 0x199   :  { %v671_v28 = vadd.f32 %v1668_v41, %v670_v61  ;;  %v920_v26 = vpop.permute.xlu1 %919 }
 0x19a   :  { %vm962_vm2 = vcmp.eq.s32.totalorder %v920_v26, 1 }
 0x19b   :  { %v730_v54 = vmax.f32 %v671_v28, 0.0 }
 0x19d   :  { %v986_v56 = vsel %vm954_vm8, %v730_v54, -1e+30 }
 0x19e   :  { %v1033_v20 = vsel %vm1000_vm6, %v986_v56, -inf }
 0x19f   :  { %v1794_v58 = vmax.f32 %v1026_v0, %v1033_v20  ;;  %v926_v40 = vpop.permute.xlu0 %925 }
 0x1a0   :  { %v673_v59 = vpop.f32.mrf.mxu2  ;;  %vm964_vm12 = vcmp.eq.s32.totalorder %v926_v40, 1 }
 0x1a1   :  { %v674_v19 = vadd.f32 %v1668_v41, %v673_v59  ;;  %v929_v12 = vpop.permute.xlu1 %928 }
 0x1a2   :  { %vm965_vm1 = vcmp.eq.s32.totalorder %v929_v12, 1 }
 0x1a3   :  { %v731_v1 = vmax.f32 %v674_v19, 0.0 }
 0x1a5   :  { %v987_v33 = vsel %vm955_vm0, %v731_v1, -1e+30 }
 0x1a6   :  { %v1035_v35 = vsel %vm1000_vm6, %v987_v33, -inf }
 0x1a7   :  { %v1801_v6 = vmax.f32 %v1028_v7, %v1035_v35  ;;  %v935_v10 = vpop.permute.xlu0 %934 }
 0x1a8   :  { %v676_v8 = vpop.f32.mrf.mxu2  ;;  %vm967_vm3 = vcmp.eq.s32.totalorder %v935_v10, 1 }
 0x1a9   :  { %v677_v14 = vadd.f32 %v1668_v41, %v676_v8 }
 0x1ab   :  { %v732_v45 = vmax.f32 %v677_v14, 0.0  ;;  %v743_v14 = vmax.f32 %v710_v53, 0.0 }
 0x1ad   :  { %v988_v17 = vsel %vm956_vm9, %v732_v45, -1e+30 }
 0x1ae   :  { %v1037_v9 = vsel %vm1000_vm6, %v988_v17, -inf }
 0x1af   :  { %v1038_v50 = vmax.f32 %v1774_v32, %v1037_v9  ;;  %v914_v32 = vpop.permute.xlu2 %913 }
 0x1b0   :  { %v679_v18 = vpop.f32.mrf.mxu2  ;;  %vm960_vm5 = vcmp.eq.s32.totalorder %v914_v32, 1 }
 0x1b1   :  { %v680_v23 = vadd.f32 %v1668_v41, %v679_v18 }
 0x1b3   :  { %v733_v3 = vmax.f32 %v680_v23, 0.0 }
 0x1b5   :  { %v989_v63 = vsel %vm957_vm10, %v733_v3, -1e+30 }
 0x1b6   :  { %v1039_v4 = vsel %vm1000_vm6, %v989_v63, -inf }
 0x1b7   :  { %v1040_v7 = vmax.f32 %v1787_v30, %v1039_v4  ;;  %v923_v43 = vpop.permute.xlu2 %922 }
 0x1b8   :  { %v682_v60 = vpop.f32.mrf.mxu2  ;;  %vm963_vm15 = vcmp.eq.s32.totalorder %v923_v43, 1 }
 0x1b9   :  { %v683_v38 = vadd.f32 %v1668_v41, %v682_v60  ;;  %v999_v60 = vsel %vm967_vm3, %v743_v14, -1e+30 }
 0x1ba   :  { %v1059_v15 = vsel %vm1000_vm6, %v999_v60, -inf }
 0x1bb   :  { %v734_v30 = vmax.f32 %v683_v38, 0.0 }
 0x1bd   :  { %v990_v20 = vsel %vm958_vm14, %v734_v30, -1e+30 }
 0x1be   :  { %v1041_v18 = vsel %vm1000_vm6, %v990_v20, -inf }
 0x1bf   :  { %v932_v3 = vpop.permute.xlu2 %931 }
 0x1c0   :  { %v685_v2 = vpop.f32.mrf.mxu2  ;;  %vm966_vm4 = vcmp.eq.s32.totalorder %v932_v3, 1 }
 0x1c1   :  { %v686_v36 = vadd.f32 %v1668_v41, %v685_v2  ;;  %v1042_v2 = vmax.f32 %v1794_v58, %v1041_v18 }
 0x1c3   :  { %v735_v44 = vmax.f32 %v686_v36, 0.0 }
 0x1c5   :  { %v991_v54 = vsel %vm959_vm13, %v735_v44, -1e+30 }
 0x1c6   :  { %v1043_v35 = vsel %vm1000_vm6, %v991_v54, -inf }
 0x1c8   :  { %v688_v27 = vpop.f32.mrf.mxu2 }
 0x1c9   :  { %v689_v31 = vadd.f32 %v1668_v41, %v688_v27 }
 0x1cb   :  { %v736_v39 = vmax.f32 %v689_v31, 0.0 }
 0x1cd   :  { %v992_v46 = vsel %vm960_vm5, %v736_v39, -1e+30 }
 0x1ce   :  { %v1045_v51 = vsel %vm1000_vm6, %v992_v46, -inf }
 0x1cf   :  { %v1046_v62 = vmax.f32 %v1038_v50, %v1045_v51  ;;  %v1044_v50 = vmax.f32 %v1801_v6, %v1043_v35 }
 0x1d0   :  { %v691_v49 = vpop.f32.mrf.mxu2 }
 0x1d1   :  { %v692_v57 = vadd.f32 %v1668_v41, %v691_v49 }
 0x1d3   :  { %v737_v37 = vmax.f32 %v692_v57, 0.0 }
 0x1d5   :  { %v993_v24 = vsel %vm961_vm11, %v737_v37, -1e+30 }
 0x1d6   :  { %v1047_v52 = vsel %vm1000_vm6, %v993_v24, -inf }
 0x1d7   :  { %v1048_v19 = vmax.f32 %v1040_v7, %v1047_v52 }
 0x1d8   :  { %v694_v29 = vpop.f32.mrf.mxu2 }
 0x1d9   :  { %v695_v47 = vadd.f32 %v1668_v41, %v694_v29 }
 0x1db   :  { %v738_v0 = vmax.f32 %v695_v47, 0.0 }
 0x1dd   :  { %v994_v45 = vsel %vm962_vm2, %v738_v0, -1e+30 }
 0x1de   :  { %v1049_v7 = vsel %vm1000_vm6, %v994_v45, -inf }
 0x1df   :  { %v1050_v29 = vmax.f32 %v1042_v2, %v1049_v7 }
 0x1e0   :  { %v697_v5 = vpop.f32.mrf.mxu2 }
 0x1e1   :  { %v698_v42 = vadd.f32 %v1668_v41, %v697_v5 }
 0x1e3   :  { %v739_v61 = vmax.f32 %v698_v42, 0.0 }
 0x1e5   :  { %v995_v1 = vsel %vm963_vm15, %v739_v61, -1e+30 }
 0x1e6   :  { %v1051_v23 = vsel %vm1000_vm6, %v995_v1, -inf }
 0x1e7   :  { %v1052_v27 = vmax.f32 %v1044_v50, %v1051_v23 }
 0x1e8   :  { %v700_v34 = vpop.f32.mrf.mxu2 }
 0x1e9   :  { %v701_v21 = vadd.f32 %v1668_v41, %v700_v34  ;;  %v1060_v22 = vmax.f32 %v1052_v27, %v1059_v15 }
 0x1eb   :  { %v740_v25 = vmax.f32 %v701_v21, 0.0 }
 0x1ed   :  { %v996_v13 = vsel %vm964_vm12, %v740_v25, -1e+30 }
 0x1ee   :  { %v1053_v59 = vsel %vm1000_vm6, %v996_v13, -inf }
 0x1ef   :  { %v1054_v17 = vmax.f32 %v1046_v62, %v1053_v59 }
 0x1f0   :  { %v703_v11 = vpop.f32.mrf.mxu2 }
 0x1f1   :  { %v704_v28 = vadd.f32 %v1668_v41, %v703_v11 }
 0x1f3   :  { %v741_v56 = vmax.f32 %v704_v28, 0.0 }
 0x1f5   :  { %v997_v33 = vsel %vm965_vm1, %v741_v56, -1e+30 }
 0x1f6   :  { %v1055_v8 = vsel %vm1000_vm6, %v997_v33, -inf }
 0x1f7   :  { %v1056_v9 = vmax.f32 %v1048_v19, %v1055_v8 }
 0x1f8   :  { %v706_v55 = vpop.f32.mrf.mxu2 }
 0x1f9   :  { %v1061_v63 = vmax.f32 %v1054_v17, %v1056_v9  ;;  %v707_v4 = vadd.f32 %v1668_v41, %v706_v55 }
 0x1fb   :  { %v742_v49 = vmax.f32 %v707_v4, 0.0 }
 0x1fd   :  { %v998_v16 = vsel %vm966_vm4, %v742_v49, -1e+30 }
 0x1fe   :  { %v1057_v5 = vsel %vm1000_vm6, %v998_v16, -inf }
 0x1ff   :  { %v1058_v6 = vmax.f32 %v1050_v29, %v1057_v5 }
 0x201   :  { %v1062_v32 = vmax.f32 %v1058_v6, %v1060_v22 }
 0x203   :  { %v1063_v26 = vmax.f32 %v1061_v63, %v1062_v32 }
 0x205   :  { %v1064_v41 = vrot.slane %v1063_v26, 4 }
 0x207   :  { %v1065_v31 = vmax.f32 %v1063_v26, %v1064_v41 }
 0x209   :  { %v1066_v57 = vrot.slane %v1065_v31, 2 }
 0x20b   :  { %v1067_v34 = vmax.f32 %v1065_v31, %v1066_v57 }
 0x20d   :  { %v1068_v21 = vrot.slane %v1067_v34, 1 }
 0x20f   :  { %v1069_v58 = vmax.f32 %v1067_v34, %v1068_v21 }
 0x211   :  { %1071 = vst.msk [vmem:[%s1840_s6] sm:$0x1] %vm1070_vm7, %v1069_v58 }

// kernel: graphsage_hgnnplus_forward.5
= control target key start
LH: loop header
LB: loop body
LE: loop exit
PB: predicated region body
PF: predicated region fallthrough
CT: control target
= control target key end

     0   :  { %v1138_v0 = vmov 0   ;;  %vm26_vm0 = vcmask 130048   ;;  %s1792_s3 = inlined_call_operand.vmem [shape: f32[256,1], index: 3, kind: input, shape index: {}]   ;;  %s1793_s1 = inlined_call_operand.vmem [shape: f32[256,16], index: 1, kind: input, shape index: {}, may-alias: {1,2}]   ;;  %s1794_s0 = inlined_call_operand.vmem [shape: bf16[256,256], index: 0, kind: input, shape index: {}]   ;;  %s1795_s2 = inlined_call_operand.vmem [shape: f32[256,16], index: 2, kind: input, shape index: {}, may-alias: {1,2}]   ;;  %s1796_s4 = inlined_call_operand.vmem [shape: f32[8,256], index: 4, kind: input, shape index: {}]   ;;  %s1797_s5 = inlined_call_operand.vmem [shape: f32[1,8,16], index: 5, kind: output, shape index: {0}]   ;;  %s1798_s6 = inlined_call_operand.vmem [shape: f32[1,8,16], index: 6, kind: output, shape index: {1}]  }
   0x1   :  { %1136 = vset.pattern.permute.xlu1 %v1138_v0  ;;  %1135 = vset.pattern.permute.xlu0 %v1138_v0  ;;  %v624_v1 = vld [vmem:[%s1792_s3 + $0x78] sm:$0xff]  ;;  %v623_v2 = vld [vmem:[%s1792_s3 + $0x70] sm:$0xff]  ;;  %v135_v9 = vld [vmem:[%s1793_s1 + $0x60] sm:$0xff] }
   0x2   :  { %v137_v3 = vld [vmem:[%s1793_s1 + $0x70] sm:$0xff]  ;;  %718 = vperm.xlu0 %1135, %v624_v1   ;;  %713 = vperm.xlu1 %1136, %v623_v2   ;;  %v138_v4 = vld [vmem:[%s1793_s1 + $0x78] sm:$0xff]  ;;  %v136_v10 = vld [vmem:[%s1793_s1 + $0x68] sm:$0xff] }
   0x3   :  { %v153_v5 = vld [vmem:[%s1793_s1 + $0xf0] sm:$0xff]  ;;  %v154_v6 = vld [vmem:[%s1793_s1 + $0xf8] sm:$0xff]  ;;  %v162_v7 = vpack.c.bf16 %v138_v4, %v137_v3  ;;  %v151_v11 = vld [vmem:[%s1793_s1 + $0xe0] sm:$0xff]  ;;  %1137 = vset.pattern.permute.xlu2 %v1138_v0  ;;  %v161_v13 = vpack.c.bf16 %v136_v10, %v135_v9 }
   0x4   :  { %v170_v8 = vpack.c.bf16 %v154_v6, %v153_v5  ;;  %v152_v12 = vld [vmem:[%s1793_s1 + $0xe8] sm:$0xff]  ;;  %v133_v15 = vld [vmem:[%s1793_s1 + $0x50] sm:$0xff]  ;;  %v134_v16 = vld [vmem:[%s1793_s1 + $0x58] sm:$0xff] }
   0x5   :  { %331 = vmatpush.bf16.msra.mxu0 %v162_v7  ;;  %1117 = vmatpush.bf16.msra.mxu2 %v162_v7  ;;  %v169_v14 = vpack.c.bf16 %v152_v12, %v151_v11  ;;  %v149_v17 = vld [vmem:[%s1793_s1 + $0xd0] sm:$0xff]  ;;  %v150_v18 = vld [vmem:[%s1793_s1 + $0xd8] sm:$0xff]  ;;  %v160_v21 = vpack.c.bf16 %v134_v16, %v133_v15  ;;  %v131_v23 = vld [vmem:[%s1793_s1 + $0x40] sm:$0xff] }
   0x6   :  { %420 = vmatpush.bf16.msra.mxu1 %v170_v8  ;;  %1125 = vmatpush.bf16.msra.mxu3 %v170_v8  ;;  %v640_v19 = vld [vmem:[%s1792_s3 + $0xf8] sm:$0xff]  ;;  %v639_v20 = vld [vmem:[%s1792_s3 + $0xf0] sm:$0xff]  ;;  %v168_v22 = vpack.c.bf16 %v150_v18, %v149_v17  ;;  %v132_v24 = vld [vmem:[%s1793_s1 + $0x48] sm:$0xff] }
   0x7   :  { %v147_v25 = vld [vmem:[%s1793_s1 + $0xc0] sm:$0xff]  ;;  %v148_v26 = vld [vmem:[%s1793_s1 + $0xc8] sm:$0xff]  ;;  %v159_v27 = vpack.c.bf16 %v132_v24, %v131_v23  ;;  %v129_v29 = vld [vmem:[%s1793_s1 + $0x30] sm:$0xff] }
   0x8   :  { %v167_v28 = vpack.c.bf16 %v148_v26, %v147_v25  ;;  %v130_v30 = vld [vmem:[%s1793_s1 + $0x38] sm:$0xff]  ;;  %v622_v31 = vld [vmem:[%s1792_s3 + $0x68] sm:$0xff]  ;;  %v145_v32 = vld [vmem:[%s1793_s1 + $0xb0] sm:$0xff] }
   0x9   :  { %332 = vmatpush.bf16.msra.mxu0 %v161_v13  ;;  %1118 = vmatpush.bf16.msra.mxu2 %v161_v13  ;;  %v146_v33 = vld [vmem:[%s1793_s1 + $0xb8] sm:$0xff]  ;;  %v637_v34 = vld [vmem:[%s1792_s3 + $0xe0] sm:$0xff]  ;;  %v158_v36 = vpack.c.bf16 %v130_v30, %v129_v29  ;;  %v128_v39 = vld [vmem:[%s1793_s1 + $0x28] sm:$0xff] }
   0xa   :  { %421 = vmatpush.bf16.msra.mxu1 %v169_v14  ;;  %1126 = vmatpush.bf16.msra.mxu3 %v169_v14  ;;  %v621_v35 = vld [vmem:[%s1792_s3 + $0x60] sm:$0xff]  ;;  %v166_v37 = vpack.c.bf16 %v146_v33, %v145_v32  ;;  %v144_v41 = vld [vmem:[%s1793_s1 + $0xa8] sm:$0xff]  ;;  %v125_v45 = vld [vmem:[%s1793_s1 + $0x10] sm:$0xff] }
   0xb   :  { %798 = vperm.xlu0 %1135, %v640_v19   ;;  %793 = vperm.xlu1 %1136, %v639_v20   ;;  %v127_v38 = vld [vmem:[%s1793_s1 + $0x20] sm:$0xff]  ;;  %v638_v42 = vld [vmem:[%s1792_s3 + $0xe8] sm:$0xff]  ;;  %v126_v46 = vld [vmem:[%s1793_s1 + $0x18] sm:$0xff] }
   0xc   :  { %708 = vperm.xlu2 %1137, %v622_v31   ;;  %v143_v40 = vld [vmem:[%s1793_s1 + $0xa0] sm:$0xff]  ;;  %v157_v43 = vpack.c.bf16 %v128_v39, %v127_v38  ;;  %v141_v47 = vld [vmem:[%s1793_s1 + $0x90] sm:$0xff]  ;;  %v142_v48 = vld [vmem:[%s1793_s1 + $0x98] sm:$0xff]  ;;  %v156_v51 = vpack.c.bf16 %v126_v46, %v125_v45 }
   0xd   :  { %333 = vmatpush.bf16.msra.mxu0 %v160_v21  ;;  %1119 = vmatpush.bf16.msra.mxu2 %v160_v21  ;;  %v165_v44 = vpack.c.bf16 %v144_v41, %v143_v40  ;;  %v636_v49 = vld [vmem:[%s1792_s3 + $0xd8] sm:$0xff]  ;;  %v619_v50 = vld [vmem:[%s1792_s3 + $0x50] sm:$0xff]  ;;  %v164_v52 = vpack.c.bf16 %v142_v48, %v141_v47  ;;  %v123_v53 = vld [vmem:[%s1793_s1] sm:$0xff] }
   0xe   :  { %422 = vmatpush.bf16.msra.mxu1 %v168_v22  ;;  %1127 = vmatpush.bf16.msra.mxu3 %v168_v22  ;;  %v124_v54 = vld [vmem:[%s1793_s1 + $0x8] sm:$0xff]  ;;  %v139_v55 = vld [vmem:[%s1793_s1 + $0x80] sm:$0xff]  ;;  %v620_v59 = vld [vmem:[%s1792_s3 + $0x58] sm:$0xff] }
   0xf   :  { %v140_v56 = vld [vmem:[%s1793_s1 + $0x88] sm:$0xff]  ;;  %v959_v57 = vld [vmem:[%s1794_s0] sm:$0xf]  ;;  %v155_v60 = vpack.c.bf16 %v124_v54, %v123_v53  ;;  %v1085_v63 = vld [vmem:[%s1794_s0 + $0x4] sm:$0xf] }
  0x10   :  { %v1086_v58 = vld [vmem:[%s1794_s0 + $0x4] sm:$0xf0]  ;;  %v1039_v61 = vld [vmem:[%s1794_s0 + $0xa0] sm:$0xf]  ;;  %v163_v0 = vpack.c.bf16 %v140_v56, %v139_v55  ;;  %v961_v1 = vld [vmem:[%s1794_s0 + $0x8] sm:$0xf0] }
  0x11   :  { %334 = vmatpush.bf16.msra.mxu0 %v159_v27  ;;  %1120 = vmatpush.bf16.msra.mxu2 %v159_v27  ;;  %v1106_v62 = vld [vmem:[%s1794_s0 + $0xa4] sm:$0xf0]  ;;  %v1105_v2 = vld [vmem:[%s1794_s0 + $0xa4] sm:$0xf]  ;;  %v1041_v3 = vld [vmem:[%s1794_s0 + $0xa8] sm:$0xf0]  ;;  %v960_v6 = vor.u32 %v1086_v58, %v959_v57  ;;  %v964_v8 = vor.u32 %v1085_v63, %v961_v1 }
  0x12   :  { %423 = vmatpush.bf16.msra.mxu1 %v167_v28  ;;  %1128 = vmatpush.bf16.msra.mxu3 %v167_v28  ;;  %v634_v4 = vld [vmem:[%s1792_s3 + $0xc8] sm:$0xff]  ;;  %v1040_v7 = vor.u32 %v1106_v62, %v1039_v61  ;;  %v1044_v9 = vor.u32 %v1105_v2, %v1041_v3  ;;  %v635_v10 = vld [vmem:[%s1792_s3 + $0xd0] sm:$0xff]  ;;  %v633_v11 = vld [vmem:[%s1792_s3 + $0xc0] sm:$0xff] }
  0x13   :  { %783 = vperm.xlu1 %1136, %v637_v34   ;;  %703 = vperm.xlu0 %1135, %v621_v35   ;;  %v618_v5 = vld [vmem:[%s1792_s3 + $0x48] sm:$0xff]  ;;  %v616_v12 = vld [vmem:[%s1792_s3 + $0x38] sm:$0xff]  ;;  %v967_v13 = vld [vmem:[%s1794_s0 + $0x10] sm:$0xf] }
  0x14   :  { %788 = vperm.xlu2 %1137, %v638_v42   ;;  %v1088_v14 = vld [vmem:[%s1794_s0 + $0x14] sm:$0xf0]  ;;  %v617_v15 = vld [vmem:[%s1792_s3 + $0x40] sm:$0xff]  ;;  %v1047_v16 = vld [vmem:[%s1794_s0 + $0xb0] sm:$0xf] }
  0x15   :  { %335 = vmatpush.bf16.msra.mxu0 %v158_v36  ;;  %1121 = vmatpush.bf16.msra.mxu2 %v158_v36  ;;  %v1108_v17 = vld [vmem:[%s1794_s0 + $0xb4] sm:$0xf0]  ;;  %v1087_v18 = vld [vmem:[%s1794_s0 + $0x14] sm:$0xf]  ;;  %v969_v19 = vld [vmem:[%s1794_s0 + $0x18] sm:$0xf0]  ;;  %v968_v24 = vor.u32 %v1088_v14, %v967_v13 }
  0x16   :  { %424 = vmatpush.bf16.msra.mxu1 %v166_v37  ;;  %1129 = vmatpush.bf16.msra.mxu3 %v166_v37  ;;  %v1107_v20 = vld [vmem:[%s1794_s0 + $0xb4] sm:$0xf]  ;;  %v1049_v21 = vld [vmem:[%s1794_s0 + $0xb8] sm:$0xf0]  ;;  %v1048_v25 = vor.u32 %v1108_v17, %v1047_v16  ;;  %v972_v26 = vor.u32 %v1087_v18, %v969_v19  ;;  %v630_v29 = vld [vmem:[%s1792_s3 + $0xa8] sm:$0xff] }
  0x17   :  { %v631_v22 = vld [vmem:[%s1792_s3 + $0xb0] sm:$0xff]  ;;  %v1052_v27 = vor.u32 %v1107_v20, %v1049_v21  ;;  %v632_v28 = vld [vmem:[%s1792_s3 + $0xb8] sm:$0xff]  ;;  %v613_v30 = vld [vmem:[%s1792_s3 + $0x20] sm:$0xff] }
  0x18   :  { %v615_v23 = vld [vmem:[%s1792_s3 + $0x30] sm:$0xff]  ;;  %v975_v31 = vld [vmem:[%s1794_s0 + $0x20] sm:$0xf]  ;;  %v1090_v32 = vld [vmem:[%s1794_s0 + $0x24] sm:$0xf0] }
  0x19   :  { %336 = vmatpush.bf16.msra.mxu0 %v157_v43  ;;  %1122 = vmatpush.bf16.msra.mxu2 %v157_v43  ;;  %v614_v33 = vld [vmem:[%s1792_s3 + $0x28] sm:$0xff]  ;;  %v1055_v34 = vld [vmem:[%s1794_s0 + $0xc0] sm:$0xf]  ;;  %v1089_v36 = vld [vmem:[%s1794_s0 + $0x24] sm:$0xf]  ;;  %v976_v42 = vor.u32 %v1090_v32, %v975_v31 }
  0x1a   :  { %425 = vmatpush.bf16.msra.mxu1 %v165_v44  ;;  %1130 = vmatpush.bf16.msra.mxu3 %v165_v44  ;;  %v1110_v35 = vld [vmem:[%s1794_s0 + $0xc4] sm:$0xf0]  ;;  %v977_v37 = vld [vmem:[%s1794_s0 + $0x28] sm:$0xf0]  ;;  %v1109_v38 = vld [vmem:[%s1794_s0 + $0xc4] sm:$0xf] }
  0x1b   :  { %778 = vperm.xlu0 %1135, %v636_v49   ;;  %693 = vperm.xlu1 %1136, %v619_v50   ;;  %v1057_v39 = vld [vmem:[%s1794_s0 + $0xc8] sm:$0xf0]  ;;  %v628_v40 = vld [vmem:[%s1792_s3 + $0x98] sm:$0xff]  ;;  %v1056_v43 = vor.u32 %v1110_v35, %v1055_v34  ;;  %v980_v44 = vor.u32 %v1089_v36, %v977_v37  ;;  %v629_v46 = vld [vmem:[%s1792_s3 + $0xa0] sm:$0xff] }
  0x1c   :  { %698 = vperm.xlu2 %1137, %v620_v59   ;;  %v612_v41 = vld [vmem:[%s1792_s3 + $0x18] sm:$0xff]  ;;  %v1060_v45 = vor.u32 %v1109_v38, %v1057_v39  ;;  %v627_v47 = vld [vmem:[%s1792_s3 + $0x90] sm:$0xff]  ;;  %v610_v48 = vld [vmem:[%s1792_s3 + $0x8] sm:$0xff] }
  0x1d   :  { %337 = vmatpush.bf16.msra.mxu0 %v156_v51  ;;  %1123 = vmatpush.bf16.msra.mxu2 %v156_v51  ;;  %v983_v49 = vld [vmem:[%s1794_s0 + $0x30] sm:$0xf]  ;;  %v1092_v50 = vld [vmem:[%s1794_s0 + $0x34] sm:$0xf0]  ;;  %v1091_v54 = vld [vmem:[%s1794_s0 + $0x34] sm:$0xf] }
  0x1e   :  { %426 = vmatpush.bf16.msra.mxu1 %v164_v52  ;;  %1131 = vmatpush.bf16.msra.mxu3 %v164_v52  ;;  %v611_v51 = vld [vmem:[%s1792_s3 + $0x10] sm:$0xff]  ;;  %v1112_v53 = vld [vmem:[%s1794_s0 + $0xd4] sm:$0xf0]  ;;  %v985_v55 = vld [vmem:[%s1794_s0 + $0x38] sm:$0xf0]  ;;  %v984_v59 = vor.u32 %v1092_v50, %v983_v49 }
  0x1f   :  { %v1063_v52 = vld [vmem:[%s1794_s0 + $0xd0] sm:$0xf]  ;;  %v1111_v56 = vld [vmem:[%s1794_s0 + $0xd4] sm:$0xf]  ;;  %v1065_v57 = vld [vmem:[%s1794_s0 + $0xd8] sm:$0xf0]  ;;  %v988_v61 = vor.u32 %v1091_v54, %v985_v55 }
  0x20   :  { %v609_v58 = vld [vmem:[%s1792_s3] sm:$0xff]  ;;  %v1068_v62 = vor.u32 %v1111_v56, %v1065_v57  ;;  %v1114_v2 = vld [vmem:[%s1794_s0 + $0xe4] sm:$0xf0]  ;;  %v1096_v13 = vld [vmem:[%s1794_s0 + $0x54] sm:$0xf0] }
  0x21   :  { %338 = vmatpush.bf16.msra.mxu0 %v155_v60  ;;  %1124 = vmatpush.bf16.msra.mxu2 %v155_v60  ;;  %v1064_v60 = vor.u32 %v1112_v53, %v1063_v52  ;;  %v991_v63 = vld [vmem:[%s1794_s0 + $0x40] sm:$0xf]  ;;  %v1093_v3 = vld [vmem:[%s1794_s0 + $0x44] sm:$0xf]  ;;  %v1079_v14 = vld [vmem:[%s1794_s0 + $0xf0] sm:$0xf] }
  0x22   :  { %427 = vmatpush.bf16.msra.mxu1 %v163_v0  ;;  %1132 = vmatpush.bf16.msra.mxu3 %v163_v0  ;;  %v1094_v0 = vld [vmem:[%s1794_s0 + $0x44] sm:$0xf0]  ;;  %v1071_v1 = vld [vmem:[%s1794_s0 + $0xe0] sm:$0xf]  ;;  %v1095_v16 = vld [vmem:[%s1794_s0 + $0x54] sm:$0xf] }
  0x23   :  { %768 = vperm.xlu1 %1136, %v634_v4   ;;  %688 = vperm.xlu0 %1135, %v618_v5   ;;  %v993_v4 = vld [vmem:[%s1794_s0 + $0x48] sm:$0xf0]  ;;  %v1113_v5 = vld [vmem:[%s1794_s0 + $0xe4] sm:$0xf]  ;;  %v1001_v17 = vld [vmem:[%s1794_s0 + $0x58] sm:$0xf0] }
  0x24   :  { %339 = vmatmul.bf16.vlgmr.msra.gmra.mxu0 %v960_v6  ;;  %389 = vmatmul.bf16.vlgmr.msra.gmra.mxu2 %v1040_v7  ;;  %v1073_v6 = vld [vmem:[%s1794_s0 + $0xe8] sm:$0xf0]  ;;  %v992_v7 = vor.u32 %v1094_v0, %v991_v63  ;;  %v1115_v18 = vld [vmem:[%s1794_s0 + $0xf4] sm:$0xf]  ;;  %v1081_v19 = vld [vmem:[%s1794_s0 + $0xf8] sm:$0xf0] }
  0x25   :  { %428 = vmatmul.bf16.vlgmr.msra.gmra.mxu1 %v964_v8  ;;  %478 = vmatmul.bf16.vlgmr.msra.gmra.mxu3 %v1044_v9  ;;  %v1072_v8 = vor.u32 %v1114_v2, %v1071_v1  ;;  %v996_v9 = vor.u32 %v1093_v3, %v993_v4  ;;  %v626_v31 = vld [vmem:[%s1792_s3 + $0x88] sm:$0xff]  ;;  %v1015_v32 = vld [vmem:[%s1794_s0 + $0x70] sm:$0xf]  ;;  %v1099_v34 = vld [vmem:[%s1794_s0 + $0x74] sm:$0xf] }
  0x26   :  { %773 = vperm.xlu2 %1137, %v635_v10   ;;  %v1076_v10 = vor.u32 %v1113_v5, %v1073_v6  ;;  %v1017_v35 = vld [vmem:[%s1794_s0 + $0x78] sm:$0xf0]  ;;  %v1023_v38 = vld [vmem:[%s1794_s0 + $0x80] sm:$0xf]  ;;  %v1102_v39 = vld [vmem:[%s1794_s0 + $0x84] sm:$0xf0] }
  0x27   :  { %v1020_v37 = vor.u32 %v1099_v34, %v1017_v35 }
  0x2b   :  { %763 = vperm.xlu0 %1135, %v633_v11   ;;  %678 = vperm.xlu1 %1136, %v616_v12   ;;  %v625_v11 = vld [vmem:[%s1792_s3 + $0x80] sm:$0xff]  ;;  %v999_v12 = vld [vmem:[%s1794_s0 + $0x50] sm:$0xf] }
  0x2c   :  { %v1000_v20 = vor.u32 %v1096_v13, %v999_v12 }
  0x2e   :  { %683 = vperm.xlu2 %1137, %v617_v15   ;;  %v1116_v15 = vld [vmem:[%s1794_s0 + $0xf4] sm:$0xf0] }
  0x2f   :  { %v1080_v21 = vor.u32 %v1116_v15, %v1079_v14 }
  0x33   :  { %753 = vperm.xlu1 %1136, %v631_v22   ;;  %673 = vperm.xlu0 %1135, %v615_v23   ;;  %v1004_v22 = vor.u32 %v1095_v16, %v1001_v17  ;;  %v1084_v23 = vor.u32 %v1115_v18, %v1081_v19 }
  0x34   :  { %344 = vmatmul.bf16.gmra.mxu0 %v968_v24  ;;  %394 = vmatmul.bf16.gmra.mxu2 %v1048_v25  ;;  %v1007_v24 = vld [vmem:[%s1794_s0 + $0x60] sm:$0xf]  ;;  %v1098_v25 = vld [vmem:[%s1794_s0 + $0x64] sm:$0xf0] }
  0x35   :  { %433 = vmatmul.bf16.gmra.mxu1 %v972_v26  ;;  %483 = vmatmul.bf16.gmra.mxu3 %v1052_v27  ;;  %v1139_v26 = vmov 0.0   ;;  %v1097_v27 = vld [vmem:[%s1794_s0 + $0x64] sm:$0xf] }
  0x36   :  { %758 = vperm.xlu2 %1137, %v632_v28   ;;  %27 = vst.msk [vmem:[#allocation2] sm:$0xff] %vm26_vm0, %v1139_v26  ;;  %v1009_v28 = vld [vmem:[%s1794_s0 + $0x68] sm:$0xf0] }
  0x37   :  { %28 = vst.msk [vmem:[#allocation2 + $0x8] sm:$0xff] %vm26_vm0, %v1139_v26 }
  0x38   :  { %29 = vst.msk [vmem:[#allocation2 + $0x10] sm:$0xff] %vm26_vm0, %v1139_v26 }
  0x39   :  { %30 = vst.msk [vmem:[#allocation2 + $0x18] sm:$0xff] %vm26_vm0, %v1139_v26 }
  0x3a   :  { %31 = vst.msk [vmem:[#allocation2 + $0x20] sm:$0xff] %vm26_vm0, %v1139_v26 }
  0x3b   :  { %748 = vperm.xlu0 %1135, %v630_v29   ;;  %663 = vperm.xlu1 %1136, %v613_v30   ;;  %v1008_v29 = vor.u32 %v1098_v25, %v1007_v24  ;;  %v1012_v30 = vor.u32 %v1097_v27, %v1009_v28  ;;  %32 = vst.msk [vmem:[#allocation2 + $0x28] sm:$0xff] %vm26_vm0, %v1139_v26 }
  0x3c   :  { %33 = vst.msk [vmem:[#allocation2 + $0x30] sm:$0xff] %vm26_vm0, %v1139_v26 }
  0x3d   :  { %34 = vst.msk [vmem:[#allocation2 + $0x38] sm:$0xff] %vm26_vm0, %v1139_v26 }
  0x3e   :  { %668 = vperm.xlu2 %1137, %v614_v33   ;;  %35 = vst.msk [vmem:[#allocation2 + $0x40] sm:$0xff] %vm26_vm0, %v1139_v26  ;;  %v1100_v33 = vld [vmem:[%s1794_s0 + $0x74] sm:$0xf0]  ;;  %v60_v54 = vld [vmem:[#allocation2 + $0x8] sm:$0xff] }
  0x3f   :  { %36 = vst.msk [vmem:[#allocation2 + $0x48] sm:$0xff] %vm26_vm0, %v1139_v26  ;;  %v1016_v36 = vor.u32 %v1100_v33, %v1015_v32  ;;  %v61_v6 = vld [vmem:[#allocation2 + $0x10] sm:$0xff] }
  0x40   :  { %37 = vst.msk [vmem:[#allocation2 + $0x50] sm:$0xff] %vm26_vm0, %v1139_v26  ;;  %v62_v16 = vld [vmem:[#allocation2 + $0x18] sm:$0xff] }
  0x41   :  { %38 = vst.msk [vmem:[#allocation2 + $0x58] sm:$0xff] %vm26_vm0, %v1139_v26 }
  0x42   :  { %39 = vst.msk [vmem:[#allocation2 + $0x60] sm:$0xff] %vm26_vm0, %v1139_v26 }
  0x43   :  { %738 = vperm.xlu1 %1136, %v628_v40   ;;  %658 = vperm.xlu0 %1135, %v612_v41   ;;  %40 = vst.msk [vmem:[#allocation2 + $0x68] sm:$0xff] %vm26_vm0, %v1139_v26  ;;  %v1101_v40 = vld [vmem:[%s1794_s0 + $0x84] sm:$0xf]  ;;  %v1025_v41 = vld [vmem:[%s1794_s0 + $0x88] sm:$0xf0] }
  0x44   :  { %349 = vmatmul.bf16.gmra.mxu0 %v976_v42  ;;  %399 = vmatmul.bf16.gmra.mxu2 %v1056_v43  ;;  %41 = vst.msk [vmem:[#allocation2 + $0x70] sm:$0xff] %vm26_vm0, %v1139_v26  ;;  %v1024_v42 = vor.u32 %v1102_v39, %v1023_v38 }
  0x45   :  { %438 = vmatmul.bf16.gmra.mxu1 %v980_v44  ;;  %488 = vmatmul.bf16.gmra.mxu3 %v1060_v45  ;;  %42 = vst.msk [vmem:[#allocation2 + $0x78] sm:$0xff] %vm26_vm0, %v1139_v26  ;;  %v1028_v44 = vor.u32 %v1101_v40, %v1025_v41  ;;  %v59_v45 = vld [vmem:[#allocation2] sm:$0xff]  ;;  %v850_v41 = vld [vmem:[%s1795_s2 + $0x78] sm:$0xff] }
  0x46   :  { %743 = vperm.xlu2 %1137, %v629_v46   ;;  %43 = vst.msk [vmem:[#allocation2 + $0x80] sm:$0xff] %vm26_vm0, %v1139_v26  ;;  %867 = vmatpush.msrb.mxu2 %v850_v41  ;;  %v852_v41 = vld [vmem:[%s1795_s2 + $0x88] sm:$0xff] }
  0x47   :  { %44 = vst.msk [vmem:[#allocation2 + $0x88] sm:$0xff] %vm26_vm0, %v1139_v26 }
  0x48   :  { %45 = vst.msk [vmem:[#allocation2 + $0x90] sm:$0xff] %vm26_vm0, %v1139_v26 }
  0x49   :  { %46 = vst.msk [vmem:[#allocation2 + $0x98] sm:$0xff] %vm26_vm0, %v1139_v26 }
  0x4a   :  { %47 = vst.msk [vmem:[#allocation2 + $0xa0] sm:$0xff] %vm26_vm0, %v1139_v26 }
  0x4b   :  { %733 = vperm.xlu0 %1135, %v627_v47   ;;  %648 = vperm.xlu1 %1136, %v610_v48   ;;  %48 = vst.msk [vmem:[#allocation2 + $0xa8] sm:$0xff] %vm26_vm0, %v1139_v26 }
  0x4c   :  { %49 = vst.msk [vmem:[#allocation2 + $0xb0] sm:$0xff] %vm26_vm0, %v1139_v26 }
  0x4d   :  { %50 = vst.msk [vmem:[#allocation2 + $0xb8] sm:$0xff] %vm26_vm0, %v1139_v26 }
  0x4e   :  { %653 = vperm.xlu2 %1137, %v611_v51   ;;  %51 = vst.msk [vmem:[#allocation2 + $0xc0] sm:$0xff] %vm26_vm0, %v1139_v26 }
  0x4f   :  { %52 = vst.msk [vmem:[#allocation2 + $0xc8] sm:$0xff] %vm26_vm0, %v1139_v26 }
  0x50   :  { %53 = vst.msk [vmem:[#allocation2 + $0xd0] sm:$0xff] %vm26_vm0, %v1139_v26 }
  0x51   :  { %54 = vst.msk [vmem:[#allocation2 + $0xd8] sm:$0xff] %vm26_vm0, %v1139_v26  ;;  %v79_v50 = vld [vmem:[#allocation2 + $0xa0] sm:$0xff] }
  0x52   :  { %55 = vst.msk [vmem:[#allocation2 + $0xe0] sm:$0xff] %vm26_vm0, %v1139_v26  ;;  %v80_v0 = vld [vmem:[#allocation2 + $0xa8] sm:$0xff] }
  0x53   :  { %643 = vperm.xlu0 %1135, %v609_v58   ;;  %723 = vperm.xlu1 %1136, %v625_v11   ;;  %56 = vst.msk [vmem:[#allocation2 + $0xe8] sm:$0xff] %vm26_vm0, %v1139_v26  ;;  %v81_v12 = vld [vmem:[#allocation2 + $0xb0] sm:$0xff] }
  0x54   :  { %354 = vmatmul.bf16.gmra.mxu0 %v984_v59  ;;  %404 = vmatmul.bf16.gmra.mxu2 %v1064_v60  ;;  %57 = vst.msk [vmem:[#allocation2 + $0xf0] sm:$0xff] %vm26_vm0, %v1139_v26  ;;  %v1031_v59 = vld [vmem:[%s1794_s0 + $0x90] sm:$0xf]  ;;  %v1104_v60 = vld [vmem:[%s1794_s0 + $0x94] sm:$0xf0] }
  0x55   :  { %443 = vmatmul.bf16.gmra.mxu1 %v988_v61  ;;  %493 = vmatmul.bf16.gmra.mxu3 %v1068_v62  ;;  %58 = vst.msk [vmem:[#allocation2 + $0xf8] sm:$0xff] %vm26_vm0, %v1139_v26  ;;  %v1103_v61 = vld [vmem:[%s1794_s0 + $0x94] sm:$0xf]  ;;  %v1033_v62 = vld [vmem:[%s1794_s0 + $0x98] sm:$0xf0]  ;;  %v1032_v2 = vor.u32 %v1104_v60, %v1031_v59  ;;  %v63_v26 = vld [vmem:[#allocation2 + $0x20] sm:$0xff] }
  0x56   :  { %728 = vperm.xlu2 %1137, %v626_v31   ;;  %v1036_v5 = vor.u32 %v1103_v61, %v1033_v62  ;;  %v83_v32 = vld [vmem:[#allocation2 + $0xc0] sm:$0xff]  ;;  %v862_v59 = vld [vmem:[%s1795_s2 + $0xd8] sm:$0xff] }
  0x57   :  { %v85_v60 = vld [vmem:[#allocation2 + $0xd0] sm:$0xff] }
  0x64   :  { %359 = vmatmul.bf16.gmra.mxu0 %v992_v7  ;;  %409 = vmatmul.bf16.gmra.mxu2 %v1072_v8 }
  0x65   :  { %448 = vmatmul.bf16.gmra.mxu1 %v996_v9  ;;  %498 = vmatmul.bf16.gmra.mxu3 %v1076_v10 }
  0x74   :  { %364 = vmatmul.bf16.gmra.mxu0 %v1000_v20  ;;  %414 = vmatmul.bf16.gmra.mxu2 %v1080_v21 }
  0x75   :  { %453 = vmatmul.bf16.gmra.mxu1 %v1004_v22  ;;  %503 = vmatmul.bf16.gmra.mxu3 %v1084_v23  ;;  %v82_v22 = vld [vmem:[#allocation2 + $0xb8] sm:$0xff] }
  0x84   :  { %369 = vmatmul.bf16.gmra.mxu0 %v1008_v29 }
  0x85   :  { %458 = vmatmul.bf16.gmra.mxu1 %v1012_v30 }
  0x94   :  { %374 = vmatmul.bf16.gmra.mxu0 %v1016_v36  ;;  %v64_v36 = vld [vmem:[#allocation2 + $0x28] sm:$0xff] }
  0x95   :  { %463 = vmatmul.bf16.gmra.mxu1 %v1020_v37 }
  0xa1   :  { %v340_v43 = vpop.f32.mrf.mxu0 }
  0xa2   :  { %v429_v46 = vpop.f32.mrf.mxu1 }
  0xa3   :  { %v430_v47 = vadd.f32 %v429_v46, %v340_v43  ;;  %v84_v46 = vld [vmem:[#allocation2 + $0xc8] sm:$0xff] }
  0xa4   :  { %379 = vmatmul.bf16.gmra.mxu0 %v1024_v42  ;;  %v866_v42 = vld [vmem:[%s1795_s2 + $0xf8] sm:$0xff] }
  0xa5   :  { %v509_v48 = vadd.f32 %v430_v47, %v59_v45  ;;  %468 = vmatmul.bf16.gmra.mxu1 %v1028_v44  ;;  %887 = vmatpush.msrb.mxu3 %v866_v42  ;;  %v849_v44 = vld [vmem:[%s1795_s2 + $0x70] sm:$0xff] }
  0xa6   :  { %v865_v45 = vld [vmem:[%s1795_s2 + $0xf0] sm:$0xff]  ;;  %868 = vmatpush.msrb.mxu2 %v849_v44  ;;  %v851_v44 = vld [vmem:[%s1795_s2 + $0x80] sm:$0xff] }
  0xa7   :  { %542 = vst.msk [vmem:[#allocation2] sm:$0xff] %vm26_vm0, %v509_v48  ;;  %v390_v49 = vpop.f32.mrf.mxu2  ;;  %888 = vmatpush.msrb.mxu3 %v865_v45 }
  0xa8   :  { %v479_v51 = vpop.f32.mrf.mxu3 }
  0xa9   :  { %v480_v52 = vadd.f32 %v479_v51, %v390_v49  ;;  %v342_v53 = vpop.f32.mrf.mxu0 }
  0xaa   :  { %v431_v55 = vpop.f32.mrf.mxu1 }
  0xab   :  { %v529_v56 = vadd.f32 %v480_v52, %v79_v50  ;;  %v432_v57 = vadd.f32 %v431_v55, %v342_v53  ;;  %v65_v50 = vld [vmem:[#allocation2 + $0x30] sm:$0xff] }
  0xad   :  { %562 = vst.msk [vmem:[#allocation2 + $0xa0] sm:$0xff] %vm26_vm0, %v529_v56  ;;  %v510_v58 = vadd.f32 %v432_v57, %v60_v54  ;;  %v864_v54 = vld [vmem:[%s1795_s2 + $0xe8] sm:$0xff]  ;;  %v863_v56 = vld [vmem:[%s1795_s2 + $0xe0] sm:$0xff] }
  0xae   :  { %889 = vmatpush.msrb.mxu3 %v864_v54 }
  0xaf   :  { %543 = vst.msk [vmem:[#allocation2 + $0x8] sm:$0xff] %vm26_vm0, %v510_v58  ;;  %v392_v63 = vpop.f32.mrf.mxu2  ;;  %v848_v58 = vld [vmem:[%s1795_s2 + $0x68] sm:$0xff] }
  0xb0   :  { %v481_v1 = vpop.f32.mrf.mxu3  ;;  %890 = vmatpush.msrb.mxu3 %v863_v56  ;;  %869 = vmatpush.msrb.mxu2 %v848_v58 }
  0xb1   :  { %v482_v3 = vadd.f32 %v481_v1, %v392_v63  ;;  %v345_v4 = vpop.f32.mrf.mxu0  ;;  %v1631_v1 = vpop.permute.xlu0 %718 }
  0xb2   :  { %v434_v7 = vpop.f32.mrf.mxu1  ;;  %891 = vmatpush.msrb.mxu3 %v862_v59 }
  0xb3   :  { %v530_v8 = vadd.f32 %v482_v3, %v80_v0  ;;  %v435_v9 = vadd.f32 %v434_v7, %v345_v4  ;;  %v861_v0 = vld [vmem:[%s1795_s2 + $0xd0] sm:$0xff]  ;;  %v1636_v7 = vpop.permute.xlu2 %708 }
  0xb4   :  { %384 = vmatmul.bf16.gmra.mxu0 %v1032_v2  ;;  %v66_v2 = vld [vmem:[#allocation2 + $0x38] sm:$0xff]  ;;  %892 = vmatpush.msrb.mxu3 %v861_v0 }
  0xb5   :  { %563 = vst.msk [vmem:[#allocation2 + $0xa8] sm:$0xff] %vm26_vm0, %v530_v8  ;;  %v511_v10 = vadd.f32 %v435_v9, %v61_v6  ;;  %473 = vmatmul.bf16.gmra.mxu1 %v1036_v5  ;;  %v860_v6 = vld [vmem:[%s1795_s2 + $0xc8] sm:$0xff]  ;;  %v859_v9 = vld [vmem:[%s1795_s2 + $0xc0] sm:$0xff] }
  0xb6   :  { %893 = vmatpush.msrb.mxu3 %v860_v6 }
  0xb7   :  { %544 = vst.msk [vmem:[#allocation2 + $0x10] sm:$0xff] %vm26_vm0, %v511_v10  ;;  %v395_v11 = vpop.f32.mrf.mxu2 }
  0xb8   :  { %v484_v13 = vpop.f32.mrf.mxu3  ;;  %894 = vmatpush.msrb.mxu3 %v859_v9 }
  0xb9   :  { %v485_v14 = vadd.f32 %v484_v13, %v395_v11  ;;  %v347_v15 = vpop.f32.mrf.mxu0  ;;  %v847_v11 = vld [vmem:[%s1795_s2 + $0x60] sm:$0xff]  ;;  %v86_v13 = vld [vmem:[#allocation2 + $0xd8] sm:$0xff] }
  0xba   :  { %v436_v17 = vpop.f32.mrf.mxu1  ;;  %870 = vmatpush.msrb.mxu2 %v847_v11 }
  0xbb   :  { %v531_v18 = vadd.f32 %v485_v14, %v81_v12  ;;  %v437_v19 = vadd.f32 %v436_v17, %v347_v15  ;;  %v858_v12 = vld [vmem:[%s1795_s2 + $0xb8] sm:$0xff]  ;;  %v857_v17 = vld [vmem:[%s1795_s2 + $0xb0] sm:$0xff] }
  0xbc   :  { %895 = vmatpush.msrb.mxu3 %v858_v12  ;;  %v840_v12 = vld [vmem:[%s1795_s2 + $0x28] sm:$0xff] }
  0xbd   :  { %564 = vst.msk [vmem:[#allocation2 + $0xb0] sm:$0xff] %vm26_vm0, %v531_v18  ;;  %v512_v20 = vadd.f32 %v437_v19, %v62_v16  ;;  %v1652_v18 = vpop.permute.xlu1 %713  ;;  %v67_v19 = vld [vmem:[#allocation2 + $0x40] sm:$0xff] }
  0xbe   :  { %896 = vmatpush.msrb.mxu3 %v857_v17 }
  0xbf   :  { %545 = vst.msk [vmem:[#allocation2 + $0x18] sm:$0xff] %vm26_vm0, %v512_v20  ;;  %v397_v21 = vpop.f32.mrf.mxu2 }
  0xc0   :  { %v486_v23 = vpop.f32.mrf.mxu3 }
  0xc1   :  { %v487_v24 = vadd.f32 %v486_v23, %v397_v21  ;;  %v350_v25 = vpop.f32.mrf.mxu0  ;;  %v856_v23 = vld [vmem:[%s1795_s2 + $0xa8] sm:$0xff] }
  0xc2   :  { %v439_v27 = vpop.f32.mrf.mxu1  ;;  %897 = vmatpush.msrb.mxu3 %v856_v23  ;;  %v71_v23 = vld [vmem:[#allocation2 + $0x60] sm:$0xff] }
  0xc3   :  { %v532_v28 = vadd.f32 %v487_v24, %v82_v22  ;;  %v440_v29 = vadd.f32 %v439_v27, %v350_v25  ;;  %v1657_v24 = vpop.permute.xlu0 %798  ;;  %v855_v27 = vld [vmem:[%s1795_s2 + $0xa0] sm:$0xff] }
  0xc4   :  { %898 = vmatpush.msrb.mxu3 %v855_v27 }
  0xc5   :  { %565 = vst.msk [vmem:[#allocation2 + $0xb8] sm:$0xff] %vm26_vm0, %v532_v28  ;;  %v513_v30 = vadd.f32 %v440_v29, %v63_v26  ;;  %v846_v26 = vld [vmem:[%s1795_s2 + $0x58] sm:$0xff]  ;;  %v1666_v28 = vpop.permute.xlu2 %788  ;;  %v1681_v42 = vpop.permute.xlu1 %793 }
  0xc6   :  { %871 = vmatpush.msrb.mxu2 %v846_v26 }
  0xc7   :  { %546 = vst.msk [vmem:[#allocation2 + $0x20] sm:$0xff] %vm26_vm0, %v513_v30  ;;  %v400_v31 = vpop.f32.mrf.mxu2  ;;  %v845_v30 = vld [vmem:[%s1795_s2 + $0x50] sm:$0xff] }
  0xc8   :  { %v489_v33 = vpop.f32.mrf.mxu3  ;;  %872 = vmatpush.msrb.mxu2 %v845_v30 }
  0xc9   :  { %v490_v34 = vadd.f32 %v489_v33, %v400_v31  ;;  %v352_v35 = vpop.f32.mrf.mxu0  ;;  %v854_v31 = vld [vmem:[%s1795_s2 + $0x98] sm:$0xff] }
  0xca   :  { %v441_v37 = vpop.f32.mrf.mxu1  ;;  %899 = vmatpush.msrb.mxu3 %v854_v31 }
  0xcb   :  { %v533_v38 = vadd.f32 %v490_v34, %v83_v32  ;;  %v442_v39 = vadd.f32 %v441_v37, %v352_v35  ;;  %v87_v32 = vld [vmem:[#allocation2 + $0xe0] sm:$0xff]  ;;  %v68_v37 = vld [vmem:[#allocation2 + $0x48] sm:$0xff]  ;;  %v1687_v45 = vpop.permute.xlu0 %703 }
  0xcd   :  { %566 = vst.msk [vmem:[#allocation2 + $0xc0] sm:$0xff] %vm26_vm0, %v533_v38  ;;  %v514_v40 = vadd.f32 %v442_v39, %v64_v36  ;;  %v853_v36 = vld [vmem:[%s1795_s2 + $0x90] sm:$0xff]  ;;  %v1696_v58 = vpop.permute.xlu1 %783 }
  0xce   :  { %900 = vmatpush.msrb.mxu3 %v853_v36  ;;  %v72_v36 = vld [vmem:[#allocation2 + $0x68] sm:$0xff] }
  0xcf   :  { %547 = vst.msk [vmem:[#allocation2 + $0x28] sm:$0xff] %vm26_vm0, %v514_v40  ;;  %v402_v43 = vpop.f32.mrf.mxu2 }
  0xd0   :  { %v491_v47 = vpop.f32.mrf.mxu3  ;;  %901 = vmatpush.msrb.mxu3 %v852_v41 }
  0xd1   :  { %v492_v48 = vadd.f32 %v491_v47, %v402_v43  ;;  %v355_v49 = vpop.f32.mrf.mxu0  ;;  %v844_v47 = vld [vmem:[%s1795_s2 + $0x48] sm:$0xff] }
  0xd2   :  { %v444_v51 = vpop.f32.mrf.mxu1  ;;  %902 = vmatpush.msrb.mxu3 %v851_v44  ;;  %873 = vmatpush.msrb.mxu2 %v844_v47 }
  0xd3   :  { %v534_v52 = vadd.f32 %v492_v48, %v84_v46  ;;  %v445_v53 = vadd.f32 %v444_v51, %v355_v49  ;;  %v1693_v48 = vpop.permute.xlu2 %698  ;;  %v88_v49 = vld [vmem:[#allocation2 + $0xe8] sm:$0xff] }
  0xd5   :  { %567 = vst.msk [vmem:[#allocation2 + $0xc8] sm:$0xff] %vm26_vm0, %v534_v52  ;;  %v515_v55 = vadd.f32 %v445_v53, %v65_v50  ;;  %v69_v53 = vld [vmem:[#allocation2 + $0x50] sm:$0xff] }
  0xd7   :  { %548 = vst.msk [vmem:[#allocation2 + $0x30] sm:$0xff] %vm26_vm0, %v515_v55  ;;  %v405_v57 = vpop.f32.mrf.mxu2 }
  0xd8   :  { %v494_v61 = vpop.f32.mrf.mxu3 }
  0xd9   :  { %v495_v62 = vadd.f32 %v494_v61, %v405_v57  ;;  %v357_v63 = vpop.f32.mrf.mxu0  ;;  %v842_v61 = vld [vmem:[%s1795_s2 + $0x38] sm:$0xff] }
  0xda   :  { %v446_v3 = vpop.f32.mrf.mxu1 }
  0xdb   :  { %v535_v4 = vadd.f32 %v495_v62, %v85_v60  ;;  %v447_v5 = vadd.f32 %v446_v3, %v357_v63  ;;  %v843_v60 = vld [vmem:[%s1795_s2 + $0x40] sm:$0xff]  ;;  %v1705_v62 = vpop.permute.xlu0 %778  ;;  %v89_v63 = vld [vmem:[#allocation2 + $0xf0] sm:$0xff] }
  0xdc   :  { %874 = vmatpush.msrb.mxu2 %v843_v60 }
  0xdd   :  { %568 = vst.msk [vmem:[#allocation2 + $0xd0] sm:$0xff] %vm26_vm0, %v535_v4  ;;  %v516_v8 = vadd.f32 %v447_v5, %v66_v2  ;;  %v1707_v4 = vpop.permute.xlu2 %773  ;;  %v70_v5 = vld [vmem:[#allocation2 + $0x58] sm:$0xff] }
  0xde   :  { %875 = vmatpush.msrb.mxu2 %v842_v61 }
  0xdf   :  { %549 = vst.msk [vmem:[#allocation2 + $0x38] sm:$0xff] %vm26_vm0, %v516_v8  ;;  %v407_v10 = vpop.f32.mrf.mxu2 }
  0xe0   :  { %v496_v14 = vpop.f32.mrf.mxu3 }
  0xe1   :  { %v497_v15 = vadd.f32 %v496_v14, %v407_v10  ;;  %v360_v16 = vpop.f32.mrf.mxu0  ;;  %v841_v10 = vld [vmem:[%s1795_s2 + $0x30] sm:$0xff]  ;;  %v839_v14 = vld [vmem:[%s1795_s2 + $0x20] sm:$0xff] }
  0xe2   :  { %v449_v20 = vpop.f32.mrf.mxu1  ;;  %876 = vmatpush.msrb.mxu2 %v841_v10  ;;  %v599_v10 = vld [vmem:[#allocation2 + $0xb0] sm:$0xff] }
  0xe3   :  { %v536_v21 = vadd.f32 %v497_v15, %v86_v13  ;;  %v450_v22 = vadd.f32 %v449_v20, %v360_v16  ;;  %v1720_v15 = vpop.permute.xlu1 %693  ;;  %v90_v16 = vld [vmem:[#allocation2 + $0xf8] sm:$0xff] }
  0xe4   :  { %877 = vmatpush.msrb.mxu2 %v840_v12 }
  0xe5   :  { %569 = vst.msk [vmem:[#allocation2 + $0xd8] sm:$0xff] %vm26_vm0, %v536_v21  ;;  %v517_v25 = vadd.f32 %v450_v22, %v67_v19  ;;  %v838_v21 = vld [vmem:[%s1795_s2 + $0x18] sm:$0xff]  ;;  %v1725_v22 = vpop.permute.xlu0 %688  ;;  %v1730_v30 = vpop.permute.xlu2 %683 }
  0xe6   :  { %878 = vmatpush.msrb.mxu2 %v839_v14  ;;  %v598_v14 = vld [vmem:[#allocation2 + $0xa8] sm:$0xff] }
  0xe7   :  { %550 = vst.msk [vmem:[#allocation2 + $0x40] sm:$0xff] %vm26_vm0, %v517_v25  ;;  %v410_v29 = vpop.f32.mrf.mxu2 }
  0xe8   :  { %v499_v33 = vpop.f32.mrf.mxu3  ;;  %879 = vmatpush.msrb.mxu2 %v838_v21 }
  0xe9   :  { %v500_v34 = vadd.f32 %v499_v33, %v410_v29  ;;  %v362_v35 = vpop.f32.mrf.mxu0  ;;  %v837_v29 = vld [vmem:[%s1795_s2 + $0x10] sm:$0xff]  ;;  %v835_v33 = vld [vmem:[%s1795_s2] sm:$0xff] }
  0xea   :  { %v451_v38 = vpop.f32.mrf.mxu1  ;;  %880 = vmatpush.msrb.mxu2 %v837_v29 }
  0xeb   :  { %v537_v39 = vadd.f32 %v500_v34, %v87_v32  ;;  %v452_v40 = vadd.f32 %v451_v38, %v362_v35  ;;  %v836_v32 = vld [vmem:[%s1795_s2 + $0x8] sm:$0xff]  ;;  %v769_v35 = vpop.permute.xlu1 %768 }
  0xec   :  { %881 = vmatpush.msrb.mxu2 %v836_v32 }
  0xed   :  { %570 = vst.msk [vmem:[#allocation2 + $0xe0] sm:$0xff] %vm26_vm0, %v537_v39  ;;  %v518_v43 = vadd.f32 %v452_v40, %v68_v37  ;;  %v764_v39 = vpop.permute.xlu0 %763 }
  0xee   :  { %882 = vmatpush.msrb.mxu2 %v835_v33 }
  0xef   :  { %551 = vst.msk [vmem:[#allocation2 + $0x48] sm:$0xff] %vm26_vm0, %v518_v43  ;;  %v412_v46 = vpop.f32.mrf.mxu2 }
  0xf0   :  { %v501_v50 = vpop.f32.mrf.mxu3 }
  0xf1   :  { %v502_v51 = vadd.f32 %v501_v50, %v412_v46  ;;  %v365_v52 = vpop.f32.mrf.mxu0  ;;  %v759_v46 = vpop.permute.xlu2 %758 }
  0xf2   :  { %v454_v54 = vpop.f32.mrf.mxu1 }
  0xf3   :  { %v538_v55 = vadd.f32 %v502_v51, %v88_v49  ;;  %v455_v56 = vadd.f32 %v454_v54, %v365_v52 }
  0xf4   :  { %v605_v50 = vld [vmem:[#allocation2 + $0xe0] sm:$0xff] }
  0xf5   :  { %571 = vst.msk [vmem:[#allocation2 + $0xe8] sm:$0xff] %vm26_vm0, %v538_v55  ;;  %v519_v57 = vadd.f32 %v455_v56, %v69_v53  ;;  %v73_v53 = vld [vmem:[#allocation2 + $0x70] sm:$0xff]  ;;  %v604_v55 = vld [vmem:[#allocation2 + $0xd8] sm:$0xff] }
  0xf6   :  { %v828_v61 = vmul.f32 %v1705_v62, %v604_v55  ;;  %v77_v55 = vld [vmem:[#allocation2 + $0x90] sm:$0xff] }
  0xf7   :  { %552 = vst.msk [vmem:[#allocation2 + $0x50] sm:$0xff] %vm26_vm0, %v519_v57  ;;  %v415_v59 = vpop.f32.mrf.mxu2  ;;  %v829_v57 = vmul.f32 %v1696_v58, %v605_v50 }
  0xf8   :  { %v504_v0 = vpop.f32.mrf.mxu3 }
  0xf9   :  { %v505_v2 = vadd.f32 %v504_v0, %v415_v59  ;;  %v367_v3 = vpop.f32.mrf.mxu0  ;;  %v603_v59 = vld [vmem:[#allocation2 + $0xd0] sm:$0xff]  ;;  %v1752_v0 = vpop.permute.xlu2 %668 }
  0xfa   :  { %v456_v6 = vpop.f32.mrf.mxu1 }
  0xfb   :  { %v539_v8 = vadd.f32 %v505_v2, %v89_v63  ;;  %v457_v9 = vadd.f32 %v456_v6, %v367_v3  ;;  %v602_v63 = vld [vmem:[#allocation2 + $0xc8] sm:$0xff]  ;;  %v601_v2 = vld [vmem:[#allocation2 + $0xc0] sm:$0xff] }
  0xfc   :  { %v606_v47 = vld [vmem:[#allocation2 + $0xe8] sm:$0xff]  ;;  %v826_v3 = vmul.f32 %v769_v35, %v602_v63  ;;  %v825_v62 = vmul.f32 %v764_v39, %v601_v2 }
  0xfd   :  { %572 = vst.msk [vmem:[#allocation2 + $0xf0] sm:$0xff] %vm26_vm0, %v539_v8  ;;  %v520_v11 = vadd.f32 %v457_v9, %v70_v5  ;;  %v830_v52 = vmul.f32 %v1666_v28, %v606_v47  ;;  %v827_v28 = vmul.f32 %v1707_v4, %v603_v59  ;;  %v74_v5 = vld [vmem:[#allocation2 + $0x78] sm:$0xff]  ;;  %v1765_v35 = vld [vmem:[%s1796_s4 + $0x8] sm:$0xff] }
  0xfe   :  { %v600_v8 = vld [vmem:[#allocation2 + $0xb8] sm:$0xff]  ;;  %903 = vmatmul.f32.vlgmr.msrb.gmra.mxu3 %v1765_v35  ;;  %v582_v2 = vld [vmem:[#allocation2 + $0x28] sm:$0xff] }
  0xff   :  { %553 = vst.msk [vmem:[#allocation2 + $0x58] sm:$0xff] %vm26_vm0, %v520_v11  ;;  %v417_v13 = vpop.f32.mrf.mxu2  ;;  %v824_v12 = vmul.f32 %v759_v46, %v600_v8 }
 0x100   :  { %v506_v17 = vpop.f32.mrf.mxu3 }
 0x101   :  { %v507_v19 = vadd.f32 %v506_v17, %v417_v13  ;;  %v370_v20 = vpop.f32.mrf.mxu0  ;;  %v597_v17 = vld [vmem:[#allocation2 + $0xa0] sm:$0xff]  ;;  %v744_v21 = vpop.permute.xlu2 %743 }
 0x102   :  { %v459_v25 = vpop.f32.mrf.mxu1 }
 0x103   :  { %v540_v26 = vadd.f32 %v507_v19, %v90_v16  ;;  %v460_v27 = vadd.f32 %v459_v25, %v370_v20 }
 0x104   :  { %v607_v41 = vld [vmem:[#allocation2 + $0xf0] sm:$0xff] }
 0x105   :  { %573 = vst.msk [vmem:[#allocation2 + $0xf8] sm:$0xff] %vm26_vm0, %v540_v26  ;;  %v521_v31 = vadd.f32 %v460_v27, %v71_v23  ;;  %v831_v49 = vmul.f32 %v1681_v42, %v607_v41  ;;  %v1748_v42 = vpop.permute.xlu0 %673  ;;  %v75_v23 = vld [vmem:[#allocation2 + $0x80] sm:$0xff]  ;;  %v821_v26 = vmul.f32 %v744_v21, %v597_v17 }
 0x106   :  { %v588_v46 = vld [vmem:[#allocation2 + $0x58] sm:$0xff]  ;;  %v577_v17 = vld [vmem:[#allocation2] sm:$0xff] }
 0x107   :  { %554 = vst.msk [vmem:[#allocation2 + $0x60] sm:$0xff] %vm26_vm0, %v521_v31 }
 0x109   :  { %v372_v34 = vpop.f32.mrf.mxu0 }
 0x10a   :  { %v461_v37 = vpop.f32.mrf.mxu1 }
 0x10b   :  { %v462_v38 = vadd.f32 %v461_v37, %v372_v34  ;;  %v1760_v34 = vld [vmem:[%s1796_s4] sm:$0xff] }
 0x10c   :  { %v608_v40 = vld [vmem:[#allocation2 + $0xf8] sm:$0xff]  ;;  %883 = vmatmul.f32.vlgmr.msrb.gmra.mxu2 %v1760_v34 }
 0x10d   :  { %v522_v43 = vadd.f32 %v462_v38, %v72_v36  ;;  %v832_v44 = vmul.f32 %v1657_v24, %v608_v40  ;;  %v1745_v24 = vpop.permute.xlu1 %678  ;;  %v749_v16 = vpop.permute.xlu0 %748 }
 0x10e   :  { %v822_v20 = vmul.f32 %v749_v16, %v598_v14  ;;  %v589_v40 = vld [vmem:[#allocation2 + $0x60] sm:$0xff] }
 0x10f   :  { %555 = vst.msk [vmem:[#allocation2 + $0x68] sm:$0xff] %vm26_vm0, %v522_v43  ;;  %928 = vmatpush.msra.mxu3 %v832_v44 }
 0x111   :  { %929 = vmatpush.msra.mxu3 %v831_v49  ;;  %v375_v51 = vpop.f32.mrf.mxu0  ;;  %v813_v49 = vmul.f32 %v1687_v45, %v589_v40  ;;  %v584_v45 = vld [vmem:[#allocation2 + $0x38] sm:$0xff] }
 0x112   :  { %v464_v54 = vpop.f32.mrf.mxu1 }
 0x113   :  { %v465_v56 = vadd.f32 %v464_v54, %v375_v51  ;;  %930 = vmatpush.msra.mxu3 %v830_v52  ;;  %v587_v51 = vld [vmem:[#allocation2 + $0x50] sm:$0xff]  ;;  %v586_v52 = vld [vmem:[#allocation2 + $0x48] sm:$0xff] }
 0x114   :  { %v811_v54 = vmul.f32 %v1720_v15, %v587_v51  ;;  %v810_v59 = vmul.f32 %v1725_v22, %v586_v52 }
 0x115   :  { %v523_v60 = vadd.f32 %v465_v56, %v73_v53  ;;  %931 = vmatpush.msra.mxu3 %v829_v57  ;;  %v754_v13 = vpop.permute.xlu1 %753  ;;  %v659_v50 = vpop.permute.xlu0 %658  ;;  %v585_v56 = vld [vmem:[#allocation2 + $0x40] sm:$0xff] }
 0x116   :  { %v823_v4 = vmul.f32 %v754_v13, %v599_v10  ;;  %v590_v36 = vld [vmem:[#allocation2 + $0x68] sm:$0xff] }
 0x117   :  { %556 = vst.msk [vmem:[#allocation2 + $0x70] sm:$0xff] %vm26_vm0, %v523_v60  ;;  %932 = vmatpush.msra.mxu3 %v828_v61  ;;  %v814_v43 = vmul.f32 %v1636_v7, %v590_v36  ;;  %v809_v61 = vmul.f32 %v1730_v30, %v585_v56  ;;  %v806_v30 = vmul.f32 %v1752_v0, %v582_v2 }
 0x119   :  { %933 = vmatpush.msra.mxu3 %v827_v28  ;;  %v377_v58 = vpop.f32.mrf.mxu0  ;;  %v583_v28 = vld [vmem:[#allocation2 + $0x30] sm:$0xff] }
 0x11a   :  { %v466_v6 = vpop.f32.mrf.mxu1 }
 0x11b   :  { %v467_v9 = vadd.f32 %v466_v6, %v377_v58  ;;  %934 = vmatpush.msra.mxu3 %v826_v3  ;;  %v807_v3 = vmul.f32 %v1748_v42, %v583_v28  ;;  %v581_v6 = vld [vmem:[#allocation2 + $0x20] sm:$0xff]  ;;  %v578_v42 = vld [vmem:[#allocation2 + $0x8] sm:$0xff] }
 0x11d   :  { %v524_v11 = vadd.f32 %v467_v9, %v74_v5  ;;  %935 = vmatpush.msra.mxu3 %v825_v62  ;;  %v664_v44 = vpop.permute.xlu1 %663  ;;  %v734_v15 = vpop.permute.xlu0 %733  ;;  %v78_v5 = vld [vmem:[#allocation2 + $0x98] sm:$0xff] }
 0x11e   :  { %v591_v32 = vld [vmem:[#allocation2 + $0x70] sm:$0xff]  ;;  %v580_v9 = vld [vmem:[#allocation2 + $0x18] sm:$0xff]  ;;  %v805_v10 = vmul.f32 %v664_v44, %v581_v6 }
 0x11f   :  { %557 = vst.msk [vmem:[#allocation2 + $0x78] sm:$0xff] %vm26_vm0, %v524_v11  ;;  %936 = vmatpush.msra.mxu3 %v824_v12  ;;  %v815_v38 = vmul.f32 %v1652_v18, %v591_v32  ;;  %v812_v18 = vmul.f32 %v1693_v48, %v588_v46  ;;  %v808_v48 = vmul.f32 %v1745_v24, %v584_v45  ;;  %v654_v11 = vpop.permute.xlu2 %653  ;;  %v579_v12 = vld [vmem:[#allocation2 + $0x10] sm:$0xff] }
 0x120   :  { %v804_v24 = vmul.f32 %v659_v50, %v580_v9  ;;  %v803_v14 = vmul.f32 %v654_v11, %v579_v12 }
 0x121   :  { %937 = vmatpush.msra.mxu3 %v823_v4  ;;  %v380_v19 = vpop.f32.mrf.mxu0 }
 0x122   :  { %v469_v25 = vpop.f32.mrf.mxu1 }
 0x123   :  { %v470_v27 = vadd.f32 %v469_v25, %v380_v19  ;;  %938 = vmatpush.msra.mxu3 %v822_v20 }
 0x125   :  { %v525_v29 = vadd.f32 %v470_v27, %v75_v23  ;;  %939 = vmatpush.msra.mxu3 %v821_v26  ;;  %v739_v63 = vpop.permute.xlu1 %738  ;;  %v644_v4 = vpop.permute.xlu0 %643 }
 0x126   :  { %v592_v31 = vld [vmem:[#allocation2 + $0x78] sm:$0xff]  ;;  %v801_v19 = vmul.f32 %v644_v4, %v577_v17 }
 0x127   :  { %558 = vst.msk [vmem:[#allocation2 + $0x80] sm:$0xff] %vm26_vm0, %v525_v29  ;;  %v816_v33 = vmul.f32 %v1631_v1, %v592_v31  ;;  %v76_v1 = vld [vmem:[#allocation2 + $0x88] sm:$0xff]  ;;  %v729_v26 = vpop.permute.xlu2 %728 }
 0x129   :  { %908 = vmatpush.msra.mxu2 %v816_v33  ;;  %v382_v37 = vpop.f32.mrf.mxu0 }
 0x12a   :  { %v471_v39 = vpop.f32.mrf.mxu1 }
 0x12b   :  { %v472_v41 = vadd.f32 %v471_v39, %v382_v37  ;;  %909 = vmatpush.msra.mxu2 %v815_v38 }
 0x12d   :  { %v526_v47 = vadd.f32 %v472_v41, %v76_v1  ;;  %910 = vmatpush.msra.mxu2 %v814_v43  ;;  %v649_v13 = vpop.permute.xlu1 %648 }
 0x12e   :  { %v802_v16 = vmul.f32 %v649_v13, %v578_v42  ;;  %v593_v27 = vld [vmem:[#allocation2 + $0x80] sm:$0xff] }
 0x12f   :  { %559 = vst.msk [vmem:[#allocation2 + $0x88] sm:$0xff] %vm26_vm0, %v526_v47  ;;  %911 = vmatpush.msra.mxu2 %v813_v49 }
 0x131   :  { %912 = vmatpush.msra.mxu2 %v812_v18  ;;  %v385_v53 = vpop.f32.mrf.mxu0 }
 0x132   :  { %v474_v7 = vpop.f32.mrf.mxu1 }
 0x133   :  { %v475_v57 = vadd.f32 %v474_v7, %v385_v53  ;;  %913 = vmatpush.msra.mxu2 %v811_v54 }
 0x135   :  { %v527_v60 = vadd.f32 %v475_v57, %v77_v55  ;;  %914 = vmatpush.msra.mxu2 %v810_v59  ;;  %v724_v31 = vpop.permute.xlu1 %723 }
 0x136   :  { %v594_v23 = vld [vmem:[#allocation2 + $0x88] sm:$0xff]  ;;  %v817_v32 = vmul.f32 %v724_v31, %v593_v27 }
 0x137   :  { %560 = vst.msk [vmem:[#allocation2 + $0x90] sm:$0xff] %vm26_vm0, %v527_v60  ;;  %915 = vmatpush.msra.mxu2 %v809_v61  ;;  %v818_v29 = vmul.f32 %v729_v26, %v594_v23 }
 0x139   :  { %916 = vmatpush.msra.mxu2 %v808_v48  ;;  %v387_v58 = vpop.f32.mrf.mxu0 }
 0x13a   :  { %v476_v22 = vpop.f32.mrf.mxu1 }
 0x13b   :  { %v477_v8 = vadd.f32 %v476_v22, %v387_v58  ;;  %917 = vmatpush.msra.mxu2 %v807_v3 }
 0x13d   :  { %v528_v62 = vadd.f32 %v477_v8, %v78_v5  ;;  %918 = vmatpush.msra.mxu2 %v806_v30 }
 0x13e   :  { %v595_v20 = vld [vmem:[#allocation2 + $0x90] sm:$0xff] }
 0x13f   :  { %561 = vst.msk [vmem:[#allocation2 + $0x98] sm:$0xff] %vm26_vm0, %v528_v62  ;;  %919 = vmatpush.msra.mxu2 %v805_v10  ;;  %v819_v25 = vmul.f32 %v734_v15, %v595_v20 }
 0x141   :  { %920 = vmatpush.msra.mxu2 %v804_v24 }
 0x143   :  { %921 = vmatpush.msra.mxu2 %v803_v14 }
 0x145   :  { %922 = vmatpush.msra.mxu2 %v802_v16 }
 0x146   :  { %v596_v0 = vld [vmem:[#allocation2 + $0x98] sm:$0xff] }
 0x147   :  { %923 = vmatpush.msra.mxu2 %v801_v19  ;;  %v820_v21 = vmul.f32 %v739_v63, %v596_v0 }
 0x148   :  { %924 = vmatmul.f32.vlgmr.msra.gmra.mxu2 %v1760_v34 }
 0x149   :  { %940 = vmatpush.msra.mxu3 %v820_v21 }
 0x14b   :  { %941 = vmatpush.msra.mxu3 %v819_v25 }
 0x14d   :  { %942 = vmatpush.msra.mxu3 %v818_v29 }
 0x14f   :  { %943 = vmatpush.msra.mxu3 %v817_v32 }
 0x150   :  { %944 = vmatmul.f32.vlgmr.msra.gmra.mxu3 %v1765_v35 }
 0x181   :  { %v904_v36 = vpop.f32.mrf.mxu3 }
 0x18f   :  { %v884_v33 = vpop.f32.mrf.mxu2 }
 0x190   :  { %v905_v37 = vadd.f32 %v904_v36, %v884_v33 }
 0x192   :  { %907 = vst.msk [vmem:[%s1797_s5] sm:$0xff] %vm26_vm0, %v905_v37 }
 0x1cb   :  { %v925_v34 = vpop.f32.mrf.mxu2 }
 0x1d3   :  { %v945_v38 = vpop.f32.mrf.mxu3 }
 0x1d4   :  { %v946_v1 = vadd.f32 %v945_v38, %v925_v34 }
 0x1d6   :  { %948 = vst.msk [vmem:[%s1798_s6] sm:$0xff] %vm26_vm0, %v946_v1 }

// kernel: graphsage_hgnnplus_forward.7
= control target key start
LH: loop header
LB: loop body
LE: loop exit
PB: predicated region body
PF: predicated region fallthrough
CT: control target
= control target key end

     0   :  { %v1138_v0 = vmov 0   ;;  %vm26_vm0 = vcmask 261120   ;;  %s1792_s3 = inlined_call_operand.vmem [shape: f32[256,1], index: 3, kind: input, shape index: {}]   ;;  %s1793_s1 = inlined_call_operand.vmem [shape: f32[256,32], index: 1, kind: input, shape index: {}, may-alias: {1,2}]   ;;  %s1794_s0 = inlined_call_operand.vmem [shape: bf16[256,256], index: 0, kind: input, shape index: {}]   ;;  %s1795_s2 = inlined_call_operand.vmem [shape: f32[256,32], index: 2, kind: input, shape index: {}, may-alias: {1,2}]   ;;  %s1796_s4 = inlined_call_operand.vmem [shape: f32[8,256], index: 4, kind: input, shape index: {}]   ;;  %s1797_s5 = inlined_call_operand.vmem [shape: f32[1,8,32], index: 5, kind: output, shape index: {0}]   ;;  %s1798_s6 = inlined_call_operand.vmem [shape: f32[1,8,32], index: 6, kind: output, shape index: {1}]  }
   0x1   :  { %1136 = vset.pattern.permute.xlu1 %v1138_v0  ;;  %1135 = vset.pattern.permute.xlu0 %v1138_v0  ;;  %v624_v1 = vld [vmem:[%s1792_s3 + $0x78] sm:$0xff]  ;;  %v623_v2 = vld [vmem:[%s1792_s3 + $0x70] sm:$0xff]  ;;  %v135_v9 = vld [vmem:[%s1793_s1 + $0x60] sm:$0xff] }
   0x2   :  { %v137_v3 = vld [vmem:[%s1793_s1 + $0x70] sm:$0xff]  ;;  %718 = vperm.xlu0 %1135, %v624_v1   ;;  %713 = vperm.xlu1 %1136, %v623_v2   ;;  %v138_v4 = vld [vmem:[%s1793_s1 + $0x78] sm:$0xff]  ;;  %v136_v10 = vld [vmem:[%s1793_s1 + $0x68] sm:$0xff] }
   0x3   :  { %v153_v5 = vld [vmem:[%s1793_s1 + $0xf0] sm:$0xff]  ;;  %v154_v6 = vld [vmem:[%s1793_s1 + $0xf8] sm:$0xff]  ;;  %v162_v7 = vpack.c.bf16 %v138_v4, %v137_v3  ;;  %v151_v11 = vld [vmem:[%s1793_s1 + $0xe0] sm:$0xff]  ;;  %1137 = vset.pattern.permute.xlu2 %v1138_v0  ;;  %v161_v13 = vpack.c.bf16 %v136_v10, %v135_v9 }
   0x4   :  { %v170_v8 = vpack.c.bf16 %v154_v6, %v153_v5  ;;  %v152_v12 = vld [vmem:[%s1793_s1 + $0xe8] sm:$0xff]  ;;  %v133_v15 = vld [vmem:[%s1793_s1 + $0x50] sm:$0xff]  ;;  %v134_v16 = vld [vmem:[%s1793_s1 + $0x58] sm:$0xff] }
   0x5   :  { %331 = vmatpush.bf16.msra.mxu0 %v162_v7  ;;  %1117 = vmatpush.bf16.msra.mxu2 %v162_v7  ;;  %v169_v14 = vpack.c.bf16 %v152_v12, %v151_v11  ;;  %v149_v17 = vld [vmem:[%s1793_s1 + $0xd0] sm:$0xff]  ;;  %v150_v18 = vld [vmem:[%s1793_s1 + $0xd8] sm:$0xff]  ;;  %v160_v21 = vpack.c.bf16 %v134_v16, %v133_v15  ;;  %v131_v23 = vld [vmem:[%s1793_s1 + $0x40] sm:$0xff] }
   0x6   :  { %420 = vmatpush.bf16.msra.mxu1 %v170_v8  ;;  %1125 = vmatpush.bf16.msra.mxu3 %v170_v8  ;;  %v640_v19 = vld [vmem:[%s1792_s3 + $0xf8] sm:$0xff]  ;;  %v639_v20 = vld [vmem:[%s1792_s3 + $0xf0] sm:$0xff]  ;;  %v168_v22 = vpack.c.bf16 %v150_v18, %v149_v17  ;;  %v132_v24 = vld [vmem:[%s1793_s1 + $0x48] sm:$0xff] }
   0x7   :  { %v147_v25 = vld [vmem:[%s1793_s1 + $0xc0] sm:$0xff]  ;;  %v148_v26 = vld [vmem:[%s1793_s1 + $0xc8] sm:$0xff]  ;;  %v159_v27 = vpack.c.bf16 %v132_v24, %v131_v23  ;;  %v129_v29 = vld [vmem:[%s1793_s1 + $0x30] sm:$0xff] }
   0x8   :  { %v167_v28 = vpack.c.bf16 %v148_v26, %v147_v25  ;;  %v130_v30 = vld [vmem:[%s1793_s1 + $0x38] sm:$0xff]  ;;  %v622_v31 = vld [vmem:[%s1792_s3 + $0x68] sm:$0xff]  ;;  %v145_v32 = vld [vmem:[%s1793_s1 + $0xb0] sm:$0xff] }
   0x9   :  { %332 = vmatpush.bf16.msra.mxu0 %v161_v13  ;;  %1118 = vmatpush.bf16.msra.mxu2 %v161_v13  ;;  %v146_v33 = vld [vmem:[%s1793_s1 + $0xb8] sm:$0xff]  ;;  %v637_v34 = vld [vmem:[%s1792_s3 + $0xe0] sm:$0xff]  ;;  %v158_v36 = vpack.c.bf16 %v130_v30, %v129_v29  ;;  %v128_v39 = vld [vmem:[%s1793_s1 + $0x28] sm:$0xff] }
   0xa   :  { %421 = vmatpush.bf16.msra.mxu1 %v169_v14  ;;  %1126 = vmatpush.bf16.msra.mxu3 %v169_v14  ;;  %v621_v35 = vld [vmem:[%s1792_s3 + $0x60] sm:$0xff]  ;;  %v166_v37 = vpack.c.bf16 %v146_v33, %v145_v32  ;;  %v144_v41 = vld [vmem:[%s1793_s1 + $0xa8] sm:$0xff]  ;;  %v125_v45 = vld [vmem:[%s1793_s1 + $0x10] sm:$0xff] }
   0xb   :  { %798 = vperm.xlu0 %1135, %v640_v19   ;;  %793 = vperm.xlu1 %1136, %v639_v20   ;;  %v127_v38 = vld [vmem:[%s1793_s1 + $0x20] sm:$0xff]  ;;  %v638_v42 = vld [vmem:[%s1792_s3 + $0xe8] sm:$0xff]  ;;  %v126_v46 = vld [vmem:[%s1793_s1 + $0x18] sm:$0xff] }
   0xc   :  { %708 = vperm.xlu2 %1137, %v622_v31   ;;  %v143_v40 = vld [vmem:[%s1793_s1 + $0xa0] sm:$0xff]  ;;  %v157_v43 = vpack.c.bf16 %v128_v39, %v127_v38  ;;  %v141_v47 = vld [vmem:[%s1793_s1 + $0x90] sm:$0xff]  ;;  %v142_v48 = vld [vmem:[%s1793_s1 + $0x98] sm:$0xff]  ;;  %v156_v51 = vpack.c.bf16 %v126_v46, %v125_v45 }
   0xd   :  { %333 = vmatpush.bf16.msra.mxu0 %v160_v21  ;;  %1119 = vmatpush.bf16.msra.mxu2 %v160_v21  ;;  %v165_v44 = vpack.c.bf16 %v144_v41, %v143_v40  ;;  %v636_v49 = vld [vmem:[%s1792_s3 + $0xd8] sm:$0xff]  ;;  %v619_v50 = vld [vmem:[%s1792_s3 + $0x50] sm:$0xff]  ;;  %v164_v52 = vpack.c.bf16 %v142_v48, %v141_v47  ;;  %v123_v53 = vld [vmem:[%s1793_s1] sm:$0xff] }
   0xe   :  { %422 = vmatpush.bf16.msra.mxu1 %v168_v22  ;;  %1127 = vmatpush.bf16.msra.mxu3 %v168_v22  ;;  %v124_v54 = vld [vmem:[%s1793_s1 + $0x8] sm:$0xff]  ;;  %v139_v55 = vld [vmem:[%s1793_s1 + $0x80] sm:$0xff]  ;;  %v620_v59 = vld [vmem:[%s1792_s3 + $0x58] sm:$0xff] }
   0xf   :  { %v140_v56 = vld [vmem:[%s1793_s1 + $0x88] sm:$0xff]  ;;  %v959_v57 = vld [vmem:[%s1794_s0] sm:$0xf]  ;;  %v155_v60 = vpack.c.bf16 %v124_v54, %v123_v53  ;;  %v1085_v63 = vld [vmem:[%s1794_s0 + $0x4] sm:$0xf] }
  0x10   :  { %v1086_v58 = vld [vmem:[%s1794_s0 + $0x4] sm:$0xf0]  ;;  %v1039_v61 = vld [vmem:[%s1794_s0 + $0xa0] sm:$0xf]  ;;  %v163_v0 = vpack.c.bf16 %v140_v56, %v139_v55  ;;  %v961_v1 = vld [vmem:[%s1794_s0 + $0x8] sm:$0xf0] }
  0x11   :  { %334 = vmatpush.bf16.msra.mxu0 %v159_v27  ;;  %1120 = vmatpush.bf16.msra.mxu2 %v159_v27  ;;  %v1106_v62 = vld [vmem:[%s1794_s0 + $0xa4] sm:$0xf0]  ;;  %v1105_v2 = vld [vmem:[%s1794_s0 + $0xa4] sm:$0xf]  ;;  %v1041_v3 = vld [vmem:[%s1794_s0 + $0xa8] sm:$0xf0]  ;;  %v960_v6 = vor.u32 %v1086_v58, %v959_v57  ;;  %v964_v8 = vor.u32 %v1085_v63, %v961_v1 }
  0x12   :  { %423 = vmatpush.bf16.msra.mxu1 %v167_v28  ;;  %1128 = vmatpush.bf16.msra.mxu3 %v167_v28  ;;  %v634_v4 = vld [vmem:[%s1792_s3 + $0xc8] sm:$0xff]  ;;  %v1040_v7 = vor.u32 %v1106_v62, %v1039_v61  ;;  %v1044_v9 = vor.u32 %v1105_v2, %v1041_v3  ;;  %v635_v10 = vld [vmem:[%s1792_s3 + $0xd0] sm:$0xff]  ;;  %v633_v11 = vld [vmem:[%s1792_s3 + $0xc0] sm:$0xff] }
  0x13   :  { %783 = vperm.xlu1 %1136, %v637_v34   ;;  %703 = vperm.xlu0 %1135, %v621_v35   ;;  %v618_v5 = vld [vmem:[%s1792_s3 + $0x48] sm:$0xff]  ;;  %v616_v12 = vld [vmem:[%s1792_s3 + $0x38] sm:$0xff]  ;;  %v967_v13 = vld [vmem:[%s1794_s0 + $0x10] sm:$0xf] }
  0x14   :  { %788 = vperm.xlu2 %1137, %v638_v42   ;;  %v1088_v14 = vld [vmem:[%s1794_s0 + $0x14] sm:$0xf0]  ;;  %v617_v15 = vld [vmem:[%s1792_s3 + $0x40] sm:$0xff]  ;;  %v1047_v16 = vld [vmem:[%s1794_s0 + $0xb0] sm:$0xf] }
  0x15   :  { %335 = vmatpush.bf16.msra.mxu0 %v158_v36  ;;  %1121 = vmatpush.bf16.msra.mxu2 %v158_v36  ;;  %v1108_v17 = vld [vmem:[%s1794_s0 + $0xb4] sm:$0xf0]  ;;  %v1087_v18 = vld [vmem:[%s1794_s0 + $0x14] sm:$0xf]  ;;  %v969_v19 = vld [vmem:[%s1794_s0 + $0x18] sm:$0xf0]  ;;  %v968_v24 = vor.u32 %v1088_v14, %v967_v13 }
  0x16   :  { %424 = vmatpush.bf16.msra.mxu1 %v166_v37  ;;  %1129 = vmatpush.bf16.msra.mxu3 %v166_v37  ;;  %v1107_v20 = vld [vmem:[%s1794_s0 + $0xb4] sm:$0xf]  ;;  %v1049_v21 = vld [vmem:[%s1794_s0 + $0xb8] sm:$0xf0]  ;;  %v1048_v25 = vor.u32 %v1108_v17, %v1047_v16  ;;  %v972_v26 = vor.u32 %v1087_v18, %v969_v19  ;;  %v630_v29 = vld [vmem:[%s1792_s3 + $0xa8] sm:$0xff] }
  0x17   :  { %v631_v22 = vld [vmem:[%s1792_s3 + $0xb0] sm:$0xff]  ;;  %v1052_v27 = vor.u32 %v1107_v20, %v1049_v21  ;;  %v632_v28 = vld [vmem:[%s1792_s3 + $0xb8] sm:$0xff]  ;;  %v613_v30 = vld [vmem:[%s1792_s3 + $0x20] sm:$0xff] }
  0x18   :  { %v615_v23 = vld [vmem:[%s1792_s3 + $0x30] sm:$0xff]  ;;  %v975_v31 = vld [vmem:[%s1794_s0 + $0x20] sm:$0xf]  ;;  %v1090_v32 = vld [vmem:[%s1794_s0 + $0x24] sm:$0xf0] }
  0x19   :  { %336 = vmatpush.bf16.msra.mxu0 %v157_v43  ;;  %1122 = vmatpush.bf16.msra.mxu2 %v157_v43  ;;  %v614_v33 = vld [vmem:[%s1792_s3 + $0x28] sm:$0xff]  ;;  %v1055_v34 = vld [vmem:[%s1794_s0 + $0xc0] sm:$0xf]  ;;  %v1089_v36 = vld [vmem:[%s1794_s0 + $0x24] sm:$0xf]  ;;  %v976_v42 = vor.u32 %v1090_v32, %v975_v31 }
  0x1a   :  { %425 = vmatpush.bf16.msra.mxu1 %v165_v44  ;;  %1130 = vmatpush.bf16.msra.mxu3 %v165_v44  ;;  %v1110_v35 = vld [vmem:[%s1794_s0 + $0xc4] sm:$0xf0]  ;;  %v977_v37 = vld [vmem:[%s1794_s0 + $0x28] sm:$0xf0]  ;;  %v1109_v38 = vld [vmem:[%s1794_s0 + $0xc4] sm:$0xf] }
  0x1b   :  { %778 = vperm.xlu0 %1135, %v636_v49   ;;  %693 = vperm.xlu1 %1136, %v619_v50   ;;  %v1057_v39 = vld [vmem:[%s1794_s0 + $0xc8] sm:$0xf0]  ;;  %v628_v40 = vld [vmem:[%s1792_s3 + $0x98] sm:$0xff]  ;;  %v1056_v43 = vor.u32 %v1110_v35, %v1055_v34  ;;  %v980_v44 = vor.u32 %v1089_v36, %v977_v37  ;;  %v629_v46 = vld [vmem:[%s1792_s3 + $0xa0] sm:$0xff] }
  0x1c   :  { %698 = vperm.xlu2 %1137, %v620_v59   ;;  %v612_v41 = vld [vmem:[%s1792_s3 + $0x18] sm:$0xff]  ;;  %v1060_v45 = vor.u32 %v1109_v38, %v1057_v39  ;;  %v627_v47 = vld [vmem:[%s1792_s3 + $0x90] sm:$0xff]  ;;  %v610_v48 = vld [vmem:[%s1792_s3 + $0x8] sm:$0xff] }
  0x1d   :  { %337 = vmatpush.bf16.msra.mxu0 %v156_v51  ;;  %1123 = vmatpush.bf16.msra.mxu2 %v156_v51  ;;  %v983_v49 = vld [vmem:[%s1794_s0 + $0x30] sm:$0xf]  ;;  %v1092_v50 = vld [vmem:[%s1794_s0 + $0x34] sm:$0xf0]  ;;  %v1091_v54 = vld [vmem:[%s1794_s0 + $0x34] sm:$0xf] }
  0x1e   :  { %426 = vmatpush.bf16.msra.mxu1 %v164_v52  ;;  %1131 = vmatpush.bf16.msra.mxu3 %v164_v52  ;;  %v611_v51 = vld [vmem:[%s1792_s3 + $0x10] sm:$0xff]  ;;  %v1112_v53 = vld [vmem:[%s1794_s0 + $0xd4] sm:$0xf0]  ;;  %v985_v55 = vld [vmem:[%s1794_s0 + $0x38] sm:$0xf0]  ;;  %v984_v59 = vor.u32 %v1092_v50, %v983_v49 }
  0x1f   :  { %v1063_v52 = vld [vmem:[%s1794_s0 + $0xd0] sm:$0xf]  ;;  %v1111_v56 = vld [vmem:[%s1794_s0 + $0xd4] sm:$0xf]  ;;  %v1065_v57 = vld [vmem:[%s1794_s0 + $0xd8] sm:$0xf0]  ;;  %v988_v61 = vor.u32 %v1091_v54, %v985_v55 }
  0x20   :  { %v609_v58 = vld [vmem:[%s1792_s3] sm:$0xff]  ;;  %v1068_v62 = vor.u32 %v1111_v56, %v1065_v57  ;;  %v1114_v2 = vld [vmem:[%s1794_s0 + $0xe4] sm:$0xf0]  ;;  %v1096_v13 = vld [vmem:[%s1794_s0 + $0x54] sm:$0xf0] }
  0x21   :  { %338 = vmatpush.bf16.msra.mxu0 %v155_v60  ;;  %1124 = vmatpush.bf16.msra.mxu2 %v155_v60  ;;  %v1064_v60 = vor.u32 %v1112_v53, %v1063_v52  ;;  %v991_v63 = vld [vmem:[%s1794_s0 + $0x40] sm:$0xf]  ;;  %v1093_v3 = vld [vmem:[%s1794_s0 + $0x44] sm:$0xf]  ;;  %v1079_v14 = vld [vmem:[%s1794_s0 + $0xf0] sm:$0xf] }
  0x22   :  { %427 = vmatpush.bf16.msra.mxu1 %v163_v0  ;;  %1132 = vmatpush.bf16.msra.mxu3 %v163_v0  ;;  %v1094_v0 = vld [vmem:[%s1794_s0 + $0x44] sm:$0xf0]  ;;  %v1071_v1 = vld [vmem:[%s1794_s0 + $0xe0] sm:$0xf]  ;;  %v1095_v16 = vld [vmem:[%s1794_s0 + $0x54] sm:$0xf] }
  0x23   :  { %768 = vperm.xlu1 %1136, %v634_v4   ;;  %688 = vperm.xlu0 %1135, %v618_v5   ;;  %v993_v4 = vld [vmem:[%s1794_s0 + $0x48] sm:$0xf0]  ;;  %v1113_v5 = vld [vmem:[%s1794_s0 + $0xe4] sm:$0xf]  ;;  %v1001_v17 = vld [vmem:[%s1794_s0 + $0x58] sm:$0xf0] }
  0x24   :  { %339 = vmatmul.bf16.vlgmr.msra.gmra.mxu0 %v960_v6  ;;  %389 = vmatmul.bf16.vlgmr.msra.gmra.mxu2 %v1040_v7  ;;  %v1073_v6 = vld [vmem:[%s1794_s0 + $0xe8] sm:$0xf0]  ;;  %v992_v7 = vor.u32 %v1094_v0, %v991_v63  ;;  %v1115_v18 = vld [vmem:[%s1794_s0 + $0xf4] sm:$0xf]  ;;  %v1081_v19 = vld [vmem:[%s1794_s0 + $0xf8] sm:$0xf0] }
  0x25   :  { %428 = vmatmul.bf16.vlgmr.msra.gmra.mxu1 %v964_v8  ;;  %478 = vmatmul.bf16.vlgmr.msra.gmra.mxu3 %v1044_v9  ;;  %v1072_v8 = vor.u32 %v1114_v2, %v1071_v1  ;;  %v996_v9 = vor.u32 %v1093_v3, %v993_v4  ;;  %v626_v31 = vld [vmem:[%s1792_s3 + $0x88] sm:$0xff]  ;;  %v1015_v32 = vld [vmem:[%s1794_s0 + $0x70] sm:$0xf]  ;;  %v1099_v34 = vld [vmem:[%s1794_s0 + $0x74] sm:$0xf] }
  0x26   :  { %773 = vperm.xlu2 %1137, %v635_v10   ;;  %v1076_v10 = vor.u32 %v1113_v5, %v1073_v6  ;;  %v1017_v35 = vld [vmem:[%s1794_s0 + $0x78] sm:$0xf0]  ;;  %v1023_v38 = vld [vmem:[%s1794_s0 + $0x80] sm:$0xf]  ;;  %v1102_v39 = vld [vmem:[%s1794_s0 + $0x84] sm:$0xf0] }
  0x27   :  { %v1020_v37 = vor.u32 %v1099_v34, %v1017_v35 }
  0x2b   :  { %763 = vperm.xlu0 %1135, %v633_v11   ;;  %678 = vperm.xlu1 %1136, %v616_v12   ;;  %v625_v11 = vld [vmem:[%s1792_s3 + $0x80] sm:$0xff]  ;;  %v999_v12 = vld [vmem:[%s1794_s0 + $0x50] sm:$0xf] }
  0x2c   :  { %v1000_v20 = vor.u32 %v1096_v13, %v999_v12 }
  0x2e   :  { %683 = vperm.xlu2 %1137, %v617_v15   ;;  %v1116_v15 = vld [vmem:[%s1794_s0 + $0xf4] sm:$0xf0] }
  0x2f   :  { %v1080_v21 = vor.u32 %v1116_v15, %v1079_v14 }
  0x33   :  { %753 = vperm.xlu1 %1136, %v631_v22   ;;  %673 = vperm.xlu0 %1135, %v615_v23   ;;  %v1004_v22 = vor.u32 %v1095_v16, %v1001_v17  ;;  %v1084_v23 = vor.u32 %v1115_v18, %v1081_v19 }
  0x34   :  { %344 = vmatmul.bf16.gmra.mxu0 %v968_v24  ;;  %394 = vmatmul.bf16.gmra.mxu2 %v1048_v25  ;;  %v1007_v24 = vld [vmem:[%s1794_s0 + $0x60] sm:$0xf]  ;;  %v1098_v25 = vld [vmem:[%s1794_s0 + $0x64] sm:$0xf0] }
  0x35   :  { %433 = vmatmul.bf16.gmra.mxu1 %v972_v26  ;;  %483 = vmatmul.bf16.gmra.mxu3 %v1052_v27  ;;  %v1139_v26 = vmov 0.0   ;;  %v1097_v27 = vld [vmem:[%s1794_s0 + $0x64] sm:$0xf] }
  0x36   :  { %758 = vperm.xlu2 %1137, %v632_v28   ;;  %27 = vst.msk [vmem:[#allocation2] sm:$0xff] %vm26_vm0, %v1139_v26  ;;  %v1009_v28 = vld [vmem:[%s1794_s0 + $0x68] sm:$0xf0] }
  0x37   :  { %28 = vst.msk [vmem:[#allocation2 + $0x8] sm:$0xff] %vm26_vm0, %v1139_v26 }
  0x38   :  { %29 = vst.msk [vmem:[#allocation2 + $0x10] sm:$0xff] %vm26_vm0, %v1139_v26 }
  0x39   :  { %30 = vst.msk [vmem:[#allocation2 + $0x18] sm:$0xff] %vm26_vm0, %v1139_v26 }
  0x3a   :  { %31 = vst.msk [vmem:[#allocation2 + $0x20] sm:$0xff] %vm26_vm0, %v1139_v26 }
  0x3b   :  { %748 = vperm.xlu0 %1135, %v630_v29   ;;  %663 = vperm.xlu1 %1136, %v613_v30   ;;  %v1008_v29 = vor.u32 %v1098_v25, %v1007_v24  ;;  %v1012_v30 = vor.u32 %v1097_v27, %v1009_v28  ;;  %32 = vst.msk [vmem:[#allocation2 + $0x28] sm:$0xff] %vm26_vm0, %v1139_v26 }
  0x3c   :  { %33 = vst.msk [vmem:[#allocation2 + $0x30] sm:$0xff] %vm26_vm0, %v1139_v26 }
  0x3d   :  { %34 = vst.msk [vmem:[#allocation2 + $0x38] sm:$0xff] %vm26_vm0, %v1139_v26 }
  0x3e   :  { %668 = vperm.xlu2 %1137, %v614_v33   ;;  %35 = vst.msk [vmem:[#allocation2 + $0x40] sm:$0xff] %vm26_vm0, %v1139_v26  ;;  %v1100_v33 = vld [vmem:[%s1794_s0 + $0x74] sm:$0xf0]  ;;  %v60_v54 = vld [vmem:[#allocation2 + $0x8] sm:$0xff] }
  0x3f   :  { %36 = vst.msk [vmem:[#allocation2 + $0x48] sm:$0xff] %vm26_vm0, %v1139_v26  ;;  %v1016_v36 = vor.u32 %v1100_v33, %v1015_v32  ;;  %v61_v6 = vld [vmem:[#allocation2 + $0x10] sm:$0xff] }
  0x40   :  { %37 = vst.msk [vmem:[#allocation2 + $0x50] sm:$0xff] %vm26_vm0, %v1139_v26  ;;  %v62_v16 = vld [vmem:[#allocation2 + $0x18] sm:$0xff] }
  0x41   :  { %38 = vst.msk [vmem:[#allocation2 + $0x58] sm:$0xff] %vm26_vm0, %v1139_v26 }
  0x42   :  { %39 = vst.msk [vmem:[#allocation2 + $0x60] sm:$0xff] %vm26_vm0, %v1139_v26 }
  0x43   :  { %738 = vperm.xlu1 %1136, %v628_v40   ;;  %658 = vperm.xlu0 %1135, %v612_v41   ;;  %40 = vst.msk [vmem:[#allocation2 + $0x68] sm:$0xff] %vm26_vm0, %v1139_v26  ;;  %v1101_v40 = vld [vmem:[%s1794_s0 + $0x84] sm:$0xf]  ;;  %v1025_v41 = vld [vmem:[%s1794_s0 + $0x88] sm:$0xf0] }
  0x44   :  { %349 = vmatmul.bf16.gmra.mxu0 %v976_v42  ;;  %399 = vmatmul.bf16.gmra.mxu2 %v1056_v43  ;;  %41 = vst.msk [vmem:[#allocation2 + $0x70] sm:$0xff] %vm26_vm0, %v1139_v26  ;;  %v1024_v42 = vor.u32 %v1102_v39, %v1023_v38 }
  0x45   :  { %438 = vmatmul.bf16.gmra.mxu1 %v980_v44  ;;  %488 = vmatmul.bf16.gmra.mxu3 %v1060_v45  ;;  %42 = vst.msk [vmem:[#allocation2 + $0x78] sm:$0xff] %vm26_vm0, %v1139_v26  ;;  %v1028_v44 = vor.u32 %v1101_v40, %v1025_v41  ;;  %v59_v45 = vld [vmem:[#allocation2] sm:$0xff]  ;;  %v850_v41 = vld [vmem:[%s1795_s2 + $0x78] sm:$0xff] }
  0x46   :  { %743 = vperm.xlu2 %1137, %v629_v46   ;;  %43 = vst.msk [vmem:[#allocation2 + $0x80] sm:$0xff] %vm26_vm0, %v1139_v26  ;;  %867 = vmatpush.msrb.mxu2 %v850_v41  ;;  %v852_v41 = vld [vmem:[%s1795_s2 + $0x88] sm:$0xff] }
  0x47   :  { %44 = vst.msk [vmem:[#allocation2 + $0x88] sm:$0xff] %vm26_vm0, %v1139_v26 }
  0x48   :  { %45 = vst.msk [vmem:[#allocation2 + $0x90] sm:$0xff] %vm26_vm0, %v1139_v26 }
  0x49   :  { %46 = vst.msk [vmem:[#allocation2 + $0x98] sm:$0xff] %vm26_vm0, %v1139_v26 }
  0x4a   :  { %47 = vst.msk [vmem:[#allocation2 + $0xa0] sm:$0xff] %vm26_vm0, %v1139_v26 }
  0x4b   :  { %733 = vperm.xlu0 %1135, %v627_v47   ;;  %648 = vperm.xlu1 %1136, %v610_v48   ;;  %48 = vst.msk [vmem:[#allocation2 + $0xa8] sm:$0xff] %vm26_vm0, %v1139_v26 }
  0x4c   :  { %49 = vst.msk [vmem:[#allocation2 + $0xb0] sm:$0xff] %vm26_vm0, %v1139_v26 }
  0x4d   :  { %50 = vst.msk [vmem:[#allocation2 + $0xb8] sm:$0xff] %vm26_vm0, %v1139_v26 }
  0x4e   :  { %653 = vperm.xlu2 %1137, %v611_v51   ;;  %51 = vst.msk [vmem:[#allocation2 + $0xc0] sm:$0xff] %vm26_vm0, %v1139_v26 }
  0x4f   :  { %52 = vst.msk [vmem:[#allocation2 + $0xc8] sm:$0xff] %vm26_vm0, %v1139_v26 }
  0x50   :  { %53 = vst.msk [vmem:[#allocation2 + $0xd0] sm:$0xff] %vm26_vm0, %v1139_v26 }
  0x51   :  { %54 = vst.msk [vmem:[#allocation2 + $0xd8] sm:$0xff] %vm26_vm0, %v1139_v26  ;;  %v79_v50 = vld [vmem:[#allocation2 + $0xa0] sm:$0xff] }
  0x52   :  { %55 = vst.msk [vmem:[#allocation2 + $0xe0] sm:$0xff] %vm26_vm0, %v1139_v26  ;;  %v80_v0 = vld [vmem:[#allocation2 + $0xa8] sm:$0xff] }
  0x53   :  { %643 = vperm.xlu0 %1135, %v609_v58   ;;  %723 = vperm.xlu1 %1136, %v625_v11   ;;  %56 = vst.msk [vmem:[#allocation2 + $0xe8] sm:$0xff] %vm26_vm0, %v1139_v26  ;;  %v81_v12 = vld [vmem:[#allocation2 + $0xb0] sm:$0xff] }
  0x54   :  { %354 = vmatmul.bf16.gmra.mxu0 %v984_v59  ;;  %404 = vmatmul.bf16.gmra.mxu2 %v1064_v60  ;;  %57 = vst.msk [vmem:[#allocation2 + $0xf0] sm:$0xff] %vm26_vm0, %v1139_v26  ;;  %v1031_v59 = vld [vmem:[%s1794_s0 + $0x90] sm:$0xf]  ;;  %v1104_v60 = vld [vmem:[%s1794_s0 + $0x94] sm:$0xf0] }
  0x55   :  { %443 = vmatmul.bf16.gmra.mxu1 %v988_v61  ;;  %493 = vmatmul.bf16.gmra.mxu3 %v1068_v62  ;;  %58 = vst.msk [vmem:[#allocation2 + $0xf8] sm:$0xff] %vm26_vm0, %v1139_v26  ;;  %v1103_v61 = vld [vmem:[%s1794_s0 + $0x94] sm:$0xf]  ;;  %v1033_v62 = vld [vmem:[%s1794_s0 + $0x98] sm:$0xf0]  ;;  %v1032_v2 = vor.u32 %v1104_v60, %v1031_v59  ;;  %v63_v26 = vld [vmem:[#allocation2 + $0x20] sm:$0xff] }
  0x56   :  { %728 = vperm.xlu2 %1137, %v626_v31   ;;  %v1036_v5 = vor.u32 %v1103_v61, %v1033_v62  ;;  %v83_v32 = vld [vmem:[#allocation2 + $0xc0] sm:$0xff]  ;;  %v862_v59 = vld [vmem:[%s1795_s2 + $0xd8] sm:$0xff] }
  0x57   :  { %v85_v60 = vld [vmem:[#allocation2 + $0xd0] sm:$0xff] }
  0x64   :  { %359 = vmatmul.bf16.gmra.mxu0 %v992_v7  ;;  %409 = vmatmul.bf16.gmra.mxu2 %v1072_v8 }
  0x65   :  { %448 = vmatmul.bf16.gmra.mxu1 %v996_v9  ;;  %498 = vmatmul.bf16.gmra.mxu3 %v1076_v10 }
  0x74   :  { %364 = vmatmul.bf16.gmra.mxu0 %v1000_v20  ;;  %414 = vmatmul.bf16.gmra.mxu2 %v1080_v21 }
  0x75   :  { %453 = vmatmul.bf16.gmra.mxu1 %v1004_v22  ;;  %503 = vmatmul.bf16.gmra.mxu3 %v1084_v23  ;;  %v82_v22 = vld [vmem:[#allocation2 + $0xb8] sm:$0xff] }
  0x84   :  { %369 = vmatmul.bf16.gmra.mxu0 %v1008_v29 }
  0x85   :  { %458 = vmatmul.bf16.gmra.mxu1 %v1012_v30 }
  0x94   :  { %374 = vmatmul.bf16.gmra.mxu0 %v1016_v36  ;;  %v64_v36 = vld [vmem:[#allocation2 + $0x28] sm:$0xff] }
  0x95   :  { %463 = vmatmul.bf16.gmra.mxu1 %v1020_v37 }
  0xa1   :  { %v340_v43 = vpop.f32.mrf.mxu0 }
  0xa2   :  { %v429_v46 = vpop.f32.mrf.mxu1 }
  0xa3   :  { %v430_v47 = vadd.f32 %v429_v46, %v340_v43  ;;  %v84_v46 = vld [vmem:[#allocation2 + $0xc8] sm:$0xff] }
  0xa4   :  { %379 = vmatmul.bf16.gmra.mxu0 %v1024_v42  ;;  %v866_v42 = vld [vmem:[%s1795_s2 + $0xf8] sm:$0xff] }
  0xa5   :  { %v509_v48 = vadd.f32 %v430_v47, %v59_v45  ;;  %468 = vmatmul.bf16.gmra.mxu1 %v1028_v44  ;;  %887 = vmatpush.msrb.mxu3 %v866_v42  ;;  %v849_v44 = vld [vmem:[%s1795_s2 + $0x70] sm:$0xff] }
  0xa6   :  { %v865_v45 = vld [vmem:[%s1795_s2 + $0xf0] sm:$0xff]  ;;  %868 = vmatpush.msrb.mxu2 %v849_v44  ;;  %v851_v44 = vld [vmem:[%s1795_s2 + $0x80] sm:$0xff] }
  0xa7   :  { %542 = vst.msk [vmem:[#allocation2] sm:$0xff] %vm26_vm0, %v509_v48  ;;  %v390_v49 = vpop.f32.mrf.mxu2  ;;  %888 = vmatpush.msrb.mxu3 %v865_v45 }
  0xa8   :  { %v479_v51 = vpop.f32.mrf.mxu3 }
  0xa9   :  { %v480_v52 = vadd.f32 %v479_v51, %v390_v49  ;;  %v342_v53 = vpop.f32.mrf.mxu0 }
  0xaa   :  { %v431_v55 = vpop.f32.mrf.mxu1 }
  0xab   :  { %v529_v56 = vadd.f32 %v480_v52, %v79_v50  ;;  %v432_v57 = vadd.f32 %v431_v55, %v342_v53  ;;  %v65_v50 = vld [vmem:[#allocation2 + $0x30] sm:$0xff] }
  0xad   :  { %562 = vst.msk [vmem:[#allocation2 + $0xa0] sm:$0xff] %vm26_vm0, %v529_v56  ;;  %v510_v58 = vadd.f32 %v432_v57, %v60_v54  ;;  %v864_v54 = vld [vmem:[%s1795_s2 + $0xe8] sm:$0xff]  ;;  %v863_v56 = vld [vmem:[%s1795_s2 + $0xe0] sm:$0xff] }
  0xae   :  { %889 = vmatpush.msrb.mxu3 %v864_v54 }
  0xaf   :  { %543 = vst.msk [vmem:[#allocation2 + $0x8] sm:$0xff] %vm26_vm0, %v510_v58  ;;  %v392_v63 = vpop.f32.mrf.mxu2  ;;  %v848_v58 = vld [vmem:[%s1795_s2 + $0x68] sm:$0xff] }
  0xb0   :  { %v481_v1 = vpop.f32.mrf.mxu3  ;;  %890 = vmatpush.msrb.mxu3 %v863_v56  ;;  %869 = vmatpush.msrb.mxu2 %v848_v58 }
  0xb1   :  { %v482_v3 = vadd.f32 %v481_v1, %v392_v63  ;;  %v345_v4 = vpop.f32.mrf.mxu0  ;;  %v1631_v1 = vpop.permute.xlu0 %718 }
  0xb2   :  { %v434_v7 = vpop.f32.mrf.mxu1  ;;  %891 = vmatpush.msrb.mxu3 %v862_v59 }
  0xb3   :  { %v530_v8 = vadd.f32 %v482_v3, %v80_v0  ;;  %v435_v9 = vadd.f32 %v434_v7, %v345_v4  ;;  %v861_v0 = vld [vmem:[%s1795_s2 + $0xd0] sm:$0xff]  ;;  %v1636_v7 = vpop.permute.xlu2 %708 }
  0xb4   :  { %384 = vmatmul.bf16.gmra.mxu0 %v1032_v2  ;;  %v66_v2 = vld [vmem:[#allocation2 + $0x38] sm:$0xff]  ;;  %892 = vmatpush.msrb.mxu3 %v861_v0 }
  0xb5   :  { %563 = vst.msk [vmem:[#allocation2 + $0xa8] sm:$0xff] %vm26_vm0, %v530_v8  ;;  %v511_v10 = vadd.f32 %v435_v9, %v61_v6  ;;  %473 = vmatmul.bf16.gmra.mxu1 %v1036_v5  ;;  %v860_v6 = vld [vmem:[%s1795_s2 + $0xc8] sm:$0xff]  ;;  %v859_v9 = vld [vmem:[%s1795_s2 + $0xc0] sm:$0xff] }
  0xb6   :  { %893 = vmatpush.msrb.mxu3 %v860_v6 }
  0xb7   :  { %544 = vst.msk [vmem:[#allocation2 + $0x10] sm:$0xff] %vm26_vm0, %v511_v10  ;;  %v395_v11 = vpop.f32.mrf.mxu2 }
  0xb8   :  { %v484_v13 = vpop.f32.mrf.mxu3  ;;  %894 = vmatpush.msrb.mxu3 %v859_v9 }
  0xb9   :  { %v485_v14 = vadd.f32 %v484_v13, %v395_v11  ;;  %v347_v15 = vpop.f32.mrf.mxu0  ;;  %v847_v11 = vld [vmem:[%s1795_s2 + $0x60] sm:$0xff]  ;;  %v86_v13 = vld [vmem:[#allocation2 + $0xd8] sm:$0xff] }
  0xba   :  { %v436_v17 = vpop.f32.mrf.mxu1  ;;  %870 = vmatpush.msrb.mxu2 %v847_v11 }
  0xbb   :  { %v531_v18 = vadd.f32 %v485_v14, %v81_v12  ;;  %v437_v19 = vadd.f32 %v436_v17, %v347_v15  ;;  %v858_v12 = vld [vmem:[%s1795_s2 + $0xb8] sm:$0xff]  ;;  %v857_v17 = vld [vmem:[%s1795_s2 + $0xb0] sm:$0xff] }
  0xbc   :  { %895 = vmatpush.msrb.mxu3 %v858_v12  ;;  %v840_v12 = vld [vmem:[%s1795_s2 + $0x28] sm:$0xff] }
  0xbd   :  { %564 = vst.msk [vmem:[#allocation2 + $0xb0] sm:$0xff] %vm26_vm0, %v531_v18  ;;  %v512_v20 = vadd.f32 %v437_v19, %v62_v16  ;;  %v1652_v18 = vpop.permute.xlu1 %713  ;;  %v67_v19 = vld [vmem:[#allocation2 + $0x40] sm:$0xff] }
  0xbe   :  { %896 = vmatpush.msrb.mxu3 %v857_v17 }
  0xbf   :  { %545 = vst.msk [vmem:[#allocation2 + $0x18] sm:$0xff] %vm26_vm0, %v512_v20  ;;  %v397_v21 = vpop.f32.mrf.mxu2 }
  0xc0   :  { %v486_v23 = vpop.f32.mrf.mxu3 }
  0xc1   :  { %v487_v24 = vadd.f32 %v486_v23, %v397_v21  ;;  %v350_v25 = vpop.f32.mrf.mxu0  ;;  %v856_v23 = vld [vmem:[%s1795_s2 + $0xa8] sm:$0xff] }
  0xc2   :  { %v439_v27 = vpop.f32.mrf.mxu1  ;;  %897 = vmatpush.msrb.mxu3 %v856_v23  ;;  %v71_v23 = vld [vmem:[#allocation2 + $0x60] sm:$0xff] }
  0xc3   :  { %v532_v28 = vadd.f32 %v487_v24, %v82_v22  ;;  %v440_v29 = vadd.f32 %v439_v27, %v350_v25  ;;  %v1657_v24 = vpop.permute.xlu0 %798  ;;  %v855_v27 = vld [vmem:[%s1795_s2 + $0xa0] sm:$0xff] }
  0xc4   :  { %898 = vmatpush.msrb.mxu3 %v855_v27 }
  0xc5   :  { %565 = vst.msk [vmem:[#allocation2 + $0xb8] sm:$0xff] %vm26_vm0, %v532_v28  ;;  %v513_v30 = vadd.f32 %v440_v29, %v63_v26  ;;  %v846_v26 = vld [vmem:[%s1795_s2 + $0x58] sm:$0xff]  ;;  %v1666_v28 = vpop.permute.xlu2 %788  ;;  %v1681_v42 = vpop.permute.xlu1 %793 }
  0xc6   :  { %871 = vmatpush.msrb.mxu2 %v846_v26 }
  0xc7   :  { %546 = vst.msk [vmem:[#allocation2 + $0x20] sm:$0xff] %vm26_vm0, %v513_v30  ;;  %v400_v31 = vpop.f32.mrf.mxu2  ;;  %v845_v30 = vld [vmem:[%s1795_s2 + $0x50] sm:$0xff] }
  0xc8   :  { %v489_v33 = vpop.f32.mrf.mxu3  ;;  %872 = vmatpush.msrb.mxu2 %v845_v30 }
  0xc9   :  { %v490_v34 = vadd.f32 %v489_v33, %v400_v31  ;;  %v352_v35 = vpop.f32.mrf.mxu0  ;;  %v854_v31 = vld [vmem:[%s1795_s2 + $0x98] sm:$0xff] }
  0xca   :  { %v441_v37 = vpop.f32.mrf.mxu1  ;;  %899 = vmatpush.msrb.mxu3 %v854_v31 }
  0xcb   :  { %v533_v38 = vadd.f32 %v490_v34, %v83_v32  ;;  %v442_v39 = vadd.f32 %v441_v37, %v352_v35  ;;  %v87_v32 = vld [vmem:[#allocation2 + $0xe0] sm:$0xff]  ;;  %v68_v37 = vld [vmem:[#allocation2 + $0x48] sm:$0xff]  ;;  %v1687_v45 = vpop.permute.xlu0 %703 }
  0xcd   :  { %566 = vst.msk [vmem:[#allocation2 + $0xc0] sm:$0xff] %vm26_vm0, %v533_v38  ;;  %v514_v40 = vadd.f32 %v442_v39, %v64_v36  ;;  %v853_v36 = vld [vmem:[%s1795_s2 + $0x90] sm:$0xff]  ;;  %v1696_v58 = vpop.permute.xlu1 %783 }
  0xce   :  { %900 = vmatpush.msrb.mxu3 %v853_v36  ;;  %v72_v36 = vld [vmem:[#allocation2 + $0x68] sm:$0xff] }
  0xcf   :  { %547 = vst.msk [vmem:[#allocation2 + $0x28] sm:$0xff] %vm26_vm0, %v514_v40  ;;  %v402_v43 = vpop.f32.mrf.mxu2 }
  0xd0   :  { %v491_v47 = vpop.f32.mrf.mxu3  ;;  %901 = vmatpush.msrb.mxu3 %v852_v41 }
  0xd1   :  { %v492_v48 = vadd.f32 %v491_v47, %v402_v43  ;;  %v355_v49 = vpop.f32.mrf.mxu0  ;;  %v844_v47 = vld [vmem:[%s1795_s2 + $0x48] sm:$0xff] }
  0xd2   :  { %v444_v51 = vpop.f32.mrf.mxu1  ;;  %902 = vmatpush.msrb.mxu3 %v851_v44  ;;  %873 = vmatpush.msrb.mxu2 %v844_v47 }
  0xd3   :  { %v534_v52 = vadd.f32 %v492_v48, %v84_v46  ;;  %v445_v53 = vadd.f32 %v444_v51, %v355_v49  ;;  %v1693_v48 = vpop.permute.xlu2 %698  ;;  %v88_v49 = vld [vmem:[#allocation2 + $0xe8] sm:$0xff] }
  0xd5   :  { %567 = vst.msk [vmem:[#allocation2 + $0xc8] sm:$0xff] %vm26_vm0, %v534_v52  ;;  %v515_v55 = vadd.f32 %v445_v53, %v65_v50  ;;  %v69_v53 = vld [vmem:[#allocation2 + $0x50] sm:$0xff] }
  0xd7   :  { %548 = vst.msk [vmem:[#allocation2 + $0x30] sm:$0xff] %vm26_vm0, %v515_v55  ;;  %v405_v57 = vpop.f32.mrf.mxu2 }
  0xd8   :  { %v494_v61 = vpop.f32.mrf.mxu3 }
  0xd9   :  { %v495_v62 = vadd.f32 %v494_v61, %v405_v57  ;;  %v357_v63 = vpop.f32.mrf.mxu0  ;;  %v842_v61 = vld [vmem:[%s1795_s2 + $0x38] sm:$0xff] }
  0xda   :  { %v446_v3 = vpop.f32.mrf.mxu1 }
  0xdb   :  { %v535_v4 = vadd.f32 %v495_v62, %v85_v60  ;;  %v447_v5 = vadd.f32 %v446_v3, %v357_v63  ;;  %v843_v60 = vld [vmem:[%s1795_s2 + $0x40] sm:$0xff]  ;;  %v1705_v62 = vpop.permute.xlu0 %778  ;;  %v89_v63 = vld [vmem:[#allocation2 + $0xf0] sm:$0xff] }
  0xdc   :  { %874 = vmatpush.msrb.mxu2 %v843_v60 }
  0xdd   :  { %568 = vst.msk [vmem:[#allocation2 + $0xd0] sm:$0xff] %vm26_vm0, %v535_v4  ;;  %v516_v8 = vadd.f32 %v447_v5, %v66_v2  ;;  %v1707_v4 = vpop.permute.xlu2 %773  ;;  %v70_v5 = vld [vmem:[#allocation2 + $0x58] sm:$0xff] }
  0xde   :  { %875 = vmatpush.msrb.mxu2 %v842_v61 }
  0xdf   :  { %549 = vst.msk [vmem:[#allocation2 + $0x38] sm:$0xff] %vm26_vm0, %v516_v8  ;;  %v407_v10 = vpop.f32.mrf.mxu2 }
  0xe0   :  { %v496_v14 = vpop.f32.mrf.mxu3 }
  0xe1   :  { %v497_v15 = vadd.f32 %v496_v14, %v407_v10  ;;  %v360_v16 = vpop.f32.mrf.mxu0  ;;  %v841_v10 = vld [vmem:[%s1795_s2 + $0x30] sm:$0xff]  ;;  %v839_v14 = vld [vmem:[%s1795_s2 + $0x20] sm:$0xff] }
  0xe2   :  { %v449_v20 = vpop.f32.mrf.mxu1  ;;  %876 = vmatpush.msrb.mxu2 %v841_v10  ;;  %v599_v10 = vld [vmem:[#allocation2 + $0xb0] sm:$0xff] }
  0xe3   :  { %v536_v21 = vadd.f32 %v497_v15, %v86_v13  ;;  %v450_v22 = vadd.f32 %v449_v20, %v360_v16  ;;  %v1720_v15 = vpop.permute.xlu1 %693  ;;  %v90_v16 = vld [vmem:[#allocation2 + $0xf8] sm:$0xff] }
  0xe4   :  { %877 = vmatpush.msrb.mxu2 %v840_v12 }
  0xe5   :  { %569 = vst.msk [vmem:[#allocation2 + $0xd8] sm:$0xff] %vm26_vm0, %v536_v21  ;;  %v517_v25 = vadd.f32 %v450_v22, %v67_v19  ;;  %v838_v21 = vld [vmem:[%s1795_s2 + $0x18] sm:$0xff]  ;;  %v1725_v22 = vpop.permute.xlu0 %688  ;;  %v1730_v30 = vpop.permute.xlu2 %683 }
  0xe6   :  { %878 = vmatpush.msrb.mxu2 %v839_v14  ;;  %v598_v14 = vld [vmem:[#allocation2 + $0xa8] sm:$0xff] }
  0xe7   :  { %550 = vst.msk [vmem:[#allocation2 + $0x40] sm:$0xff] %vm26_vm0, %v517_v25  ;;  %v410_v29 = vpop.f32.mrf.mxu2 }
  0xe8   :  { %v499_v33 = vpop.f32.mrf.mxu3  ;;  %879 = vmatpush.msrb.mxu2 %v838_v21 }
  0xe9   :  { %v500_v34 = vadd.f32 %v499_v33, %v410_v29  ;;  %v362_v35 = vpop.f32.mrf.mxu0  ;;  %v837_v29 = vld [vmem:[%s1795_s2 + $0x10] sm:$0xff]  ;;  %v835_v33 = vld [vmem:[%s1795_s2] sm:$0xff] }
  0xea   :  { %v451_v38 = vpop.f32.mrf.mxu1  ;;  %880 = vmatpush.msrb.mxu2 %v837_v29 }
  0xeb   :  { %v537_v39 = vadd.f32 %v500_v34, %v87_v32  ;;  %v452_v40 = vadd.f32 %v451_v38, %v362_v35  ;;  %v836_v32 = vld [vmem:[%s1795_s2 + $0x8] sm:$0xff]  ;;  %v769_v35 = vpop.permute.xlu1 %768 }
  0xec   :  { %881 = vmatpush.msrb.mxu2 %v836_v32 }
  0xed   :  { %570 = vst.msk [vmem:[#allocation2 + $0xe0] sm:$0xff] %vm26_vm0, %v537_v39  ;;  %v518_v43 = vadd.f32 %v452_v40, %v68_v37  ;;  %v764_v39 = vpop.permute.xlu0 %763 }
  0xee   :  { %882 = vmatpush.msrb.mxu2 %v835_v33 }
  0xef   :  { %551 = vst.msk [vmem:[#allocation2 + $0x48] sm:$0xff] %vm26_vm0, %v518_v43  ;;  %v412_v46 = vpop.f32.mrf.mxu2 }
  0xf0   :  { %v501_v50 = vpop.f32.mrf.mxu3 }
  0xf1   :  { %v502_v51 = vadd.f32 %v501_v50, %v412_v46  ;;  %v365_v52 = vpop.f32.mrf.mxu0  ;;  %v759_v46 = vpop.permute.xlu2 %758 }
  0xf2   :  { %v454_v54 = vpop.f32.mrf.mxu1 }
  0xf3   :  { %v538_v55 = vadd.f32 %v502_v51, %v88_v49  ;;  %v455_v56 = vadd.f32 %v454_v54, %v365_v52 }
  0xf4   :  { %v605_v50 = vld [vmem:[#allocation2 + $0xe0] sm:$0xff] }
  0xf5   :  { %571 = vst.msk [vmem:[#allocation2 + $0xe8] sm:$0xff] %vm26_vm0, %v538_v55  ;;  %v519_v57 = vadd.f32 %v455_v56, %v69_v53  ;;  %v73_v53 = vld [vmem:[#allocation2 + $0x70] sm:$0xff]  ;;  %v604_v55 = vld [vmem:[#allocation2 + $0xd8] sm:$0xff] }
  0xf6   :  { %v828_v61 = vmul.f32 %v1705_v62, %v604_v55  ;;  %v77_v55 = vld [vmem:[#allocation2 + $0x90] sm:$0xff] }
  0xf7   :  { %552 = vst.msk [vmem:[#allocation2 + $0x50] sm:$0xff] %vm26_vm0, %v519_v57  ;;  %v415_v59 = vpop.f32.mrf.mxu2  ;;  %v829_v57 = vmul.f32 %v1696_v58, %v605_v50 }
  0xf8   :  { %v504_v0 = vpop.f32.mrf.mxu3 }
  0xf9   :  { %v505_v2 = vadd.f32 %v504_v0, %v415_v59  ;;  %v367_v3 = vpop.f32.mrf.mxu0  ;;  %v603_v59 = vld [vmem:[#allocation2 + $0xd0] sm:$0xff]  ;;  %v1752_v0 = vpop.permute.xlu2 %668 }
  0xfa   :  { %v456_v6 = vpop.f32.mrf.mxu1 }
  0xfb   :  { %v539_v8 = vadd.f32 %v505_v2, %v89_v63  ;;  %v457_v9 = vadd.f32 %v456_v6, %v367_v3  ;;  %v602_v63 = vld [vmem:[#allocation2 + $0xc8] sm:$0xff]  ;;  %v601_v2 = vld [vmem:[#allocation2 + $0xc0] sm:$0xff] }
  0xfc   :  { %v606_v47 = vld [vmem:[#allocation2 + $0xe8] sm:$0xff]  ;;  %v826_v3 = vmul.f32 %v769_v35, %v602_v63  ;;  %v825_v62 = vmul.f32 %v764_v39, %v601_v2 }
  0xfd   :  { %572 = vst.msk [vmem:[#allocation2 + $0xf0] sm:$0xff] %vm26_vm0, %v539_v8  ;;  %v520_v11 = vadd.f32 %v457_v9, %v70_v5  ;;  %v830_v52 = vmul.f32 %v1666_v28, %v606_v47  ;;  %v827_v28 = vmul.f32 %v1707_v4, %v603_v59  ;;  %v74_v5 = vld [vmem:[#allocation2 + $0x78] sm:$0xff]  ;;  %v1765_v35 = vld [vmem:[%s1796_s4 + $0x8] sm:$0xff] }
  0xfe   :  { %v600_v8 = vld [vmem:[#allocation2 + $0xb8] sm:$0xff]  ;;  %903 = vmatmul.f32.vlgmr.msrb.gmra.mxu3 %v1765_v35  ;;  %v582_v2 = vld [vmem:[#allocation2 + $0x28] sm:$0xff] }
  0xff   :  { %553 = vst.msk [vmem:[#allocation2 + $0x58] sm:$0xff] %vm26_vm0, %v520_v11  ;;  %v417_v13 = vpop.f32.mrf.mxu2  ;;  %v824_v12 = vmul.f32 %v759_v46, %v600_v8 }
 0x100   :  { %v506_v17 = vpop.f32.mrf.mxu3 }
 0x101   :  { %v507_v19 = vadd.f32 %v506_v17, %v417_v13  ;;  %v370_v20 = vpop.f32.mrf.mxu0  ;;  %v597_v17 = vld [vmem:[#allocation2 + $0xa0] sm:$0xff]  ;;  %v744_v21 = vpop.permute.xlu2 %743 }
 0x102   :  { %v459_v25 = vpop.f32.mrf.mxu1 }
 0x103   :  { %v540_v26 = vadd.f32 %v507_v19, %v90_v16  ;;  %v460_v27 = vadd.f32 %v459_v25, %v370_v20 }
 0x104   :  { %v607_v41 = vld [vmem:[#allocation2 + $0xf0] sm:$0xff] }
 0x105   :  { %573 = vst.msk [vmem:[#allocation2 + $0xf8] sm:$0xff] %vm26_vm0, %v540_v26  ;;  %v521_v31 = vadd.f32 %v460_v27, %v71_v23  ;;  %v831_v49 = vmul.f32 %v1681_v42, %v607_v41  ;;  %v1748_v42 = vpop.permute.xlu0 %673  ;;  %v75_v23 = vld [vmem:[#allocation2 + $0x80] sm:$0xff]  ;;  %v821_v26 = vmul.f32 %v744_v21, %v597_v17 }
 0x106   :  { %v588_v46 = vld [vmem:[#allocation2 + $0x58] sm:$0xff]  ;;  %v577_v17 = vld [vmem:[#allocation2] sm:$0xff] }
 0x107   :  { %554 = vst.msk [vmem:[#allocation2 + $0x60] sm:$0xff] %vm26_vm0, %v521_v31 }
 0x109   :  { %v372_v34 = vpop.f32.mrf.mxu0 }
 0x10a   :  { %v461_v37 = vpop.f32.mrf.mxu1 }
 0x10b   :  { %v462_v38 = vadd.f32 %v461_v37, %v372_v34  ;;  %v1760_v34 = vld [vmem:[%s1796_s4] sm:$0xff] }
 0x10c   :  { %v608_v40 = vld [vmem:[#allocation2 + $0xf8] sm:$0xff]  ;;  %883 = vmatmul.f32.vlgmr.msrb.gmra.mxu2 %v1760_v34 }
 0x10d   :  { %v522_v43 = vadd.f32 %v462_v38, %v72_v36  ;;  %v832_v44 = vmul.f32 %v1657_v24, %v608_v40  ;;  %v1745_v24 = vpop.permute.xlu1 %678  ;;  %v749_v16 = vpop.permute.xlu0 %748 }
 0x10e   :  { %v822_v20 = vmul.f32 %v749_v16, %v598_v14  ;;  %v589_v40 = vld [vmem:[#allocation2 + $0x60] sm:$0xff] }
 0x10f   :  { %555 = vst.msk [vmem:[#allocation2 + $0x68] sm:$0xff] %vm26_vm0, %v522_v43  ;;  %928 = vmatpush.msra.mxu3 %v832_v44 }
 0x111   :  { %929 = vmatpush.msra.mxu3 %v831_v49  ;;  %v375_v51 = vpop.f32.mrf.mxu0  ;;  %v813_v49 = vmul.f32 %v1687_v45, %v589_v40  ;;  %v584_v45 = vld [vmem:[#allocation2 + $0x38] sm:$0xff] }
 0x112   :  { %v464_v54 = vpop.f32.mrf.mxu1 }
 0x113   :  { %v465_v56 = vadd.f32 %v464_v54, %v375_v51  ;;  %930 = vmatpush.msra.mxu3 %v830_v52  ;;  %v587_v51 = vld [vmem:[#allocation2 + $0x50] sm:$0xff]  ;;  %v586_v52 = vld [vmem:[#allocation2 + $0x48] sm:$0xff] }
 0x114   :  { %v811_v54 = vmul.f32 %v1720_v15, %v587_v51  ;;  %v810_v59 = vmul.f32 %v1725_v22, %v586_v52 }
 0x115   :  { %v523_v60 = vadd.f32 %v465_v56, %v73_v53  ;;  %931 = vmatpush.msra.mxu3 %v829_v57  ;;  %v754_v13 = vpop.permute.xlu1 %753  ;;  %v659_v50 = vpop.permute.xlu0 %658  ;;  %v585_v56 = vld [vmem:[#allocation2 + $0x40] sm:$0xff] }
 0x116   :  { %v823_v4 = vmul.f32 %v754_v13, %v599_v10  ;;  %v590_v36 = vld [vmem:[#allocation2 + $0x68] sm:$0xff] }
 0x117   :  { %556 = vst.msk [vmem:[#allocation2 + $0x70] sm:$0xff] %vm26_vm0, %v523_v60  ;;  %932 = vmatpush.msra.mxu3 %v828_v61  ;;  %v814_v43 = vmul.f32 %v1636_v7, %v590_v36  ;;  %v809_v61 = vmul.f32 %v1730_v30, %v585_v56  ;;  %v806_v30 = vmul.f32 %v1752_v0, %v582_v2 }
 0x119   :  { %933 = vmatpush.msra.mxu3 %v827_v28  ;;  %v377_v58 = vpop.f32.mrf.mxu0  ;;  %v583_v28 = vld [vmem:[#allocation2 + $0x30] sm:$0xff] }
 0x11a   :  { %v466_v6 = vpop.f32.mrf.mxu1 }
 0x11b   :  { %v467_v9 = vadd.f32 %v466_v6, %v377_v58  ;;  %934 = vmatpush.msra.mxu3 %v826_v3  ;;  %v807_v3 = vmul.f32 %v1748_v42, %v583_v28  ;;  %v581_v6 = vld [vmem:[#allocation2 + $0x20] sm:$0xff]  ;;  %v578_v42 = vld [vmem:[#allocation2 + $0x8] sm:$0xff] }
 0x11d   :  { %v524_v11 = vadd.f32 %v467_v9, %v74_v5  ;;  %935 = vmatpush.msra.mxu3 %v825_v62  ;;  %v664_v44 = vpop.permute.xlu1 %663  ;;  %v734_v15 = vpop.permute.xlu0 %733  ;;  %v78_v5 = vld [vmem:[#allocation2 + $0x98] sm:$0xff] }
 0x11e   :  { %v591_v32 = vld [vmem:[#allocation2 + $0x70] sm:$0xff]  ;;  %v580_v9 = vld [vmem:[#allocation2 + $0x18] sm:$0xff]  ;;  %v805_v10 = vmul.f32 %v664_v44, %v581_v6 }
 0x11f   :  { %557 = vst.msk [vmem:[#allocation2 + $0x78] sm:$0xff] %vm26_vm0, %v524_v11  ;;  %936 = vmatpush.msra.mxu3 %v824_v12  ;;  %v815_v38 = vmul.f32 %v1652_v18, %v591_v32  ;;  %v812_v18 = vmul.f32 %v1693_v48, %v588_v46  ;;  %v808_v48 = vmul.f32 %v1745_v24, %v584_v45  ;;  %v654_v11 = vpop.permute.xlu2 %653  ;;  %v579_v12 = vld [vmem:[#allocation2 + $0x10] sm:$0xff] }
 0x120   :  { %v804_v24 = vmul.f32 %v659_v50, %v580_v9  ;;  %v803_v14 = vmul.f32 %v654_v11, %v579_v12 }
 0x121   :  { %937 = vmatpush.msra.mxu3 %v823_v4  ;;  %v380_v19 = vpop.f32.mrf.mxu0 }
 0x122   :  { %v469_v25 = vpop.f32.mrf.mxu1 }
 0x123   :  { %v470_v27 = vadd.f32 %v469_v25, %v380_v19  ;;  %938 = vmatpush.msra.mxu3 %v822_v20 }
 0x125   :  { %v525_v29 = vadd.f32 %v470_v27, %v75_v23  ;;  %939 = vmatpush.msra.mxu3 %v821_v26  ;;  %v739_v63 = vpop.permute.xlu1 %738  ;;  %v644_v4 = vpop.permute.xlu0 %643 }
 0x126   :  { %v592_v31 = vld [vmem:[#allocation2 + $0x78] sm:$0xff]  ;;  %v801_v19 = vmul.f32 %v644_v4, %v577_v17 }
 0x127   :  { %558 = vst.msk [vmem:[#allocation2 + $0x80] sm:$0xff] %vm26_vm0, %v525_v29  ;;  %v816_v33 = vmul.f32 %v1631_v1, %v592_v31  ;;  %v76_v1 = vld [vmem:[#allocation2 + $0x88] sm:$0xff]  ;;  %v729_v26 = vpop.permute.xlu2 %728 }
 0x129   :  { %908 = vmatpush.msra.mxu2 %v816_v33  ;;  %v382_v37 = vpop.f32.mrf.mxu0 }
 0x12a   :  { %v471_v39 = vpop.f32.mrf.mxu1 }
 0x12b   :  { %v472_v41 = vadd.f32 %v471_v39, %v382_v37  ;;  %909 = vmatpush.msra.mxu2 %v815_v38 }
 0x12d   :  { %v526_v47 = vadd.f32 %v472_v41, %v76_v1  ;;  %910 = vmatpush.msra.mxu2 %v814_v43  ;;  %v649_v13 = vpop.permute.xlu1 %648 }
 0x12e   :  { %v802_v16 = vmul.f32 %v649_v13, %v578_v42  ;;  %v593_v27 = vld [vmem:[#allocation2 + $0x80] sm:$0xff] }
 0x12f   :  { %559 = vst.msk [vmem:[#allocation2 + $0x88] sm:$0xff] %vm26_vm0, %v526_v47  ;;  %911 = vmatpush.msra.mxu2 %v813_v49 }
 0x131   :  { %912 = vmatpush.msra.mxu2 %v812_v18  ;;  %v385_v53 = vpop.f32.mrf.mxu0 }
 0x132   :  { %v474_v7 = vpop.f32.mrf.mxu1 }
 0x133   :  { %v475_v57 = vadd.f32 %v474_v7, %v385_v53  ;;  %913 = vmatpush.msra.mxu2 %v811_v54 }
 0x135   :  { %v527_v60 = vadd.f32 %v475_v57, %v77_v55  ;;  %914 = vmatpush.msra.mxu2 %v810_v59  ;;  %v724_v31 = vpop.permute.xlu1 %723 }
 0x136   :  { %v594_v23 = vld [vmem:[#allocation2 + $0x88] sm:$0xff]  ;;  %v817_v32 = vmul.f32 %v724_v31, %v593_v27 }
 0x137   :  { %560 = vst.msk [vmem:[#allocation2 + $0x90] sm:$0xff] %vm26_vm0, %v527_v60  ;;  %915 = vmatpush.msra.mxu2 %v809_v61  ;;  %v818_v29 = vmul.f32 %v729_v26, %v594_v23 }
 0x139   :  { %916 = vmatpush.msra.mxu2 %v808_v48  ;;  %v387_v58 = vpop.f32.mrf.mxu0 }
 0x13a   :  { %v476_v22 = vpop.f32.mrf.mxu1 }
 0x13b   :  { %v477_v8 = vadd.f32 %v476_v22, %v387_v58  ;;  %917 = vmatpush.msra.mxu2 %v807_v3 }
 0x13d   :  { %v528_v62 = vadd.f32 %v477_v8, %v78_v5  ;;  %918 = vmatpush.msra.mxu2 %v806_v30 }
 0x13e   :  { %v595_v20 = vld [vmem:[#allocation2 + $0x90] sm:$0xff] }
 0x13f   :  { %561 = vst.msk [vmem:[#allocation2 + $0x98] sm:$0xff] %vm26_vm0, %v528_v62  ;;  %919 = vmatpush.msra.mxu2 %v805_v10  ;;  %v819_v25 = vmul.f32 %v734_v15, %v595_v20 }
 0x141   :  { %920 = vmatpush.msra.mxu2 %v804_v24 }
 0x143   :  { %921 = vmatpush.msra.mxu2 %v803_v14 }
 0x145   :  { %922 = vmatpush.msra.mxu2 %v802_v16 }
 0x146   :  { %v596_v0 = vld [vmem:[#allocation2 + $0x98] sm:$0xff] }
 0x147   :  { %923 = vmatpush.msra.mxu2 %v801_v19  ;;  %v820_v21 = vmul.f32 %v739_v63, %v596_v0 }
 0x148   :  { %924 = vmatmul.f32.vlgmr.msra.gmra.mxu2 %v1760_v34 }
 0x149   :  { %940 = vmatpush.msra.mxu3 %v820_v21 }
 0x14b   :  { %941 = vmatpush.msra.mxu3 %v819_v25 }
 0x14d   :  { %942 = vmatpush.msra.mxu3 %v818_v29 }
 0x14f   :  { %943 = vmatpush.msra.mxu3 %v817_v32 }
 0x150   :  { %944 = vmatmul.f32.vlgmr.msra.gmra.mxu3 %v1765_v35 }
 0x181   :  { %v904_v36 = vpop.f32.mrf.mxu3 }
 0x18f   :  { %v884_v33 = vpop.f32.mrf.mxu2 }
 0x190   :  { %v905_v37 = vadd.f32 %v904_v36, %v884_v33 }
 0x192   :  { %907 = vst.msk [vmem:[%s1797_s5] sm:$0xff] %vm26_vm0, %v905_v37 }
 0x1cb   :  { %v925_v34 = vpop.f32.mrf.mxu2 }
 0x1d3   :  { %v945_v38 = vpop.f32.mrf.mxu3 }
 0x1d4   :  { %v946_v1 = vadd.f32 %v945_v38, %v925_v34 }
 0x1d6   :  { %948 = vst.msk [vmem:[%s1798_s6] sm:$0xff] %vm26_vm0, %v946_v1 }

// kernel: graphsage_hgnnplus_forward.9
= control target key start
LH: loop header
LB: loop body
LE: loop exit
PB: predicated region body
PF: predicated region fallthrough
CT: control target
= control target key end

     0   :  { %s158_s0 = inlined_call_operand.vmem [shape: f32[1,32], index: 0, kind: input, shape index: {}]   ;;  %s159_s1 = inlined_call_operand.vmem [shape: f32[32,1], index: 1, kind: input, shape index: {}]   ;;  %s160_s2 = inlined_call_operand.<no memory space> [shape: f32[1,1], index: 2, kind: input, shape index: {}]   ;;  %s161_s3 = inlined_call_operand.hbm [shape: f32[1,1], index: 3, kind: output, shape index: {}]  }
   0x1   :  { %v8_v0 = vstv %s160_s2 }
   0x2   :  { %9 = vst [vmem:[#allocation2] sm:$0x1] %v8_v0 }
   0x3   :  { %v21_v1 = vld [vmem:[%s159_s1 + $0x18] sm:$0xff]  ;;  %v20_v2 = vld [vmem:[%s159_s1 + $0x10] sm:$0xff]  ;;  %v19_v3 = vld [vmem:[%s159_s1 + $0x8] sm:$0xff] }
   0x4   :  { %39 = vmatpush.msra.mxu0 %v21_v1 }
   0x5   :  { %10 = vsyncpa [#allocation4], 0  ;;  %v18_v4 = vld [vmem:[%s159_s1] sm:$0xff]  ;;  %vm23_vm0 = vcmask 261120   ;;  %s75_s25 = sshll.u32 %s161_s3, 4  ;;  %vm66_vm4 = vcmask 0   ;;  %s76_s25 = int_to_ptr.hbm [resolvable:$true] %s75_s25 }
   0x6   :  { %40 = vmatpush.msra.mxu0 %v20_v2  ;;  %v17_v5 = vld [vmem:[%s158_s0] sm:$0x1]  ;;  %s116_s0 = smov [#allocation3]  }
   0x7   :  { %s73_s1 = sshll.u32 %s116_s0, 4  ;;  %s74_s1 = int_to_ptr.vmem [resolvable:$true] %s73_s1 }
   0x8   :  { %41 = vmatpush.msra.mxu0 %v19_v3 }
   0x9   :  { %v22_v6 = vld [vmem:[#allocation2] sm:$0x1] }
   0xa   :  { %42 = vmatpush.msra.mxu0 %v18_v4 }
   0xb   :  { %84 = vmatmul.msk.f32.vlgmr.msra.gmra.mxu0 %vm23_vm0, %v17_v5 }
  0x88   :  { %v44_v7 = vpop.f32.mrf.mxu0 }
  0x89   :  { %v45_v8 = vadd.f32 %v44_v7, %v22_v6 }
  0x8b   :  { %v47_v9 = vsub.f32 0.0, %v45_v8 }
  0x8d   :  { %v48_v10 = vmul.f32 1.442695, %v47_v9 }
  0x8f   :  { %86 = vpow2.f32 %v48_v10 }
  0x95   :  { %v87_v11 = vpop.eup %86 }
  0x96   :  { %v50_v12 = vadd.f32 1.0, %v87_v11 }
  0x98   :  { %88 = vrcp.f32 %v50_v12  ;;  %v62_v16 = vand.u32 2147483648, %v50_v12  ;;  %v60_v18 = vand.u32 2147483647, %v50_v12  ;;  %vm56_vm2 = vweird.f32 %v50_v12 }
  0x9a   :  { %v63_v20 = vor.u32 1.1754944e-38, %v62_v16  ;;  %vm61_vm5 = vcmp.eq.f32.partialorder %v60_v18, 8.507059e+37 }
  0x9e   :  { %v89_v13 = vpop.eup %88 }
  0x9f   :  { %v52_v14 = vmul.f32 %v89_v13, %v50_v12  ;;  %vm57_vm1 = vweird.f32 %v89_v13 }
  0xa0   :  { %vm58_vm3 = vmor %vm56_vm2, %vm57_vm1 }
  0xa1   :  { %v53_v15 = vsub.f32 1.0, %v52_v14 }
  0xa3   :  { %v54_v17 = vmul.f32 %v89_v13, %v53_v15 }
  0xa5   :  { %v55_v19 = vadd.f32 %v89_v13, %v54_v17 }
  0xa7   :  { %v59_v21 = vsel %vm58_vm3, %v89_v13, %v55_v19 }
  0xa8   :  { %v64_v22 = vsel %vm61_vm5, %v63_v20, %v59_v21 }
  0xa9   :  { %67 = vst.msk [vmem:[#allocation3] sm:$0x1] %vm66_vm4, %v64_v22 }
  0xaa   :  { %78 = dma.vmem_to_hbm [thread:$0]  %s74_s1, 16, %s76_s25, [#allocation4]  }
  0xab   :  { %114 = dma.done.wait [#allocation4], 16  }
  0xac   :  { %115 = vsyncadd [#allocation4], 4294967280 }
  0xad   :  { %83 = vsyncpa [#allocation4], 1 }

</bundles_post_ra>
